<compile_context>
chip_gen: v7x
topology: tpu7x:2x2x1
jax: 0.10.0
libtpu: 0.0.40
codegen_flags: <defaults>
</compile_context>

<pallas_src>
import jax
import jax.numpy as jnp
from jax import lax
from jax.experimental import pallas as pl
from jax.experimental.pallas import tpu as pltpu


def _round_up(a, b):
    return ((a + b - 1) // b) * b


def _make_kernel(C, OC, W, Hp8, Wp, ksize, K, PT):
    W_INV = 1.0 / float(W)
    KPT = K * PT

    def kernel(x_ref, off_ref, wdcn_ref, bnb_ref, out_ref):
        # x_ref   : [1, C*Hp8, Wp]   zero-padded input (row index = c*Hp8 + padded_row)
        # off_ref : [1, 1, 3K, PT]   conv_offset output for this (batch, group, tile):
        #                            rows [0,2K) = interleaved (dy, dx), rows [2K,3K) = mask logits
        # wdcn_ref: [1, OC, K*C]     grouped DCN weights (BN scale folded in), cols kk*C + c
        # bnb_ref : [OC, 1]          fused BN bias
        # out_ref : [1, 1, OC, PT]
        t = pl.program_id(2)
        xmat = x_ref[0]                       # [C*Hp8, Wp]
        off = off_ref[0, 0]                   # [3K, PT]

        # Global pixel index of this tile's lanes -> integer base coordinates.
        pix = lax.broadcasted_iota(jnp.int32, (1, PT), 1)
        gp = (pix + t * PT).astype(jnp.float32)           # [1, PT]
        row = jnp.floor((gp + 0.5) * W_INV)                # robust integer div
        base_h = row
        base_w = gp - row * float(W)

        # Per-tap deformed coordinates (already in the padded frame: base + ki + dy)
        # and modulation mask, all batched along the lane axis.
        py_l, px_l, m_l = [], [], []
        for kk in range(K):
            ki, kj = kk // ksize, kk % ksize
            py_l.append(base_h + float(ki) + off[2 * kk:2 * kk + 1, :])
            px_l.append(base_w + float(kj) + off[2 * kk + 1:2 * kk + 2, :])
            m_l.append(off[2 * K + kk:2 * K + kk + 1, :])
        ph = jnp.concatenate(py_l, axis=1)                  # [1, K*PT]
        pw = jnp.concatenate(px_l, axis=1)                  # [1, K*PT]
        msk = jax.nn.sigmoid(jnp.concatenate(m_l, axis=1))  # [1, K*PT]

        # Separable bilinear "tent" weights over the zero-padded grid.  Corners on
        # the pad ring hit zero data; corners further out match no row/column --
        # both contribute 0, exactly like the DCNv2 CUDA bilinear kernel.
        iota_h = lax.broadcasted_iota(jnp.int32, (Hp8, KPT), 0).astype(jnp.float32)
        iota_w = lax.broadcasted_iota(jnp.int32, (Wp, KPT), 0).astype(jnp.float32)
        sy = jnp.maximum(1.0 - jnp.abs(iota_h - ph), 0.0)   # [Hp8, K*PT]
        sx = jnp.maximum(1.0 - jnp.abs(iota_w - pw), 0.0)   # [Wp,  K*PT]

        # Column gather via one MXU contraction, row gather via broadcast multiply
        # + sublane reduction (XLU), then modulation mask once.
        a = jnp.dot(xmat, sx, preferred_element_type=jnp.float32)   # [C*Hp8, K*PT]
        a = a.reshape(C, Hp8, KPT) * sy[None, :, :]
        samp = jnp.sum(a, axis=1)                                   # [C, K*PT]
        samp = samp * msk

        # (c, kk*PT + p) -> (kk*C + c, p), then one grouped-conv matmul.
        stacked = jnp.concatenate(
            [samp[:, kk * PT:(kk + 1) * PT] for kk in range(K)], axis=0)  # [K*C, PT]
        acc = jnp.dot(wdcn_ref[0], stacked,
                      preferred_element_type=jnp.float32)                 # [OC, PT]

        # BN scale already folded into weights; add bias, ReLU.
        out_ref[0, 0] = jnp.maximum(acc + bnb_ref[...], 0.0)

    return kernel


def init_params(key, in_channel, out_channel, scale, ksize=3):
    C, OC = in_channel, out_channel
    G = scale * scale
    COFF = 3 * G * ksize * ksize
    ks = jax.random.split(key, 6)
    # conv_offset: Conv2d(C*G -> 3*G*k*k, k, padding=k//2, bias=True)
    w_off = 0.1 * jax.random.normal(ks[0], (COFF, C * G, ksize, ksize), jnp.float32)
    b_off = 0.1 * jax.random.normal(ks[1], (COFF,), jnp.float32)
    # DCN weight: [OC*G, C, k, k]  (in_channels/groups = C), bias=False
    w_dcn = 0.1 * jax.random.normal(ks[2], (OC * G, C, ksize, ksize), jnp.float32)
    # BatchNorm2d(OC) inference-mode parameters
    gamma = 1.0 + 0.1 * jax.random.normal(ks[3], (OC,), jnp.float32)
    beta = 0.1 * jax.random.normal(ks[4], (OC,), jnp.float32)
    rmean = 0.1 * jax.random.normal(ks[5], (OC,), jnp.float32)
    rvar = jnp.ones((OC,), jnp.float32)
    return dict(w_off=w_off, b_off=b_off, w_dcn=w_dcn,
                gamma=gamma, beta=beta, rmean=rmean, rvar=rvar)


def deform_upsample(x, params, out_channel, scale, ksize=3, eps=1e-5, max_lanes=1024):
    B, C, H, W = x.shape
    OC = out_channel
    K = ksize * ksize
    G = scale * scale
    PAD = ksize // 2
    Hp, Wp = H + 2 * PAD, W + 2 * PAD
    Hp8 = _round_up(Hp, 8)
    P = H * W
    COFF = 3 * G * K

    # Lane-dense pixel tiling: pad P up to a multiple of 128, tile by PT lanes.
    max_lanes = max(128, (max_lanes // 128) * 128)
    PT = min(max_lanes, _round_up(P, 128))
    T = -(-P // PT)
    P_pad = T * PT

    # --- conv_offset as an ordinary dense conv in the wrapper (static taps) ---
    # x.repeat(1, G, 1, 1) through the ungrouped conv_offset == conv of x with the
    # repeat-collapsed weight.
    w_off = params['w_off'].reshape(COFF, G, C, ksize, ksize).sum(axis=1)
    off_raw = lax.conv_general_dilated(
        x, w_off, window_strides=(1, 1),
        padding=((PAD, PAD), (PAD, PAD)),
        dimension_numbers=('NCHW', 'OIHW', 'NCHW'))
    off_raw = off_raw + params['b_off'][None, :, None, None]
    off_raw = off_raw.reshape(B, COFF, P)
    # Per deform group: rows [0, 2K) = interleaved (dy, dx) offsets (= cat(o1, o2)),
    # rows [2K, 3K) = mask logits.  Matches ModulatedDeformConv2dPack's chunk/cat.
    off_g = jnp.concatenate(
        [off_raw[:, :2 * G * K].reshape(B, G, 2 * K, P),
         off_raw[:, 2 * G * K:].reshape(B, G, K, P)], axis=2)      # [B, G, 3K, P]
    off_g = jnp.pad(off_g, ((0, 0), (0, 0), (0, 0), (0, P_pad - P)))

    # Zero-padded input image (pad ring + extra zero rows so Hp8 % 8 == 0, which
    # keeps the in-kernel reshape [C*Hp8, .] -> [C, Hp8, .] relayout-free; the
    # extra zero rows contribute nothing to sampling).
    xp = jnp.pad(x, ((0, 0), (0, 0), (PAD, PAD + Hp8 - Hp), (PAD, PAD)))
    xp = xp.reshape(B, C * Hp8, Wp)

    # Grouped DCN weights per deform group, columns ordered kk*C + c; fold BN scale.
    bn_scale = params['gamma'] / jnp.sqrt(params['rvar'] + eps)           # [OC]
    bn_bias = (params['beta'] - params['rmean'] * bn_scale).reshape(OC, 1)
    w_dcn_g = (params['w_dcn'].reshape(G, OC, C, ksize, ksize)
               .transpose(0, 1, 3, 4, 2).reshape(G, OC, K * C))
    w_dcn_g = w_dcn_g * bn_scale[None, :, None]

    kernel = _make_kernel(C, OC, W, Hp8, Wp, ksize, K, PT)

    # Explicit VMEM budget (f32 bytes): double-buffered blocks + main intermediates.
    vmem_est = 4 * (2 * C * Hp8 * Wp            # x block (double-buffered)
                    + 2 * 3 * K * PT            # off block
                    + 2 * OC * PT               # out block
                    + 2 * OC * K * C            # weights
                    + 2 * C * Hp8 * K * PT      # a and its masked copy
                    + (Hp8 + Wp) * K * PT       # sy, sx
                    + 4 * C * K * PT)           # samp / stacked temporaries
    vmem_limit = int(min(64 * 2 ** 20, max(2 * vmem_est, 32 * 2 ** 20)))

    out = pl.pallas_call(
        kernel,
        out_shape=jax.ShapeDtypeStruct((B, G, OC, P_pad), jnp.float32),
        grid=(B, G, T),
        in_specs=[
            pl.BlockSpec((1, C * Hp8, Wp), lambda b, g, t: (b, 0, 0)),
            pl.BlockSpec((1, 1, 3 * K, PT), lambda b, g, t: (b, g, 0, t)),
            pl.BlockSpec((1, OC, K * C), lambda b, g, t: (g, 0, 0)),
            pl.BlockSpec((OC, 1), lambda b, g, t: (0, 0)),
        ],
        out_specs=pl.BlockSpec((1, 1, OC, PT), lambda b, g, t: (b, g, 0, t)),
        compiler_params=pltpu.CompilerParams(
            dimension_semantics=("parallel", "parallel", "parallel"),
            vmem_limit_bytes=vmem_limit),
    )(xp, off_g, w_dcn_g, bn_bias)

    # Pixel shuffle (plain JAX glue), exactly:
    #   view(b, s, s, OC, h, w).permute(0,3,4,1,5,2).reshape(b, OC, h*s, w*s)
    y = out[..., :P].reshape(B, scale, scale, OC, H, W)
    y = jnp.transpose(y, (0, 3, 4, 1, 5, 2))
    return y.reshape(B, OC, H * scale, W * scale)


if __name__ == "__main__":
    B, C, H, W = 2, 4, 16, 16
    OC, SCALE, KSIZE = 8, 2, 3

    key = jax.random.PRNGKey(0)
    kx, kp = jax.random.split(key)
    x = jax.random.normal(kx, (B, C, H, W), jnp.float32)
    params = init_params(kp, C, OC, SCALE, KSIZE)

    y = deform_upsample(x, params, out_channel=OC, scale=SCALE, ksize=KSIZE)
    y = jax.block_until_ready(y)
    assert y.shape == (B, OC, H * SCALE, W * SCALE), y.shape
    assert bool(jnp.all(jnp.isfinite(y)))
    print("KERNEL_OK")
</pallas_src>

<mosaic_0001>
module attributes {stable_mosaic.version = 11 : i64} {
  func.func @kernel(%arg0: i32, %arg1: i32, %arg2: i32, %arg3: memref<1x96x18xf32, #tpu.memory_space<vmem>>, %arg4: memref<1x1x27x256xf32, #tpu.memory_space<vmem>>, %arg5: memref<1x8x36xf32, #tpu.memory_space<vmem>>, %arg6: memref<8x1xf32, #tpu.memory_space<vmem>>, %arg7: memref<1x1x8x256xf32, #tpu.memory_space<vmem>>) attributes {dimension_semantics = [#tpu.dimension_semantics<parallel>, #tpu.dimension_semantics<parallel>, #tpu.dimension_semantics<parallel>], iteration_bounds = array<i64: 2, 4, 1>, scalar_prefetch = 0 : i64, scratch_operands = 0 : i64, tpu.core_type = #tpu.core_type<tc>, window_params = [{transform_indices = @transform_0, window_bounds = array<i64: 1, 96, 18>}, {transform_indices = @transform_1, window_bounds = array<i64: 1, 1, 27, 256>}, {transform_indices = @transform_2, window_bounds = array<i64: 1, 8, 36>}, {pipeline_mode = #tpu.pipeline_mode<synchronous>, transform_indices = @transform_3, window_bounds = array<i64: 8, 1>}, {transform_indices = @transform_4, window_bounds = array<i64: 1, 1, 8, 256>}]} {
    %c0 = arith.constant 0 : index
    %c0_0 = arith.constant 0 : index
    %c0_1 = arith.constant 0 : index
    %0 = vector.load %arg3[%c0, %c0_0, %c0_1] : memref<1x96x18xf32, #tpu.memory_space<vmem>>, vector<1x96x18xf32>
    %1 = vector.shape_cast %0 : vector<1x96x18xf32> to vector<96x18xf32>
    %c0_2 = arith.constant 0 : index
    %c0_3 = arith.constant 0 : index
    %c0_4 = arith.constant 0 : index
    %c0_5 = arith.constant 0 : index
    %2 = vector.load %arg4[%c0_2, %c0_3, %c0_4, %c0_5] : memref<1x1x27x256xf32, #tpu.memory_space<vmem>>, vector<1x1x27x256xf32>
    %3 = vector.shape_cast %2 : vector<1x1x27x256xf32> to vector<27x256xf32>
    %4 = tpu.iota {dimensions = array<i32: 1>} : vector<1x256xi32>
    %c256_i32 = arith.constant 256 : i32
    %5 = arith.muli %arg2, %c256_i32 : i32
    %6 = vector.broadcast %5 : i32 to vector<1x256xi32>
    %7 = arith.addi %4, %6 : vector<1x256xi32>
    %8 = arith.sitofp %7 : vector<1x256xi32> to vector<1x256xf32>
    %cst = arith.constant 5.000000e-01 : f32
    %9 = vector.broadcast %cst : f32 to vector<1x256xf32>
    %10 = arith.addf %8, %9 : vector<1x256xf32>
    %cst_6 = arith.constant 6.250000e-02 : f32
    %11 = vector.broadcast %cst_6 : f32 to vector<1x256xf32>
    %12 = arith.mulf %10, %11 : vector<1x256xf32>
    %13 = math.floor %12 : vector<1x256xf32>
    %cst_7 = arith.constant 1.600000e+01 : f32
    %14 = vector.broadcast %cst_7 : f32 to vector<1x256xf32>
    %15 = arith.mulf %13, %14 : vector<1x256xf32>
    %16 = arith.subf %8, %15 : vector<1x256xf32>
    %cst_8 = arith.constant 0.000000e+00 : f32
    %17 = vector.broadcast %cst_8 : f32 to vector<1x256xf32>
    %18 = arith.addf %13, %17 : vector<1x256xf32>
    %19 = vector.extract_strided_slice %3 {offsets = [0, 0], sizes = [1, 256], strides = [1, 1]} : vector<27x256xf32> to vector<1x256xf32>
    %20 = arith.addf %18, %19 : vector<1x256xf32>
    %cst_9 = arith.constant 0.000000e+00 : f32
    %21 = vector.broadcast %cst_9 : f32 to vector<1x256xf32>
    %22 = arith.addf %16, %21 : vector<1x256xf32>
    %23 = vector.extract_strided_slice %3 {offsets = [1, 0], sizes = [1, 256], strides = [1, 1]} : vector<27x256xf32> to vector<1x256xf32>
    %24 = arith.addf %22, %23 : vector<1x256xf32>
    %25 = vector.extract_strided_slice %3 {offsets = [18, 0], sizes = [1, 256], strides = [1, 1]} : vector<27x256xf32> to vector<1x256xf32>
    %cst_10 = arith.constant 0.000000e+00 : f32
    %26 = vector.broadcast %cst_10 : f32 to vector<1x256xf32>
    %27 = arith.addf %13, %26 : vector<1x256xf32>
    %28 = vector.extract_strided_slice %3 {offsets = [2, 0], sizes = [1, 256], strides = [1, 1]} : vector<27x256xf32> to vector<1x256xf32>
    %29 = arith.addf %27, %28 : vector<1x256xf32>
    %cst_11 = arith.constant 1.000000e+00 : f32
    %30 = vector.broadcast %cst_11 : f32 to vector<1x256xf32>
    %31 = arith.addf %16, %30 : vector<1x256xf32>
    %32 = vector.extract_strided_slice %3 {offsets = [3, 0], sizes = [1, 256], strides = [1, 1]} : vector<27x256xf32> to vector<1x256xf32>
    %33 = arith.addf %31, %32 : vector<1x256xf32>
    %34 = vector.extract_strided_slice %3 {offsets = [19, 0], sizes = [1, 256], strides = [1, 1]} : vector<27x256xf32> to vector<1x256xf32>
    %cst_12 = arith.constant 0.000000e+00 : f32
    %35 = vector.broadcast %cst_12 : f32 to vector<1x256xf32>
    %36 = arith.addf %13, %35 : vector<1x256xf32>
    %37 = vector.extract_strided_slice %3 {offsets = [4, 0], sizes = [1, 256], strides = [1, 1]} : vector<27x256xf32> to vector<1x256xf32>
    %38 = arith.addf %36, %37 : vector<1x256xf32>
    %cst_13 = arith.constant 2.000000e+00 : f32
    %39 = vector.broadcast %cst_13 : f32 to vector<1x256xf32>
    %40 = arith.addf %16, %39 : vector<1x256xf32>
    %41 = vector.extract_strided_slice %3 {offsets = [5, 0], sizes = [1, 256], strides = [1, 1]} : vector<27x256xf32> to vector<1x256xf32>
    %42 = arith.addf %40, %41 : vector<1x256xf32>
    %43 = vector.extract_strided_slice %3 {offsets = [20, 0], sizes = [1, 256], strides = [1, 1]} : vector<27x256xf32> to vector<1x256xf32>
    %cst_14 = arith.constant 1.000000e+00 : f32
    %44 = vector.broadcast %cst_14 : f32 to vector<1x256xf32>
    %45 = arith.addf %13, %44 : vector<1x256xf32>
    %46 = vector.extract_strided_slice %3 {offsets = [6, 0], sizes = [1, 256], strides = [1, 1]} : vector<27x256xf32> to vector<1x256xf32>
    %47 = arith.addf %45, %46 : vector<1x256xf32>
    %cst_15 = arith.constant 0.000000e+00 : f32
    %48 = vector.broadcast %cst_15 : f32 to vector<1x256xf32>
    %49 = arith.addf %16, %48 : vector<1x256xf32>
    %50 = vector.extract_strided_slice %3 {offsets = [7, 0], sizes = [1, 256], strides = [1, 1]} : vector<27x256xf32> to vector<1x256xf32>
    %51 = arith.addf %49, %50 : vector<1x256xf32>
    %52 = vector.extract_strided_slice %3 {offsets = [21, 0], sizes = [1, 256], strides = [1, 1]} : vector<27x256xf32> to vector<1x256xf32>
    %cst_16 = arith.constant 1.000000e+00 : f32
    %53 = vector.broadcast %cst_16 : f32 to vector<1x256xf32>
    %54 = arith.addf %13, %53 : vector<1x256xf32>
    %55 = vector.extract_strided_slice %3 {offsets = [8, 0], sizes = [1, 256], strides = [1, 1]} : vector<27x256xf32> to vector<1x256xf32>
    %56 = arith.addf %54, %55 : vector<1x256xf32>
    %cst_17 = arith.constant 1.000000e+00 : f32
    %57 = vector.broadcast %cst_17 : f32 to vector<1x256xf32>
    %58 = arith.addf %16, %57 : vector<1x256xf32>
    %59 = vector.extract_strided_slice %3 {offsets = [9, 0], sizes = [1, 256], strides = [1, 1]} : vector<27x256xf32> to vector<1x256xf32>
    %60 = arith.addf %58, %59 : vector<1x256xf32>
    %61 = vector.extract_strided_slice %3 {offsets = [22, 0], sizes = [1, 256], strides = [1, 1]} : vector<27x256xf32> to vector<1x256xf32>
    %cst_18 = arith.constant 1.000000e+00 : f32
    %62 = vector.broadcast %cst_18 : f32 to vector<1x256xf32>
    %63 = arith.addf %13, %62 : vector<1x256xf32>
    %64 = vector.extract_strided_slice %3 {offsets = [10, 0], sizes = [1, 256], strides = [1, 1]} : vector<27x256xf32> to vector<1x256xf32>
    %65 = arith.addf %63, %64 : vector<1x256xf32>
    %cst_19 = arith.constant 2.000000e+00 : f32
    %66 = vector.broadcast %cst_19 : f32 to vector<1x256xf32>
    %67 = arith.addf %16, %66 : vector<1x256xf32>
    %68 = vector.extract_strided_slice %3 {offsets = [11, 0], sizes = [1, 256], strides = [1, 1]} : vector<27x256xf32> to vector<1x256xf32>
    %69 = arith.addf %67, %68 : vector<1x256xf32>
    %70 = vector.extract_strided_slice %3 {offsets = [23, 0], sizes = [1, 256], strides = [1, 1]} : vector<27x256xf32> to vector<1x256xf32>
    %cst_20 = arith.constant 2.000000e+00 : f32
    %71 = vector.broadcast %cst_20 : f32 to vector<1x256xf32>
    %72 = arith.addf %13, %71 : vector<1x256xf32>
    %73 = vector.extract_strided_slice %3 {offsets = [12, 0], sizes = [1, 256], strides = [1, 1]} : vector<27x256xf32> to vector<1x256xf32>
    %74 = arith.addf %72, %73 : vector<1x256xf32>
    %cst_21 = arith.constant 0.000000e+00 : f32
    %75 = vector.broadcast %cst_21 : f32 to vector<1x256xf32>
    %76 = arith.addf %16, %75 : vector<1x256xf32>
    %77 = vector.extract_strided_slice %3 {offsets = [13, 0], sizes = [1, 256], strides = [1, 1]} : vector<27x256xf32> to vector<1x256xf32>
    %78 = arith.addf %76, %77 : vector<1x256xf32>
    %79 = vector.extract_strided_slice %3 {offsets = [24, 0], sizes = [1, 256], strides = [1, 1]} : vector<27x256xf32> to vector<1x256xf32>
    %cst_22 = arith.constant 2.000000e+00 : f32
    %80 = vector.broadcast %cst_22 : f32 to vector<1x256xf32>
    %81 = arith.addf %13, %80 : vector<1x256xf32>
    %82 = vector.extract_strided_slice %3 {offsets = [14, 0], sizes = [1, 256], strides = [1, 1]} : vector<27x256xf32> to vector<1x256xf32>
    %83 = arith.addf %81, %82 : vector<1x256xf32>
    %cst_23 = arith.constant 1.000000e+00 : f32
    %84 = vector.broadcast %cst_23 : f32 to vector<1x256xf32>
    %85 = arith.addf %16, %84 : vector<1x256xf32>
    %86 = vector.extract_strided_slice %3 {offsets = [15, 0], sizes = [1, 256], strides = [1, 1]} : vector<27x256xf32> to vector<1x256xf32>
    %87 = arith.addf %85, %86 : vector<1x256xf32>
    %88 = vector.extract_strided_slice %3 {offsets = [25, 0], sizes = [1, 256], strides = [1, 1]} : vector<27x256xf32> to vector<1x256xf32>
    %cst_24 = arith.constant 2.000000e+00 : f32
    %89 = vector.broadcast %cst_24 : f32 to vector<1x256xf32>
    %90 = arith.addf %13, %89 : vector<1x256xf32>
    %91 = vector.extract_strided_slice %3 {offsets = [16, 0], sizes = [1, 256], strides = [1, 1]} : vector<27x256xf32> to vector<1x256xf32>
    %92 = arith.addf %90, %91 : vector<1x256xf32>
    %cst_25 = arith.constant 2.000000e+00 : f32
    %93 = vector.broadcast %cst_25 : f32 to vector<1x256xf32>
    %94 = arith.addf %16, %93 : vector<1x256xf32>
    %95 = vector.extract_strided_slice %3 {offsets = [17, 0], sizes = [1, 256], strides = [1, 1]} : vector<27x256xf32> to vector<1x256xf32>
    %96 = arith.addf %94, %95 : vector<1x256xf32>
    %97 = vector.extract_strided_slice %3 {offsets = [26, 0], sizes = [1, 256], strides = [1, 1]} : vector<27x256xf32> to vector<1x256xf32>
    %98 = tpu.concatenate %20, %29, %38, %47, %56, %65, %74, %83, %92 in 1 : vector<1x256xf32>, vector<1x256xf32>, vector<1x256xf32>, vector<1x256xf32>, vector<1x256xf32>, vector<1x256xf32>, vector<1x256xf32>, vector<1x256xf32>, vector<1x256xf32> -> vector<1x2304xf32>
    %99 = tpu.concatenate %24, %33, %42, %51, %60, %69, %78, %87, %96 in 1 : vector<1x256xf32>, vector<1x256xf32>, vector<1x256xf32>, vector<1x256xf32>, vector<1x256xf32>, vector<1x256xf32>, vector<1x256xf32>, vector<1x256xf32>, vector<1x256xf32> -> vector<1x2304xf32>
    %100 = tpu.concatenate %25, %34, %43, %52, %61, %70, %79, %88, %97 in 1 : vector<1x256xf32>, vector<1x256xf32>, vector<1x256xf32>, vector<1x256xf32>, vector<1x256xf32>, vector<1x256xf32>, vector<1x256xf32>, vector<1x256xf32>, vector<1x256xf32> -> vector<1x2304xf32>
    %101 = arith.negf %100 : vector<1x2304xf32>
    %102 = math.exp %101 : vector<1x2304xf32>
    %cst_26 = arith.constant 1.000000e+00 : f32
    %103 = vector.broadcast %cst_26 : f32 to vector<1x2304xf32>
    %104 = arith.addf %103, %102 : vector<1x2304xf32>
    %105 = arith.divf %103, %104 : vector<1x2304xf32>
    %106 = tpu.iota {dimensions = array<i32: 0>} : vector<24x2304xi32>
    %107 = arith.sitofp %106 : vector<24x2304xi32> to vector<24x2304xf32>
    %108 = tpu.iota {dimensions = array<i32: 0>} : vector<18x2304xi32>
    %109 = arith.sitofp %108 : vector<18x2304xi32> to vector<18x2304xf32>
    %110 = vector.broadcast %98 : vector<1x2304xf32> to vector<24x2304xf32>
    %111 = arith.subf %107, %110 : vector<24x2304xf32>
    %112 = math.absf %111 : vector<24x2304xf32>
    %cst_27 = arith.constant 1.000000e+00 : f32
    %113 = vector.broadcast %cst_27 : f32 to vector<24x2304xf32>
    %114 = arith.subf %113, %112 : vector<24x2304xf32>
    %cst_28 = arith.constant 0.000000e+00 : f32
    %115 = vector.broadcast %cst_28 : f32 to vector<24x2304xf32>
    %116 = arith.maximumf %114, %115 : vector<24x2304xf32>
    %117 = vector.broadcast %99 : vector<1x2304xf32> to vector<18x2304xf32>
    %118 = arith.subf %109, %117 : vector<18x2304xf32>
    %119 = math.absf %118 : vector<18x2304xf32>
    %cst_29 = arith.constant 1.000000e+00 : f32
    %120 = vector.broadcast %cst_29 : f32 to vector<18x2304xf32>
    %121 = arith.subf %120, %119 : vector<18x2304xf32>
    %cst_30 = arith.constant 0.000000e+00 : f32
    %122 = vector.broadcast %cst_30 : f32 to vector<18x2304xf32>
    %123 = arith.maximumf %121, %122 : vector<18x2304xf32>
    %cst_31 = arith.constant dense<0.000000e+00> : vector<96x2304xf32>
    %124 = tpu.matmul %1, %123, %cst_31 {dimension_numbers = #tpu.dot_dimension_numbers<[1], [0], [0], [1], [0, 0, 1, 1], [], []>} : vector<96x18xf32>, vector<18x2304xf32>, vector<96x2304xf32> -> vector<96x2304xf32>
    %125 = vector.shape_cast %124 : vector<96x2304xf32> to vector<4x24x2304xf32>
    %126 = vector.shape_cast %116 : vector<24x2304xf32> to vector<1x24x2304xf32>
    %127 = vector.broadcast %126 : vector<1x24x2304xf32> to vector<4x24x2304xf32>
    %128 = arith.mulf %125, %127 : vector<4x24x2304xf32>
    %cst_32 = arith.constant dense<0.000000e+00> : vector<4x2304xf32>
    %129 = vector.multi_reduction <add>, %128, %cst_32 [1] : vector<4x24x2304xf32> to vector<4x2304xf32>
    %130 = vector.broadcast %105 : vector<1x2304xf32> to vector<4x2304xf32>
    %131 = arith.mulf %129, %130 : vector<4x2304xf32>
    %132 = vector.extract_strided_slice %131 {offsets = [0, 0], sizes = [4, 256], strides = [1, 1]} : vector<4x2304xf32> to vector<4x256xf32>
    %133 = vector.extract_strided_slice %131 {offsets = [0, 256], sizes = [4, 256], strides = [1, 1]} : vector<4x2304xf32> to vector<4x256xf32>
    %134 = vector.extract_strided_slice %131 {offsets = [0, 512], sizes = [4, 256], strides = [1, 1]} : vector<4x2304xf32> to vector<4x256xf32>
    %135 = vector.extract_strided_slice %131 {offsets = [0, 768], sizes = [4, 256], strides = [1, 1]} : vector<4x2304xf32> to vector<4x256xf32>
    %136 = vector.extract_strided_slice %131 {offsets = [0, 1024], sizes = [4, 256], strides = [1, 1]} : vector<4x2304xf32> to vector<4x256xf32>
    %137 = vector.extract_strided_slice %131 {offsets = [0, 1280], sizes = [4, 256], strides = [1, 1]} : vector<4x2304xf32> to vector<4x256xf32>
    %138 = vector.extract_strided_slice %131 {offsets = [0, 1536], sizes = [4, 256], strides = [1, 1]} : vector<4x2304xf32> to vector<4x256xf32>
    %139 = vector.extract_strided_slice %131 {offsets = [0, 1792], sizes = [4, 256], strides = [1, 1]} : vector<4x2304xf32> to vector<4x256xf32>
    %140 = vector.extract_strided_slice %131 {offsets = [0, 2048], sizes = [4, 256], strides = [1, 1]} : vector<4x2304xf32> to vector<4x256xf32>
    %141 = tpu.concatenate %132, %133, %134, %135, %136, %137, %138, %139, %140 in 0 : vector<4x256xf32>, vector<4x256xf32>, vector<4x256xf32>, vector<4x256xf32>, vector<4x256xf32>, vector<4x256xf32>, vector<4x256xf32>, vector<4x256xf32>, vector<4x256xf32> -> vector<36x256xf32>
    %c0_33 = arith.constant 0 : index
    %c0_34 = arith.constant 0 : index
    %c0_35 = arith.constant 0 : index
    %142 = vector.load %arg5[%c0_33, %c0_34, %c0_35] : memref<1x8x36xf32, #tpu.memory_space<vmem>>, vector<1x8x36xf32>
    %143 = vector.shape_cast %142 : vector<1x8x36xf32> to vector<8x36xf32>
    %cst_36 = arith.constant dense<0.000000e+00> : vector<8x256xf32>
    %144 = tpu.matmul %143, %141, %cst_36 {dimension_numbers = #tpu.dot_dimension_numbers<[1], [0], [0], [1], [0, 0, 1, 1], [], []>} : vector<8x36xf32>, vector<36x256xf32>, vector<8x256xf32> -> vector<8x256xf32>
    %c0_37 = arith.constant 0 : index
    %c0_38 = arith.constant 0 : index
    %145 = vector.load %arg6[%c0_37, %c0_38] : memref<8x1xf32, #tpu.memory_space<vmem>>, vector<8x1xf32>
    %146 = vector.broadcast %145 : vector<8x1xf32> to vector<8x256xf32>
    %147 = arith.addf %144, %146 : vector<8x256xf32>
    %cst_39 = arith.constant 0.000000e+00 : f32
    %148 = vector.broadcast %cst_39 : f32 to vector<8x256xf32>
    %149 = arith.maximumf %147, %148 : vector<8x256xf32>
    %c0_40 = arith.constant 0 : index
    %c0_41 = arith.constant 0 : index
    %c0_42 = arith.constant 0 : index
    %c0_43 = arith.constant 0 : index
    %150 = vector.load %arg7[%c0_40, %c0_41, %c0_42, %c0_43] : memref<1x1x8x256xf32, #tpu.memory_space<vmem>>, vector<1x1x8x256xf32>
    %151 = vector.shape_cast %150 : vector<1x1x8x256xf32> to vector<8x256xf32>
    %152 = vector.shape_cast %149 : vector<8x256xf32> to vector<1x1x8x256xf32>
    tpu.vector_store %arg7[%c0_40, %c0_41, %c0_42, %c0_43], %152 {strides = array<i32>} : memref<1x1x8x256xf32, #tpu.memory_space<vmem>>, vector<1x1x8x256xf32>,
    return
  }
  func.func @transform_0(%arg0: i32, %arg1: i32, %arg2: i32) -> (i32, i32, i32) {
    %c0_i32 = arith.constant 0 : i32
    %c0_i32_0 = arith.constant 0 : i32
    %c0_i32_1 = arith.constant 0 : i32
    return %arg0, %c0_i32, %c0_i32_0 : i32, i32, i32
  }
  func.func @transform_1(%arg0: i32, %arg1: i32, %arg2: i32) -> (i32, i32, i32, i32) {
    %c0_i32 = arith.constant 0 : i32
    %c0_i32_0 = arith.constant 0 : i32
    return %arg0, %arg1, %c0_i32, %arg2 : i32, i32, i32, i32
  }
  func.func @transform_2(%arg0: i32, %arg1: i32, %arg2: i32) -> (i32, i32, i32) {
    %c0_i32 = arith.constant 0 : i32
    %c0_i32_0 = arith.constant 0 : i32
    %c0_i32_1 = arith.constant 0 : i32
    return %arg1, %c0_i32, %c0_i32_0 : i32, i32, i32
  }
  func.func @transform_3(%arg0: i32, %arg1: i32, %arg2: i32) -> (i32, i32) {
    %c0_i32 = arith.constant 0 : i32
    %c0_i32_0 = arith.constant 0 : i32
    %c0_i32_1 = arith.constant 0 : i32
    return %c0_i32, %c0_i32_0 : i32, i32
  }
  func.func @transform_4(%arg0: i32, %arg1: i32, %arg2: i32) -> (i32, i32, i32, i32) {
    %c0_i32 = arith.constant 0 : i32
    %c0_i32_0 = arith.constant 0 : i32
    return %arg0, %arg1, %c0_i32, %arg2 : i32, i32, i32, i32
  }
}

</mosaic_0001>

<bundles_post_ra>
// kernel: tpu_custom_call.1
= control target key start
LH: loop header
LB: loop body
LE: loop exit
PB: predicated region body
PF: predicated region fallthrough
CT: control target
= control target key end

     0   :  { %9 = vsyncpa [#allocation3], 0  ;;  %s6465_s0 = inlined_call_operand.vmem [shape: f32[2,96,18], index: 0, kind: input, shape index: {}]   ;;  %s6466_s1 = inlined_call_operand.vmem [shape: f32[2,4,27,256], index: 1, kind: input, shape index: {}]   ;;  %s6467_s2 = inlined_call_operand.vmem [shape: f32[4,8,36], index: 2, kind: input, shape index: {}]   ;;  %s6468_s3 = inlined_call_operand.vmem [shape: f32[8,1], index: 3, kind: input, shape index: {}]   ;;  %s6469_s4 = inlined_call_operand.hbm [shape: f32[2,4,8,256], index: 4, kind: output, shape index: {}]  }
   0x1   :  { %11 = vsyncpa [#allocation3 + $0x1], 0  ;;  %s4353_s15 = smov 0   ;;  %s4355_s16 = smov 0  }
   0x2   :  { %s4357_s17 = smov 0   ;;  %s4359_s18 = smov 0  }
   0x3   :  { %s4361_s19 = smov 0   ;;  %s4363_s20 = smov 0  }
   0x4   :  { %s4365_s21 = smov 0   ;;  %s4367_s22 = smov 0  }
   0x5 LB: > { %s3856_s23 = sadd.s32 4294967295, %s4323_s22   ;;  %s3857_s24 = sadd.s32 4294967294, %s4323_s22   ;;  %s4323_s22 = sphi %s4367_s22, %s17_s22   ;;  %s4319_s21 = sphi %s4365_s21, %s6802_s21   ;;  %s4315_s20 = sphi %s4363_s20, %s6801_s20   ;;  %s4311_s19 = sphi %s4361_s19, %s6800_s19   ;;  %s4307_s18 = sphi %s4359_s18, %s6799_s18   ;;  %s4303_s17 = sphi %s4357_s17, %s6798_s17   ;;  %s4299_s16 = sphi %s4355_s16, %s6797_s16   ;;  %s4295_s15 = sphi %s4353_s15, %s6796_s15  }
   0x6   : > { %s32_s25 = sadd.s32 1, %s4315_s20  ;;  %s36_s26 = sadd.s32 1, %s4319_s21 }
   0x7   : > { %p34_p0 = scmp.ge.s32.totalorder %s32_s25, 4  ;;  %p160_p1 = scmp.ne.s32.totalorder %s4303_s17, %s4299_s16 }
   0x8   : > { %p161_p2 = scmp.eq.s32.totalorder %s3856_s23, 7  ;;  %p166_p5 = scmp.ne.s32.totalorder %s4299_s16, %s4295_s15 }
   0x9   : > { %s6804_s25 = smov (%p34_p0, %s32_s25), 0  ;;  %s6806_s26 = smov (!%p34_p0, %s36_s26), %s4319_s21 }
   0xa   : > { %s144_s27 = ssub.s32 %s4315_s20, %s6804_s25  ;;  %p4404_p3 = por %p161_p2, %p160_p1 }
   0xb   : > { %p38_p4 = scmp.ge.s32.totalorder %s6806_s26, 2  ;;  %p167_p6 = scmp.eq.s32.totalorder %s3857_s24, 7 }
   0xc   : > { %p3860_p7 = scmp.ge.s32.totalorder %s4323_s22, 1  ;;  %p220_p9 = scmp.lt.s32.totalorder %s4323_s22, 9 }
   0xd   : > { %s6808_s26 = smov (%p38_p4, %s6806_s26), 0  ;;  %p4413_p8 = por %p167_p6, %p166_p5 }
   0xe   : > { %s143_s30 = ssub.s32 %s4319_s21, %s6808_s26  ;;  %s150_s5 = sadd.s32 1, %s4303_s17 }
   0xf   : > { %s145_s6 = sor.u32 %s144_s27, %s143_s30  ;;  %p221_p10 = pnand %p3860_p7, %p220_p9 }
  0x10   : > { %p148_p11 = scmp.eq.s32.totalorder %s145_s6, 0 }
  0x11   : > { %224 = sbr.rel (%p221_p10) target bundleno = 799 (0x31f), region = 36 }
  0x12   : > { %s4422_s7 = scalar_select %p148_p11, %s4303_s17, %s150_s5  }
  0x18   : > { %p263_p12 = scmp.lt.s32.totalorder %s4311_s19, 1  ;;  %p271_p13 = scmp.lt.s32.totalorder %s4307_s18, 3  ;;  %v307_v0 = vlaneseq  ;;  %v6474_v1 = vmov 0.0   ;;  %vm1190_vm0 = vcmask 1041408   ;;  %vm1153_vm1 = vcmask 146432  }
  0x19   : > { %1309 = vmatprep.mubr.f32.mxu0 %v6474_v1  ;;  %1351 = vmatprep.mubr.f32.mxu1 %v6474_v1  ;;  %vm3423_vm2 = vcmask 1041409   ;;  %vm3426_vm3 = vcmask 1042434   ;;  %vm3429_vm4 = vcmask 1043459   ;;  %vm3449_vm5 = vcmask 1045509  }
  0x1a   : > { %s4429_s8 = scalar_select %p263_p12, %s4311_s19, 1  ;;  %v308_v2 = vand.u32 127, %v307_v0  ;;  %v4438_v8 = vshrl.u32 %v307_v0, 7  ;;  %vm3452_vm6 = vcmask 1046534   ;;  %vm3455_vm7 = vcmask 1047559  }
  0x1b   : > { %s4432_s9 = scalar_select %p271_p13, %s4307_s18, 3  ;;  %vm3624_vm8 = vcmask 1043456   ;;  %vm3640_vm9 = vcmask 293888  }
  0x1c   : > { %s3864_s10 = sshll.u32 %s4429_s8, 5  ;;  %v309_v3 = vadd.s32 128, %v308_v2  ;;  %v314_v4 = vcvt.s32.f32 %v308_v2  ;;  %v572_v13 = vadd.s32 8, %v4438_v8  ;;  %v573_v14 = vadd.s32 16, %v4438_v8  ;;  %s4068_s27 = smul.u32 96, %s4429_s8 }
  0x1d   : > { %s3863_s11 = sshll.u32 %s4432_s9, 3  ;;  %v4460_v19 = vsub.s32 1, %v4438_v8  ;;  %v4467_v22 = vcvt.s32.f32 %v4438_v8  ;;  %s260_s9 = sand.u32 1, %s4299_s16  }
  0x1e   : > { %s278_s12 = sadd.s32 %s3864_s10, %s3863_s11  ;;  %v315_v5 = vcvt.s32.f32 %v309_v3  ;;  %v316_v6 = vadd.f32 0.5, %v314_v4  ;;  %v4469_v23 = vcvt.s32.f32 %v572_v13  ;;  %v4471_v24 = vcvt.s32.f32 %v573_v14  ;;  %s4527_s6 = scalar_lea.vmem %s6465_s0, %s4068_s27 }
  0x1f   : > { %s3865_s13 = sshll.u32 %s278_s12, 3  ;;  %6548 = vst [vmem:[#allocation5_spill] sm:$0xff] %v4467_v22  ;;  %s285_s14 = scalar_lea.vmem %s6467_s2, %s3863_s11 }
  0x20   : > { %v317_v7 = vadd.f32 0.5, %v315_v5  ;;  %v318_v9 = vmul.f32 0.0625, %v316_v6  ;;  %s4443_s24 = scalar_lea.vmem %s6466_s1, %s3865_s13  ;;  %6549 = vst [vmem:[#allocation6_spill] sm:$0xff] %v4469_v23  ;;  %6550 = vst [vmem:[#allocation7_spill] sm:$0xff] %v4471_v24  ;;  %s3861_s23 = sshll.u32 %s260_s9, 4 }
  0x21   : > { %v4454_v17 = vld [vmem:[%s4443_s24] sm:$0xff]  ;;  %v4457_v18 = vld [vmem:[%s4443_s24 + $0x8] sm:$0xff]  ;;  %s4016_s27 = sshll.u32 %s4311_s19, 3  ;;  %s262_s5 = scalar_lea.vmem [#allocation2], %s3861_s23 }
  0x22   : > { %v319_v10 = vmul.f32 0.0625, %v317_v7  ;;  %v4445_v11 = vfloor.f32 %v318_v9  ;;  %s4327_s13 = smov [#allocation2]  }
  0x24   : > { %v4447_v12 = vfloor.f32 %v319_v10  ;;  %v322_v15 = vmul.f32 16.0, %v4445_v11 }
  0x26   : > { %v323_v16 = vmul.f32 16.0, %v4447_v12  ;;  %v4462_v20 = vsub.f32 %v314_v4, %v322_v15 }
  0x28   : > { %v4464_v21 = vsub.f32 %v315_v5, %v323_v16  ;;  %v4475_v25 = vadd.f32 %v4462_v20, %v4454_v17  ;;  %v4478_v26 = vadd.f32 1.0, %v4462_v20  ;;  %v4481_v27 = vadd.f32 2.0, %v4462_v20 }
  0x2a   : > { %v4485_v28 = vadd.f32 %v4464_v21, %v4457_v18  ;;  %v4488_v29 = vadd.f32 1.0, %v4464_v21  ;;  %v4491_v30 = vadd.f32 2.0, %v4464_v21  ;;  %v408_v31 = vrot.slane %v4475_v25, 6 }
  0x2b   : > { %v868_v32 = vrot.slane %v4475_v25, %v4460_v19  ;;  %v336_v33 = vadd.f32 %v4478_v26, %v4454_v17  ;;  %v4500_v34 = vadd.f32 %v4481_v27, %v4454_v17 }
  0x2c   : > { %v409_v35 = vrot.slane %v4485_v28, 6  ;;  %v872_v36 = vrot.slane %v4485_v28, %v4460_v19  ;;  %v337_v37 = vadd.f32 %v4488_v29, %v4457_v18  ;;  %v341_v38 = vadd.f32 %v4491_v30, %v4457_v18 }
  0x2d   : > { %v937_v39 = vsub.f32 %v4467_v22, %v868_v32  ;;  %v955_v40 = vsub.f32 %v4469_v23, %v868_v32  ;;  %v973_v41 = vsub.f32 %v4471_v24, %v868_v32  ;;  %v396_v42 = vrot.slane %v336_v33, 2 }
  0x2e   : > { %v938_v43 = vsub.f32 %v4467_v22, %v872_v36  ;;  %v956_v44 = vsub.f32 %v4469_v23, %v872_v36  ;;  %v974_v45 = vsub.f32 %v4471_v24, %v872_v36  ;;  %v397_v46 = vrot.slane %v337_v37, 2 }
  0x2f   : > { %v991_v47 = vand.u32 2147483647, %v937_v39  ;;  %v1009_v48 = vand.u32 2147483647, %v955_v40  ;;  %v1027_v49 = vand.u32 2147483647, %v973_v41  ;;  %v876_v50 = vrot.slane %v396_v42, %v4460_v19 }
  0x30   : > { %v992_v51 = vand.u32 2147483647, %v938_v43  ;;  %v1010_v52 = vand.u32 2147483647, %v956_v44  ;;  %v1028_v53 = vand.u32 2147483647, %v974_v45  ;;  %v880_v54 = vrot.slane %v397_v46, %v4460_v19 }
  0x31   : > { %v1045_v55 = vsub.f32 1.0, %v991_v47  ;;  %v1063_v56 = vsub.f32 1.0, %v1009_v48  ;;  %v1081_v57 = vsub.f32 1.0, %v1027_v49  ;;  %v939_v58 = vsub.f32 %v4467_v22, %v876_v50 }
  0x32   : > { %v1046_v59 = vsub.f32 1.0, %v992_v51  ;;  %v1064_v60 = vsub.f32 1.0, %v1010_v52  ;;  %v1082_v61 = vsub.f32 1.0, %v1028_v53  ;;  %v940_v62 = vsub.f32 %v4467_v22, %v880_v54  ;;  %v4543_v52 = vld [vmem:[%s4527_s6 + $0x38] sm:$0xff] }
  0x33   : > { %v1099_v63 = vmax.f32 %v1045_v55, 0.0  ;;  %v1117_v0 = vmax.f32 %v1063_v56, 0.0  ;;  %v1135_v2 = vmax.f32 %v1081_v57, 0.0  ;;  %v958_v3 = vsub.f32 %v4469_v23, %v880_v54 }
  0x34   : > { %v1100_v4 = vmax.f32 %v1046_v59, 0.0  ;;  %v1118_v5 = vmax.f32 %v1064_v60, 0.0  ;;  %v1136_v6 = vmax.f32 %v1082_v61, 0.0  ;;  %v994_v7 = vand.u32 2147483647, %v940_v62 }
  0x35   : > { %v4022_v9 = vpack.c.bf16 %v1117_v0, %v1099_v63  ;;  %v1012_v10 = vand.u32 2147483647, %v958_v3  ;;  %v957_v13 = vsub.f32 %v4469_v23, %v876_v50  ;;  %v993_v14 = vand.u32 2147483647, %v939_v58 }
  0x36   : > { %v4020_v15 = vpack.c.bf16 %v1118_v5, %v1100_v4  ;;  %v1048_v16 = vsub.f32 1.0, %v994_v7  ;;  %v976_v32 = vsub.f32 %v4471_v24, %v880_v54  ;;  %v975_v33 = vsub.f32 %v4471_v24, %v876_v50  ;;  %v4565_v5 = vld [vmem:[%s4527_s6 + $0x40] sm:$0xff] }
  0x37   : > { %v1066_v36 = vsub.f32 1.0, %v1012_v10  ;;  %v1011_v37 = vand.u32 2147483647, %v957_v13  ;;  %v1047_v39 = vsub.f32 1.0, %v993_v14  ;;  %v403_v40 = vrot.slane %v341_v38, 4 }
  0x38   : > { %4021 = vmatprep.subr.bf16.mxu0 %v4020_v15  ;;  %4064 = vmatprep.subr.bf16.mxu1 %v4020_v15  ;;  %v1102_v41 = vmax.f32 %v1048_v16, 0.0  ;;  %v1030_v42 = vand.u32 2147483647, %v976_v32  ;;  %v1029_v43 = vand.u32 2147483647, %v975_v33  ;;  %v402_v44 = vrot.slane %v4500_v34, 4 }
  0x39   : > { %4023 = vmatpush1.bf16.msra.mxu0 %v4022_v9  ;;  %4066 = vmatpush1.bf16.msra.mxu1 %v4022_v9  ;;  %v1120_v45 = vmax.f32 %v1066_v36, 0.0  ;;  %v1065_v46 = vsub.f32 1.0, %v1011_v37  ;;  %v1101_v47 = vmax.f32 %v1047_v39, 0.0  ;;  %v888_v38 = vrot.slane %v403_v40, %v4460_v19  ;;  %v4540_v34 = vld [vmem:[%s4527_s6] sm:$0xff]  ;;  %v4570_v39 = vld [vmem:[%s4443_s24 + $0x18] sm:$0xff] }
  0x3a   : > { %3885 = vmatprep.subr.msk.mxu0 %vm1190_vm0, %v1136_v6  ;;  %4065 = vmatprep.subr.msk.mxu1 %vm1190_vm0, %v1136_v6  ;;  %v1084_v48 = vsub.f32 1.0, %v1030_v42  ;;  %v1083_v49 = vsub.f32 1.0, %v1029_v43  ;;  %v884_v50 = vrot.slane %v402_v44, %v4460_v19  ;;  %v4537_v51 = vrot.slane %v409_v35, %v4460_v19  ;;  %v4577_v43 = vld [vmem:[%s4443_s24 + $0x10] sm:$0xff] }
  0x3b   : > { %v4024_v53 = vpack.c.bf16 %v1120_v45, %v1102_v41  ;;  %v1119_v54 = vmax.f32 %v1065_v46, 0.0  ;;  %v942_v55 = vsub.f32 %v4467_v22, %v888_v38  ;;  %v960_v56 = vsub.f32 %v4469_v23, %v888_v38  ;;  %v4586_v45 = vld [vmem:[%s4527_s6 + $0x10] sm:$0xff]  ;;  %v4589_v46 = vld [vmem:[%s4527_s6 + $0x48] sm:$0xff] }
  0x3c   : > { %v1138_v57 = vmax.f32 %v1084_v48, 0.0  ;;  %v1137_v58 = vmax.f32 %v1083_v49, 0.0  ;;  %v941_v59 = vsub.f32 %v4467_v22, %v884_v50  ;;  %v959_v60 = vsub.f32 %v4469_v23, %v884_v50 }
  0x3d   : > { %3886 = vmatpush1.msk.msra.mxu0 %vm1190_vm0, %v1135_v2  ;;  %4067 = vmatpush1.msk.msra.mxu1 %vm1190_vm0, %v1135_v2  ;;  %v4026_v28 = vpack.c.bf16 %v1119_v54, %v1101_v47  ;;  %v996_v35 = vand.u32 2147483647, %v942_v55  ;;  %v1014_v61 = vand.u32 2147483647, %v960_v56  ;;  %v978_v62 = vsub.f32 %v4471_v24, %v888_v38  ;;  %v4562_v2 = vld [vmem:[%s4527_s6 + $0x8] sm:$0xff] }
  0x3e   : > { %3887 = vmatmul.mubr.msk.f32.vlgmr.msra.gmra.mrb[0].mxu0 %vm1153_vm1, %v4540_v34  ;;  %3894 = vmatmul.mubr.msk.f32.vlgmr.msra.gmra.mrb[0].mxu1 %vm1153_vm1, %v4543_v52  ;;  %v995_v63 = vand.u32 2147483647, %v941_v59  ;;  %v1013_v0 = vand.u32 2147483647, %v959_v60  ;;  %v977_v3 = vsub.f32 %v4471_v24, %v884_v50  ;;  %v944_v4 = vsub.f32 %v4467_v22, %v4537_v51  ;;  %v4621_v59 = vld [vmem:[%s4527_s6 + $0x50] sm:$0xff] }
  0x3f   : > { %1315 = vmatprep.mubr.f32.mxu0 %v6474_v1  ;;  %1357 = vmatprep.mubr.f32.mxu1 %v6474_v1  ;;  %v1050_v6 = vsub.f32 1.0, %v996_v35  ;;  %v1068_v7 = vsub.f32 1.0, %v1014_v61  ;;  %v1032_v9 = vand.u32 2147483647, %v978_v62  ;;  %v962_v10 = vsub.f32 %v4469_v23, %v4537_v51 }
  0x40   : > { %4025 = vmatprep.subr.bf16.mxu1 %v4024_v53  ;;  %v1049_v13 = vsub.f32 1.0, %v995_v63  ;;  %v1067_v14 = vsub.f32 1.0, %v1013_v0  ;;  %v1031_v15 = vand.u32 2147483647, %v977_v3  ;;  %v998_v16 = vand.u32 2147483647, %v944_v4 }
  0x41   : > { %4027 = vmatpush1.bf16.msra.mxu1 %v4026_v28  ;;  %v1104_v32 = vmax.f32 %v1050_v6, 0.0  ;;  %v1122_v33 = vmax.f32 %v1068_v7, 0.0  ;;  %v1086_v36 = vsub.f32 1.0, %v1032_v9  ;;  %v1016_v37 = vand.u32 2147483647, %v962_v10  ;;  %v4630_v3 = vld [vmem:[%s4527_s6 + $0x20] sm:$0xff] }
  0x42   : > { %3888 = vmatmul.mubr.msk.f32.gmra.mrb[2].mxu0 %vm1153_vm1, %v4562_v2  ;;  %3895 = vmatmul.mubr.msk.f32.gmra.mrb[2].mxu1 %vm1153_vm1, %v4565_v5  ;;  %v1103_v40 = vmax.f32 %v1049_v13, 0.0  ;;  %v1121_v41 = vmax.f32 %v1067_v14, 0.0  ;;  %v1052_v42 = vsub.f32 1.0, %v998_v16  ;;  %v4581_v44 = vadd.f32 %v4464_v21, %v4570_v39  ;;  %v4633_v4 = vld [vmem:[%s4527_s6 + $0x58] sm:$0xff] }
  0x43   : > { %1321 = vmatprep.mubr.f32.mxu0 %v6474_v1  ;;  %1363 = vmatprep.mubr.f32.mxu1 %v6474_v1  ;;  %v4028_v47 = vpack.c.bf16 %v1122_v33, %v1104_v32  ;;  %v1085_v38 = vsub.f32 1.0, %v1031_v15  ;;  %v1070_v48 = vsub.f32 1.0, %v1016_v37  ;;  %v892_v49 = vrot.slane %v408_v31, %v4460_v19 }
  0x44   : > { %3899 = vmatprep.subr.msk.mxu1 %vm1190_vm0, %v1138_v57  ;;  %v4030_v50 = vpack.c.bf16 %v1121_v41, %v1103_v40  ;;  %v1140_v21 = vmax.f32 %v1086_v36, 0.0  ;;  %v1106_v53 = vmax.f32 %v1052_v42, 0.0  ;;  %v4597_v54 = vadd.f32 %v4488_v29, %v4570_v39 }
  0x45   : > { %3900 = vmatpush1.msk.msra.mxu1 %vm1190_vm0, %v1137_v58  ;;  %4029 = vmatprep.subr.bf16.mxu0 %v4028_v47  ;;  %v1124_v55 = vmax.f32 %v1070_v48, 0.0  ;;  %v943_v56 = vsub.f32 %v4467_v22, %v892_v49  ;;  %v961_v25 = vsub.f32 %v4469_v23, %v892_v49  ;;  %v4604_v31 = vadd.f32 %v4478_v26, %v4577_v43  ;;  %v4618_v26 = vld [vmem:[%s4527_s6 + $0x18] sm:$0xff] }
  0x46   : > { %3889 = vmatmul.mubr.msk.f32.gmra.mrb[4].mxu0 %vm1153_vm1, %v4586_v45  ;;  %3896 = vmatmul.mubr.msk.f32.gmra.mrb[4].mxu1 %vm1153_vm1, %v4589_v46  ;;  %v904_v29 = vrot.slane %v4597_v54, %v4460_v19  ;;  %v980_v57 = vsub.f32 %v4471_v24, %v4537_v51  ;;  %v979_v58 = vsub.f32 %v4471_v24, %v892_v49  ;;  %v1139_v51 = vmax.f32 %v1085_v38, 0.0 }
  0x47   : > { %1327 = vmatprep.mubr.f32.mxu0 %v6474_v1  ;;  %1369 = vmatprep.mubr.f32.mxu1 %v6474_v1  ;;  %v4032_v60 = vpack.c.bf16 %v1124_v55, %v1106_v53  ;;  %v997_v28 = vand.u32 2147483647, %v943_v56  ;;  %v1015_v35 = vand.u32 2147483647, %v961_v25  ;;  %v4625_v61 = vrot.slane %v4604_v31, %v4460_v19 }
  0x48   : > { %4031 = vmatpush1.bf16.msra.mxu0 %v4030_v50  ;;  %v946_v62 = vsub.f32 %v4467_v22, %v904_v29  ;;  %v964_v63 = vsub.f32 %v4469_v23, %v904_v29  ;;  %v1034_v0 = vand.u32 2147483647, %v980_v57  ;;  %v1033_v15 = vand.u32 2147483647, %v979_v58 }
  0x49   : > { %3913 = vmatprep.subr.msk.mxu0 %vm1190_vm0, %v1140_v21  ;;  %4033 = vmatprep.subr.bf16.mxu1 %v4032_v60  ;;  %v1051_v6 = vsub.f32 1.0, %v997_v28  ;;  %v1069_v7 = vsub.f32 1.0, %v1015_v35  ;;  %v945_v9 = vsub.f32 %v4467_v22, %v4625_v61  ;;  %v963_v10 = vsub.f32 %v4469_v23, %v4625_v61 }
  0x4a   : > { %3890 = vmatmul.mubr.msk.f32.gmra.mrb[6].mxu0 %vm1153_vm1, %v4618_v26  ;;  %3897 = vmatmul.mubr.msk.f32.gmra.mrb[6].mxu1 %vm1153_vm1, %v4621_v59  ;;  %v1000_v13 = vand.u32 2147483647, %v946_v62  ;;  %v1018_v14 = vand.u32 2147483647, %v964_v63  ;;  %v421_v41 = vrot.slane %v4581_v44, 4  ;;  %v1088_v42 = vsub.f32 1.0, %v1034_v0 }
  0x4b   : > { %1333 = vmatprep.mubr.f32.mxu0 %v6474_v1  ;;  %1375 = vmatprep.mubr.f32.mxu1 %v6474_v1  ;;  %v1105_v16 = vmax.f32 %v1051_v6, 0.0  ;;  %v1123_v32 = vmax.f32 %v1069_v7, 0.0  ;;  %v999_v33 = vand.u32 2147483647, %v945_v9  ;;  %v1017_v36 = vand.u32 2147483647, %v963_v10 }
  0x4c   : > { %3914 = vmatpush1.msk.msra.mxu0 %vm1190_vm0, %v1139_v51  ;;  %v1054_v37 = vsub.f32 1.0, %v1000_v13  ;;  %v1072_v40 = vsub.f32 1.0, %v1018_v14  ;;  %v982_v47 = vsub.f32 %v4471_v24, %v904_v29  ;;  %v356_v38 = vadd.f32 %v4462_v20, %v4577_v43  ;;  %v4660_v44 = vld [vmem:[%s4527_s6 + $0x28] sm:$0xff]  ;;  %v4681_v51 = vld [vmem:[%s4527_s6 + $0x30] sm:$0xff] }
  0x4d   : > { %v351_v50 = vadd.f32 %v4491_v30, %v4570_v39  ;;  %v4034_v21 = vpack.c.bf16 %v1123_v32, %v1105_v16  ;;  %v1053_v53 = vsub.f32 1.0, %v999_v33  ;;  %v1071_v20 = vsub.f32 1.0, %v1017_v36 }
  0x4e   : > { %3891 = vmatmul.mubr.msk.f32.gmra.mrb[8].mxu0 %vm1153_vm1, %v4630_v3  ;;  %3898 = vmatmul.mubr.msk.f32.gmra.mrb[8].mxu1 %vm1153_vm1, %v4633_v4  ;;  %v1108_v48 = vmax.f32 %v1054_v37, 0.0  ;;  %v1126_v49 = vmax.f32 %v1072_v40, 0.0  ;;  %v1087_v55 = vsub.f32 1.0, %v1033_v15  ;;  %v981_v25 = vsub.f32 %v4471_v24, %v4625_v61 }
  0x4f   : > { %1339 = vmatprep.mubr.f32.mxu0 %v6474_v1  ;;  %1446 = vmatprep.mubr.f32.mxu1 %v6474_v1  ;;  %v415_v29 = vrot.slane %v351_v50, 2  ;;  %v4665_v57 = vrot.slane %v421_v41, %v4460_v19  ;;  %v1142_v39 = vmax.f32 %v1088_v42, 0.0  ;;  %v1036_v58 = vand.u32 2147483647, %v982_v47 }
  0x50   : > { %v4036_v56 = vpack.c.bf16 %v1126_v49, %v1108_v48  ;;  %v420_v60 = vrot.slane %v356_v38, 4  ;;  %v1107_v62 = vmax.f32 %v1053_v53, 0.0  ;;  %v1125_v63 = vmax.f32 %v1071_v20, 0.0  ;;  %v4705_v20 = vld [vmem:[%s4443_s24 + $0x28] sm:$0xff] }
  0x51   : > { %v4672_v28 = vrot.slane %v415_v29, %v4460_v19  ;;  %v950_v35 = vsub.f32 %v4467_v22, %v4665_v57  ;;  %v968_v61 = vsub.f32 %v4469_v23, %v4665_v57  ;;  %v1141_v0 = vmax.f32 %v1087_v55, 0.0 }
  0x52   : > { %3892 = vmatmul.mubr.msk.f32.gmra.mrb[10].mxu0 %vm1153_vm1, %v4660_v44  ;;  %3901 = vmatmul.mubr.msk.f32.vlgmr.msra.gmra.mrb[10].mxu1 %vm1153_vm1, %v4540_v34  ;;  %v4684_v6 = vrot.slane %v420_v60, %v4460_v19  ;;  %v1035_v7 = vand.u32 2147483647, %v981_v25  ;;  %v1090_v14 = vsub.f32 1.0, %v1036_v58  ;;  %v4038_v37 = vpack.c.bf16 %v1125_v63, %v1107_v62 }
  0x53   : > { %1345 = vmatprep.mubr.f32.mxu0 %v6474_v1  ;;  %1452 = vmatprep.mubr.f32.mxu1 %v6474_v1  ;;  %v948_v9 = vsub.f32 %v4467_v22, %v4672_v28  ;;  %v966_v10 = vsub.f32 %v4469_v23, %v4672_v28  ;;  %v1004_v13 = vand.u32 2147483647, %v950_v35  ;;  %v1022_v15 = vand.u32 2147483647, %v968_v61 }
  0x54   : > { %4035 = vmatpush1.bf16.msra.mxu1 %v4034_v21  ;;  %4037 = vmatprep.subr.bf16.mxu0 %v4036_v56  ;;  %v1089_v40 = vsub.f32 1.0, %v1035_v7  ;;  %v1144_v47 = vmax.f32 %v1090_v14, 0.0  ;;  %v4709_v56 = vld [vmem:[%s4443_s24 + $0x20] sm:$0xff]  ;;  %v426_v25 = vrot.slane %v4604_v31, 6  ;;  %v361_v29 = vadd.f32 %v4491_v30, %v4705_v20 }
  0x55   : > { %3927 = vmatprep.subr.msk.mxu1 %vm1190_vm0, %v1142_v39  ;;  %v1002_v16 = vand.u32 2147483647, %v948_v9  ;;  %v1020_v32 = vand.u32 2147483647, %v966_v10  ;;  %v1058_v33 = vsub.f32 1.0, %v1004_v13  ;;  %v1076_v36 = vsub.f32 1.0, %v1022_v15 }
  0x56   : > { %3893 = vmatmul.mubr.msk.f32.gmra.mrb[12].mxu0 %vm1153_vm1, %v4681_v51  ;;  %3902 = vmatmul.mubr.msk.f32.gmra.mrb[12].mxu1 %vm1153_vm1, %v4562_v2  ;;  %v1143_v21 = vmax.f32 %v1089_v40, 0.0  ;;  %v4722_v39 = vrot.slane %v426_v25, %v4460_v19  ;;  %v360_v58 = vadd.f32 %v4481_v27, %v4709_v56  ;;  %v4727_v60 = vrot.slane %v361_v29, %v4460_v19 }
  0x57   : > { %1458 = vmatprep.mubr.f32.mxu1 %v6474_v1  ;;  %1583 = vmatprep.mubr.f32.mxu0 %v6474_v1  ;;  %v1056_v41 = vsub.f32 1.0, %v1002_v16  ;;  %v1074_v42 = vsub.f32 1.0, %v1020_v32  ;;  %v1112_v38 = vmax.f32 %v1058_v33, 0.0  ;;  %v1130_v48 = vmax.f32 %v1076_v36, 0.0 }
  0x58   : > { %3928 = vmatpush1.msk.msra.mxu1 %vm1190_vm0, %v1141_v0  ;;  %v350_v30 = vadd.f32 %v4481_v27, %v4577_v43  ;;  %v4738_v31 = vrot.slane %v360_v58, %v4460_v19  ;;  %v427_v43 = vrot.slane %v4597_v54, 6  ;;  %v984_v7 = vsub.f32 %v4471_v24, %v4672_v28 }
  0x59   : > { %v1110_v49 = vmax.f32 %v1056_v41, 0.0  ;;  %v1128_v50 = vmax.f32 %v1074_v42, 0.0  ;;  %v4044_v55 = vpack.c.bf16 %v1130_v48, %v1112_v38  ;;  %v949_v28 = vsub.f32 %v4467_v22, %v4684_v6 }
  0x5a   : > { %3903 = vmatmul.mubr.msk.f32.gmra.mrb[14].mxu1 %vm1153_vm1, %v4586_v45  ;;  %3915 = vmatmul.mubr.msk.f32.vlgmr.msra.gmra.mrb[14].mxu0 %vm1153_vm1, %v4540_v34  ;;  %v414_v35 = vrot.slane %v350_v30, 2  ;;  %v4763_v63 = vrot.slane %v427_v43, %v4460_v19  ;;  %v967_v14 = vsub.f32 %v4469_v23, %v4684_v6  ;;  %v1038_v15 = vand.u32 2147483647, %v984_v7 }
  0x5b   : > { %1464 = vmatprep.mubr.f32.mxu1 %v6474_v1  ;;  %1589 = vmatprep.mubr.f32.mxu0 %v6474_v1  ;;  %v4040_v53 = vpack.c.bf16 %v1128_v50, %v1110_v49  ;;  %v1003_v40 = vand.u32 2147483647, %v949_v28  ;;  %v986_v38 = vsub.f32 %v4471_v24, %v4665_v57  ;;  %v954_v50 = vsub.f32 %v4467_v22, %v4727_v60 }
  0x5c   : > { %4039 = vmatpush1.bf16.msra.mxu0 %v4038_v37  ;;  %v908_v27 = vrot.slane %v414_v35, %v4460_v19  ;;  %v952_v9 = vsub.f32 %v4467_v22, %v4763_v63  ;;  %v970_v19 = vsub.f32 %v4469_v23, %v4763_v63  ;;  %v1021_v41 = vand.u32 2147483647, %v967_v14 }
  0x5d   : > { %3941 = vmatprep.subr.msk.mxu0 %vm1190_vm0, %v1144_v47  ;;  %4041 = vmatprep.subr.bf16.mxu1 %v4040_v53  ;;  %v1092_v42 = vsub.f32 1.0, %v1038_v15  ;;  %v1057_v57 = vsub.f32 1.0, %v1003_v40  ;;  %v1040_v58 = vand.u32 2147483647, %v986_v38  ;;  %v985_v30 = vsub.f32 %v4471_v24, %v4684_v6 }
  0x5e   : > { %3904 = vmatmul.mubr.msk.f32.gmra.mrb[16].mxu1 %vm1153_vm1, %v4618_v26  ;;  %3916 = vmatmul.mubr.msk.f32.gmra.mrb[16].mxu0 %vm1153_vm1, %v4562_v2  ;;  %v947_v61 = vsub.f32 %v4467_v22, %v908_v27  ;;  %v965_v62 = vsub.f32 %v4469_v23, %v908_v27  ;;  %v983_v16 = vsub.f32 %v4471_v24, %v908_v27  ;;  %v1006_v32 = vand.u32 2147483647, %v952_v9 }
  0x5f   : > { %1470 = vmatprep.mubr.f32.mxu1 %v6474_v1  ;;  %1595 = vmatprep.mubr.f32.mxu0 %v6474_v1  ;;  %v1024_v33 = vand.u32 2147483647, %v970_v19  ;;  %v1146_v25 = vmax.f32 %v1092_v42, 0.0  ;;  %v1008_v43 = vand.u32 2147483647, %v954_v50  ;;  %v1094_v6 = vsub.f32 1.0, %v1040_v58 }
  0x60   : > { %3942 = vmatpush1.msk.msra.mxu0 %vm1190_vm0, %v1143_v21  ;;  %v1001_v54 = vand.u32 2147483647, %v947_v61  ;;  %v1019_v0 = vand.u32 2147483647, %v965_v62  ;;  %v1037_v47 = vand.u32 2147483647, %v983_v16  ;;  %v972_v21 = vsub.f32 %v4469_v23, %v4727_v60 }
  0x61   : > { %4045 = vmatprep.subr.bf16.mxu0 %v4044_v55  ;;  %v1060_v48 = vsub.f32 1.0, %v1006_v32  ;;  %v1078_v49 = vsub.f32 1.0, %v1024_v33  ;;  %v1075_v55 = vsub.f32 1.0, %v1021_v41  ;;  %v1111_v62 = vmax.f32 %v1057_v57, 0.0 }
  0x62   : > { %3905 = vmatmul.mubr.msk.f32.gmra.mrb[18].mxu1 %vm1153_vm1, %v4630_v3  ;;  %3917 = vmatmul.mubr.msk.f32.gmra.mrb[18].mxu0 %vm1153_vm1, %v4586_v45  ;;  %v1055_v10 = vsub.f32 1.0, %v1001_v54  ;;  %v1073_v13 = vsub.f32 1.0, %v1019_v0  ;;  %v1091_v29 = vsub.f32 1.0, %v1037_v47  ;;  %v1026_v61 = vand.u32 2147483647, %v972_v21 }
  0x63   : > { %1476 = vmatprep.mubr.f32.mxu1 %v6474_v1  ;;  %1601 = vmatprep.mubr.f32.mxu0 %v6474_v1  ;;  %v1114_v35 = vmax.f32 %v1060_v48, 0.0  ;;  %v1132_v27 = vmax.f32 %v1078_v49, 0.0  ;;  %v1129_v54 = vmax.f32 %v1075_v55, 0.0  ;;  %v1039_v7 = vand.u32 2147483647, %v985_v30 }
  0x64   : > { %v1109_v36 = vmax.f32 %v1055_v10, 0.0  ;;  %v1127_v37 = vmax.f32 %v1073_v13, 0.0  ;;  %v1145_v0 = vmax.f32 %v1091_v29, 0.0  ;;  %v1062_v19 = vsub.f32 1.0, %v1008_v43 }
  0x65   : > { %v4048_v9 = vpack.c.bf16 %v1132_v27, %v1114_v35  ;;  %v1080_v10 = vsub.f32 1.0, %v1026_v61  ;;  %v4046_v13 = vpack.c.bf16 %v1129_v54, %v1111_v62  ;;  %v1093_v28 = vsub.f32 1.0, %v1039_v7 }
  0x66   : > { %3906 = vmatmul.mubr.msk.f32.gmra.mrb[20].mxu1 %vm1153_vm1, %v4660_v44  ;;  %3918 = vmatmul.mubr.msk.f32.gmra.mrb[20].mxu0 %vm1153_vm1, %v4618_v26  ;;  %v4042_v53 = vpack.c.bf16 %v1127_v37, %v1109_v36  ;;  %v1148_v14 = vmax.f32 %v1094_v6, 0.0  ;;  %v1116_v15 = vmax.f32 %v1062_v19, 0.0  ;;  %v951_v36 = vsub.f32 %v4467_v22, %v4722_v39 }
  0x67   : > { %1482 = vmatprep.mubr.f32.mxu1 %v6474_v1  ;;  %1607 = vmatprep.mubr.f32.mxu0 %v6474_v1  ;;  %v1134_v16 = vmax.f32 %v1080_v10, 0.0  ;;  %v1147_v32 = vmax.f32 %v1093_v28, 0.0  ;;  %v969_v37 = vsub.f32 %v4469_v23, %v4722_v39  ;;  %v988_v42 = vsub.f32 %v4471_v24, %v4763_v63 }
  0x68   : > { %v1005_v40 = vand.u32 2147483647, %v951_v36  ;;  %v953_v47 = vsub.f32 %v4467_v22, %v4738_v31  ;;  %v971_v49 = vsub.f32 %v4469_v23, %v4738_v31  ;;  %v987_v63 = vsub.f32 %v4471_v24, %v4722_v39 }
  0x69   : > { %v4052_v33 = vpack.c.bf16 %v1134_v16, %v1116_v15  ;;  %v1023_v41 = vand.u32 2147483647, %v969_v37  ;;  %v1042_v50 = vand.u32 2147483647, %v988_v42  ;;  %v990_v39 = vsub.f32 %v4471_v24, %v4727_v60 }
  0x6a   : > { %3907 = vmatmul.mubr.msk.f32.gmra.mrb[22].mxu1 %vm1153_vm1, %v4681_v51  ;;  %3919 = vmatmul.mubr.msk.f32.gmra.mrb[22].mxu0 %vm1153_vm1, %v4630_v3  ;;  %v1059_v38 = vsub.f32 1.0, %v1005_v40  ;;  %v1007_v21 = vand.u32 2147483647, %v953_v47  ;;  %v1025_v55 = vand.u32 2147483647, %v971_v49  ;;  %v989_v43 = vsub.f32 %v4471_v24, %v4738_v31 }
  0x6b   : > { %1488 = vmatprep.mubr.f32.mxu1 %v6474_v1  ;;  %1613 = vmatprep.mubr.f32.mxu0 %v6474_v1  ;;  %v1077_v48 = vsub.f32 1.0, %v1023_v41  ;;  %v1096_v29 = vsub.f32 1.0, %v1042_v50  ;;  %v1044_v62 = vand.u32 2147483647, %v990_v39  ;;  %v4954_v28 = vsub.s32 0, %v4438_v8 }
  0x6c   : > { %v1061_v58 = vsub.f32 1.0, %v1007_v21  ;;  %v1079_v35 = vsub.f32 1.0, %v1025_v55  ;;  %v1043_v7 = vand.u32 2147483647, %v989_v43  ;;  %v4968_v15 = vadd.f32 %v4447_v12, %v4457_v18 }
  0x6d   : > { %v1131_v57 = vmax.f32 %v1077_v48, 0.0  ;;  %v1150_v61 = vmax.f32 %v1096_v29, 0.0  ;;  %v1098_v31 = vsub.f32 1.0, %v1044_v62  ;;  %6551 = vst [vmem:[#allocation8_spill] sm:$0xff] %v4954_v28  ;;  %v433_v48 = vrot.slane %v4705_v20, 1 }
  0x6e   : > { %3908 = vmatmul.mubr.msk.f32.gmra.mrb[24].mxu1 %vm1153_vm1, %v4543_v52  ;;  %3920 = vmatmul.mubr.msk.f32.gmra.mrb[24].mxu0 %vm1153_vm1, %v4660_v44  ;;  %v1115_v60 = vmax.f32 %v1061_v58, 0.0  ;;  %v1133_v54 = vmax.f32 %v1079_v35, 0.0  ;;  %v584_v18 = vrot.slane %v4968_v15, %v4954_v28  ;;  %v365_v36 = vrot.slane %v4968_v15, 2 }
  0x6f   : > { %1494 = vmatprep.mubr.f32.mxu1 %v6474_v1  ;;  %1619 = vmatprep.mubr.f32.mxu0 %v6474_v1  ;;  %v1152_v19 = vmax.f32 %v1098_v31, 0.0  ;;  %v3870_v39 = vmul.f32 -1.442695, %v433_v48  ;;  %v437_v58 = vrot.slane %v4705_v20, 2  ;;  %v5020_v43 = vsub.s32 2, %v4438_v8 }
  0x70   : > { %v4054_v6 = vpack.c.bf16 %v1133_v54, %v1115_v60  ;;  %v668_v41 = vsub.f32 %v4469_v23, %v584_v18  ;;  %v4997_v47 = vrot.slane %v365_v36, %v4954_v28  ;;  %v686_v50 = vsub.f32 %v4471_v24, %v584_v18 }
  0x71   : > { %6552 = vst [vmem:[#allocation9_spill] sm:$0xff] %v5020_v43  ;;  %v440_v36 = vrot.slane %v4709_v56, 3 }
  0x72   : > { %3909 = vmatmul.mubr.msk.f32.gmra.mrb[26].mxu1 %vm1153_vm1, %v4565_v5  ;;  %3921 = vmatmul.mubr.msk.f32.gmra.mrb[26].mxu0 %vm1153_vm1, %v4681_v51 }
  0x73   : > { %1500 = vmatprep.mubr.f32.mxu1 %v6474_v1  ;;  %1625 = vmatprep.mubr.f32.mxu0 %v6474_v1 }
  0x76   : > { %3910 = vmatmul.mubr.msk.f32.gmra.mrb[28].mxu1 %vm1153_vm1, %v4589_v46  ;;  %3922 = vmatmul.mubr.msk.f32.gmra.mrb[28].mxu0 %vm1153_vm1, %v4543_v52 }
  0x77   : > { %1506 = vmatprep.mubr.f32.mxu1 %v6474_v1  ;;  %1631 = vmatprep.mubr.f32.mxu0 %v6474_v1 }
  0x7a   : > { %3911 = vmatmul.mubr.msk.f32.gmra.mrb[30].mxu1 %vm1153_vm1, %v4621_v59  ;;  %3923 = vmatmul.mubr.msk.f32.gmra.mrb[30].mxu0 %vm1153_vm1, %v4565_v5 }
  0x7b   : > { %1512 = vmatprep.mubr.f32.mxu1 %v6474_v1  ;;  %1637 = vmatprep.mubr.f32.mxu0 %v6474_v1 }
  0x7e   : > { %3912 = vmatmul.mubr.msk.f32.gmra.mrb[32].mxu1 %vm1153_vm1, %v4633_v4  ;;  %3924 = vmatmul.mubr.msk.f32.gmra.mrb[32].mxu0 %vm1153_vm1, %v4589_v46 }
  0x7f   : > { %1643 = vmatprep.mubr.f32.mxu0 %v6474_v1  ;;  %1720 = vmatprep.mubr.f32.mxu1 %v6474_v1 }
  0x82   : > { %3925 = vmatmul.mubr.msk.f32.gmra.mrb[34].mxu0 %vm1153_vm1, %v4621_v59  ;;  %3929 = vmatmul.mubr.msk.f32.vlgmr.msra.gmra.mrb[34].mxu1 %vm1153_vm1, %v4540_v34 }
  0x83   : > { %1649 = vmatprep.mubr.f32.mxu0 %v6474_v1  ;;  %1726 = vmatprep.mubr.f32.mxu1 %v6474_v1 }
  0x84   : > { %4043 = vmatpush1.bf16.msra.mxu1 %v4042_v53  ;;  %v1113_v53 = vmax.f32 %v1059_v38, 0.0 }
  0x85   : > { %3955 = vmatprep.subr.msk.mxu1 %vm1190_vm0, %v1146_v25  ;;  %v1041_v25 = vand.u32 2147483647, %v987_v63 }
  0x86   : > { %3926 = vmatmul.mubr.msk.f32.gmra.mrb[36].mxu0 %vm1153_vm1, %v4633_v4  ;;  %3930 = vmatmul.mubr.msk.f32.gmra.mrb[36].mxu1 %vm1153_vm1, %v4562_v2  ;;  %v4050_v30 = vpack.c.bf16 %v1131_v57, %v1113_v53  ;;  %v722_v53 = vand.u32 2147483647, %v668_v41 }
  0x87   : > { %1732 = vmatprep.mubr.f32.mxu1 %v6474_v1  ;;  %1857 = vmatprep.mubr.f32.mxu0 %v6474_v1  ;;  %v1095_v27 = vsub.f32 1.0, %v1041_v25  ;;  %v652_v25 = vsub.f32 %v4467_v22, %v4997_v47 }
  0x88   : > { %3956 = vmatpush1.msk.msra.mxu1 %vm1190_vm0, %v1145_v0  ;;  %v776_v62 = vsub.f32 1.0, %v722_v53 }
  0x89   : > { %4049 = vmatprep.subr.bf16.mxu1 %v4048_v9  ;;  %v1149_v0 = vmax.f32 %v1095_v27, 0.0  ;;  %v1097_v9 = vsub.f32 1.0, %v1043_v7  ;;  %v740_v27 = vand.u32 2147483647, %v686_v50  ;;  %v3873_v50 = vmul.f32 -1.442695, %v440_v36 }
  0x8a   : > { %3931 = vmatmul.mubr.msk.f32.gmra.mrb[38].mxu1 %vm1153_vm1, %v4586_v45  ;;  %3943 = vmatmul.mubr.msk.f32.vlgmr.msra.gmra.mrb[38].mxu0 %vm1153_vm1, %v4540_v34 }
  0x8b   : > { %1738 = vmatprep.mubr.f32.mxu1 %v6474_v1  ;;  %1863 = vmatprep.mubr.f32.mxu0 %v6474_v1  ;;  %v1151_v10 = vmax.f32 %v1097_v9, 0.0 }
  0x8c   : > { %4047 = vmatpush1.bf16.msra.mxu0 %v4046_v13  ;;  %v3867_v13 = vmul.f32 -1.442695, %v4709_v56 }
  0x8d   : > { %3969 = vmatprep.subr.msk.mxu0 %vm1190_vm0, %v1148_v14  ;;  %v4962_v14 = vadd.f32 %v4445_v11, %v4454_v17  ;;  %v3868_v17 = vmul.f32 -1.442695, %v4705_v20 }
  0x8e   : > { %3932 = vmatmul.mubr.msk.f32.gmra.mrb[40].mxu1 %vm1153_vm1, %v4618_v26  ;;  %3944 = vmatmul.mubr.msk.f32.gmra.mrb[40].mxu0 %vm1153_vm1, %v4562_v2  ;;  %4143 = vpow2.f32 %v3867_v13 }
  0x8f   : > { %1744 = vmatprep.mubr.f32.mxu1 %v6474_v1  ;;  %1869 = vmatprep.mubr.f32.mxu0 %v6474_v1  ;;  %v580_v16 = vrot.slane %v4962_v14, %v4954_v28  ;;  %4145 = vpow2.f32 %v3868_v17 }
  0x90   : > { %3970 = vmatpush1.msk.msra.mxu0 %vm1190_vm0, %v1147_v32  ;;  %v432_v32 = vrot.slane %v4709_v56, 1 }
  0x91   : > { %4053 = vmatprep.subr.bf16.mxu0 %v4052_v33  ;;  %v364_v33 = vrot.slane %v4962_v14, 2  ;;  %v667_v40 = vsub.f32 %v4469_v23, %v580_v16  ;;  %v685_v63 = vsub.f32 %v4471_v24, %v580_v16 }
  0x92   : > { %3933 = vmatmul.mubr.msk.f32.gmra.mrb[42].mxu1 %vm1153_vm1, %v4630_v3  ;;  %3945 = vmatmul.mubr.msk.f32.gmra.mrb[42].mxu0 %vm1153_vm1, %v4586_v45  ;;  %v3869_v37 = vmul.f32 -1.442695, %v432_v32 }
  0x93   : > { %1750 = vmatprep.mubr.f32.mxu1 %v6474_v1  ;;  %1875 = vmatprep.mubr.f32.mxu0 %v6474_v1  ;;  %v4994_v42 = vrot.slane %v364_v33, %v4954_v28  ;;  %v721_v21 = vand.u32 2147483647, %v667_v40  ;;  %v739_v35 = vand.u32 2147483647, %v685_v63 }
  0x94   : > { %4147 = vpow2.f32 %v3869_v37  ;;  %v441_v37 = vrot.slane %v4705_v20, 3 }
  0x95   : > { %v651_v55 = vsub.f32 %v4467_v22, %v4994_v42  ;;  %v669_v31 = vsub.f32 %v4469_v23, %v4994_v42  ;;  %v793_v9 = vsub.f32 1.0, %v739_v35  ;;  %v4215_v35 = vld [vmem:[%s4443_s24] sm:$0xff] }
  0x96   : > { %3934 = vmatmul.mubr.msk.f32.gmra.mrb[44].mxu1 %vm1153_vm1, %v4660_v44  ;;  %3946 = vmatmul.mubr.msk.f32.gmra.mrb[44].mxu0 %vm1153_vm1, %v4618_v26 }
  0x97   : > { %1756 = vmatprep.mubr.f32.mxu1 %v6474_v1  ;;  %1881 = vmatprep.mubr.f32.mxu0 %v6474_v1  ;;  %v705_v54 = vand.u32 2147483647, %v651_v55 }
  0x98   : > { %v4144_v38 = vpop.eup %4143 }
  0x99   : > { %v516_v57 = vadd.f32 1.0, %v4144_v38  ;;  %v4146_v60 = vpop.eup %4145 }
  0x9a   : > { %3935 = vmatmul.mubr.msk.f32.gmra.mrb[46].mxu1 %vm1153_vm1, %v4681_v51  ;;  %3947 = vmatmul.mubr.msk.f32.gmra.mrb[46].mxu0 %vm1153_vm1, %v4630_v3  ;;  %v517_v17 = vadd.f32 1.0, %v4146_v60 }
  0x9b   : > { %1762 = vmatprep.mubr.f32.mxu1 %v6474_v1  ;;  %1887 = vmatprep.mubr.f32.mxu0 %v6474_v1  ;;  %4149 = vrcp.f32 %v516_v57 }
  0x9c   : > { %4151 = vpow2.f32 %v3870_v39  ;;  %v343_v39 = vadd.f32 1.0, %v4447_v12 }
  0x9e   : > { %3936 = vmatmul.mubr.msk.f32.gmra.mrb[48].mxu1 %vm1153_vm1, %v4543_v52  ;;  %3948 = vmatmul.mubr.msk.f32.gmra.mrb[48].mxu0 %vm1153_vm1, %v4660_v44  ;;  %v4148_v32 = vpop.eup %4147 }
  0x9f   : > { %1768 = vmatprep.mubr.f32.mxu1 %v6474_v1  ;;  %1893 = vmatprep.mubr.f32.mxu0 %v6474_v1 }
  0xa2   : > { %3937 = vmatmul.mubr.msk.f32.gmra.mrb[50].mxu1 %vm1153_vm1, %v4565_v5  ;;  %3949 = vmatmul.mubr.msk.f32.gmra.mrb[50].mxu0 %vm1153_vm1, %v4681_v51 }
  0xa3   : > { %1774 = vmatprep.mubr.f32.mxu1 %v6474_v1  ;;  %1899 = vmatprep.mubr.f32.mxu0 %v6474_v1 }
  0xa6   : > { %3938 = vmatmul.mubr.msk.f32.gmra.mrb[52].mxu1 %vm1153_vm1, %v4589_v46  ;;  %3950 = vmatmul.mubr.msk.f32.gmra.mrb[52].mxu0 %vm1153_vm1, %v4543_v52 }
  0xa7   : > { %1780 = vmatprep.mubr.f32.mxu1 %v6474_v1  ;;  %1905 = vmatprep.mubr.f32.mxu0 %v6474_v1 }
  0xaa   : > { %3939 = vmatmul.mubr.msk.f32.gmra.mrb[54].mxu1 %vm1153_vm1, %v4621_v59  ;;  %3951 = vmatmul.mubr.msk.f32.gmra.mrb[54].mxu0 %vm1153_vm1, %v4565_v5 }
  0xab   : > { %1786 = vmatprep.mubr.f32.mxu1 %v6474_v1  ;;  %1911 = vmatprep.mubr.f32.mxu0 %v6474_v1 }
  0xae   : > { %3940 = vmatmul.mubr.msk.f32.gmra.mrb[56].mxu1 %vm1153_vm1, %v4633_v4  ;;  %3952 = vmatmul.mubr.msk.f32.gmra.mrb[56].mxu0 %vm1153_vm1, %v4589_v46 }
  0xaf   : > { %1917 = vmatprep.mubr.f32.mxu0 %v6474_v1  ;;  %1994 = vmatprep.mubr.f32.mxu1 %v6474_v1 }
  0xb2   : > { %3953 = vmatmul.mubr.msk.f32.gmra.mrb[58].mxu0 %vm1153_vm1, %v4621_v59  ;;  %3957 = vmatmul.mubr.msk.f32.vlgmr.msra.gmra.mrb[58].mxu1 %vm1153_vm1, %v4540_v34 }
  0xb3   : > { %1923 = vmatprep.mubr.f32.mxu0 %v6474_v1  ;;  %2000 = vmatprep.mubr.f32.mxu1 %v6474_v1 }
  0xb4   : > { %4051 = vmatpush1.bf16.msra.mxu1 %v4050_v30 }
  0xb5   : > { %3983 = vmatprep.subr.msk.mxu1 %vm1190_vm0, %v1150_v61  ;;  %v775_v61 = vsub.f32 1.0, %v721_v21  ;;  %v445_v21 = vrot.slane %v4705_v20, 4  ;;  %v688_v20 = vsub.f32 %v4471_v24, %v4997_v47 }
  0xb6   : > { %3954 = vmatmul.mubr.msk.f32.gmra.mrb[60].mxu0 %vm1153_vm1, %v4633_v4  ;;  %3958 = vmatmul.mubr.msk.f32.gmra.mrb[60].mxu1 %vm1153_vm1, %v4562_v2 }
  0xb7   : > { %2006 = vmatprep.mubr.f32.mxu1 %v6474_v1  ;;  %2131 = vmatprep.mubr.f32.mxu0 %v6474_v1  ;;  %v5035_v13 = vmax.f32 %v775_v61, 0.0  ;;  %v3876_v61 = vmul.f32 -1.442695, %v445_v21 }
  0xb8   : > { %3984 = vmatpush1.msk.msra.mxu1 %vm1190_vm0, %v1149_v0  ;;  %v706_v0 = vand.u32 2147483647, %v652_v25  ;;  %v3874_v25 = vmul.f32 -1.442695, %v441_v37 }
  0xba   : > { %3959 = vmatmul.mubr.msk.f32.gmra.mrb[62].mxu1 %vm1153_vm1, %v4586_v45  ;;  %3971 = vmatmul.mubr.msk.f32.vlgmr.msra.gmra.mrb[62].mxu0 %vm1153_vm1, %v4540_v34  ;;  %v760_v33 = vsub.f32 1.0, %v706_v0 }
  0xbb   : > { %2012 = vmatprep.mubr.f32.mxu1 %v6474_v1  ;;  %2137 = vmatprep.mubr.f32.mxu0 %v6474_v1 }
  0xbc   : > { %4055 = vmatpush1.bf16.msra.mxu0 %v4054_v6  ;;  %v3872_v6 = vmul.f32 -1.442695, %v437_v58  ;;  %v5065_v53 = vmax.f32 %v760_v33, 0.0 }
  0xbd   : > { %3997 = vmatprep.subr.msk.mxu0 %vm1190_vm0, %v1152_v19  ;;  %v794_v19 = vsub.f32 1.0, %v740_v27 }
  0xbe   : > { %3960 = vmatmul.mubr.msk.f32.gmra.mrb[64].mxu1 %vm1153_vm1, %v4618_v26  ;;  %3972 = vmatmul.mubr.msk.f32.gmra.mrb[64].mxu0 %vm1153_vm1, %v4562_v2 }
  0xbf   : > { %2018 = vmatprep.mubr.f32.mxu1 %v6474_v1  ;;  %2143 = vmatprep.mubr.f32.mxu0 %v6474_v1  ;;  %v5052_v41 = vmax.f32 %v794_v19, 0.0 }
  0xc0   : > { %3998 = vmatpush1.msk.msra.mxu0 %vm1190_vm0, %v1151_v10  ;;  %v368_v10 = vrot.slane %v4962_v14, 4  ;;  %v670_v14 = vsub.f32 %v4469_v23, %v4997_v47 }
  0xc2   : > { %3961 = vmatmul.mubr.msk.f32.gmra.mrb[66].mxu1 %vm1153_vm1, %v4630_v3  ;;  %3973 = vmatmul.mubr.msk.f32.gmra.mrb[66].mxu0 %vm1153_vm1, %v4586_v45  ;;  %v596_v38 = vrot.slane %v368_v10, %v4954_v28  ;;  %v5067_v55 = vand.u32 2147483647, %v670_v14  ;;  %v742_v10 = vand.u32 2147483647, %v688_v20 }
  0xc3   : > { %2024 = vmatprep.mubr.f32.mxu1 %v6474_v1  ;;  %2149 = vmatprep.mubr.f32.mxu0 %v6474_v1 }
  0xc4   : > { %v671_v27 = vsub.f32 %v4469_v23, %v596_v38  ;;  %v689_v60 = vsub.f32 %v4471_v24, %v596_v38 }
  0xc6   : > { %3962 = vmatmul.mubr.msk.f32.gmra.mrb[68].mxu1 %vm1153_vm1, %v4660_v44  ;;  %3974 = vmatmul.mubr.msk.f32.gmra.mrb[68].mxu0 %vm1153_vm1, %v4618_v26 }
  0xc7   : > { %2030 = vmatprep.mubr.f32.mxu1 %v6474_v1  ;;  %2155 = vmatprep.mubr.f32.mxu0 %v6474_v1 }
  0xca   : > { %3963 = vmatmul.mubr.msk.f32.gmra.mrb[70].mxu1 %vm1153_vm1, %v4681_v51  ;;  %3975 = vmatmul.mubr.msk.f32.gmra.mrb[70].mxu0 %vm1153_vm1, %v4630_v3 }
  0xcb   : > { %2036 = vmatprep.mubr.f32.mxu1 %v6474_v1  ;;  %2161 = vmatprep.mubr.f32.mxu0 %v6474_v1 }
  0xce   : > { %3964 = vmatmul.mubr.msk.f32.gmra.mrb[72].mxu1 %vm1153_vm1, %v4543_v52  ;;  %3976 = vmatmul.mubr.msk.f32.gmra.mrb[72].mxu0 %vm1153_vm1, %v4660_v44 }
  0xcf   : > { %2042 = vmatprep.mubr.f32.mxu1 %v6474_v1  ;;  %2167 = vmatprep.mubr.f32.mxu0 %v6474_v1 }
  0xd2   : > { %3965 = vmatmul.mubr.msk.f32.gmra.mrb[74].mxu1 %vm1153_vm1, %v4565_v5  ;;  %3977 = vmatmul.mubr.msk.f32.gmra.mrb[74].mxu0 %vm1153_vm1, %v4681_v51 }
  0xd3   : > { %2048 = vmatprep.mubr.f32.mxu1 %v6474_v1  ;;  %2173 = vmatprep.mubr.f32.mxu0 %v6474_v1 }
  0xd6   : > { %3966 = vmatmul.mubr.msk.f32.gmra.mrb[76].mxu1 %vm1153_vm1, %v4589_v46  ;;  %3978 = vmatmul.mubr.msk.f32.gmra.mrb[76].mxu0 %vm1153_vm1, %v4543_v52  ;;  %v649_v52 = vsub.f32 %v4467_v22, %v580_v16  ;;  %v5037_v16 = vmax.f32 %v776_v62, 0.0 }
  0xd7   : > { %2054 = vmatprep.mubr.f32.mxu1 %v6474_v1  ;;  %2179 = vmatprep.mubr.f32.mxu0 %v6474_v1 }
  0xd8   : > { %v703_v49 = vand.u32 2147483647, %v649_v52  ;;  %v723_v52 = vand.u32 2147483647, %v669_v31 }
  0xda   : > { %3967 = vmatmul.mubr.msk.f32.gmra.mrb[78].mxu1 %vm1153_vm1, %v4621_v59  ;;  %3979 = vmatmul.mubr.msk.f32.gmra.mrb[78].mxu0 %vm1153_vm1, %v4565_v5  ;;  %v650_v5 = vsub.f32 %v4467_v22, %v584_v18  ;;  %v757_v30 = vsub.f32 1.0, %v703_v49  ;;  %v759_v18 = vsub.f32 1.0, %v705_v54  ;;  %v5059_v49 = vadd.f32 1.0, %v4445_v11 }
  0xdb   : > { %2060 = vmatprep.mubr.f32.mxu1 %v6474_v1  ;;  %2185 = vmatprep.mubr.f32.mxu0 %v6474_v1  ;;  %v777_v57 = vsub.f32 1.0, %v723_v52  ;;  %v743_v52 = vand.u32 2147483647, %v689_v60 }
  0xdc   : > { %v704_v29 = vand.u32 2147483647, %v650_v5  ;;  %v5030_v8 = vmax.f32 %v757_v30, 0.0  ;;  %v518_v5 = vadd.f32 1.0, %v4148_v32  ;;  %v5062_v63 = vmax.f32 %v759_v18, 0.0 }
  0xdd   : > { %v725_v18 = vand.u32 2147483647, %v671_v27 }
  0xde   : > { %3968 = vmatmul.mubr.msk.f32.gmra.mrb[80].mxu1 %vm1153_vm1, %v4633_v4  ;;  %3980 = vmatmul.mubr.msk.f32.gmra.mrb[80].mxu0 %vm1153_vm1, %v4589_v46  ;;  %v436_v46 = vrot.slane %v4709_v56, 2  ;;  %v758_v7 = vsub.f32 1.0, %v704_v29  ;;  %v653_v29 = vsub.f32 %v4467_v22, %v596_v38 }
  0xdf   : > { %2191 = vmatprep.mubr.f32.mxu0 %v6474_v1  ;;  %2268 = vmatprep.mubr.f32.mxu1 %v6474_v1 }
  0xe0   : > { %v5050_v40 = vmax.f32 %v758_v7, 0.0 }
  0xe2   : > { %3981 = vmatmul.mubr.msk.f32.gmra.mrb[82].mxu0 %vm1153_vm1, %v4621_v59  ;;  %3985 = vmatmul.mubr.msk.f32.vlgmr.msra.gmra.mrb[82].mxu1 %vm1153_vm1, %v4540_v34  ;;  %v3871_v59 = vmul.f32 -1.442695, %v436_v46  ;;  %v4150_v46 = vpop.eup %4149 }
  0xe3   : > { %2197 = vmatprep.mubr.f32.mxu0 %v6474_v1  ;;  %2274 = vmatprep.mubr.f32.mxu1 %v6474_v1  ;;  %v4152_v58 = vpop.eup %4151  ;;  %v5087_v62 = vrot.slane %v4150_v46, %v5020_v43 }
  0xe4   : > { %4153 = vpow2.f32 %v3871_v59  ;;  %v5095_v59 = vmax.f32 %v777_v57, 0.0  ;;  %v519_v31 = vadd.f32 1.0, %v4152_v58  ;;  %v5111_v57 = vld [vmem:[%s4443_s24 + $0x10] sm:$0xff] }
  0xe5   : > { %4155 = vpow2.f32 %v3872_v6  ;;  %v4216_v6 = vld [vmem:[%s4443_s24 + $0x8] sm:$0xff] }
  0xe6   : > { %3982 = vmatmul.mubr.msk.f32.gmra.mrb[84].mxu0 %vm1153_vm1, %v4633_v4  ;;  %3986 = vmatmul.mubr.msk.f32.gmra.mrb[84].mxu1 %vm1153_vm1, %v4562_v2  ;;  %v369_v4 = vrot.slane %v4968_v15, 4  ;;  %v5048_v15 = vmax.f32 %v793_v9, 0.0  ;;  %4157 = vrcp.f32 %v517_v17  ;;  %v345_v9 = vadd.f32 %v4216_v6, %v343_v39 }
  0xe7   : > { %2280 = vmatprep.mubr.f32.mxu1 %v6474_v1  ;;  %2405 = vmatprep.mubr.f32.mxu0 %v6474_v1  ;;  %4159 = vrcp.f32 %v518_v5  ;;  %v707_v17 = vand.u32 2147483647, %v653_v29 }
  0xe8   : > { %v600_v48 = vrot.slane %v369_v4, %v4954_v28  ;;  %4161 = vpow2.f32 %v3873_v50 }
  0xe9   : > { %4163 = vpow2.f32 %v3874_v25  ;;  %v761_v50 = vsub.f32 1.0, %v707_v17  ;;  %v779_v25 = vsub.f32 1.0, %v725_v18 }
  0xea   : > { %3987 = vmatmul.mubr.msk.f32.gmra.mrb[86].mxu1 %vm1153_vm1, %v4586_v45  ;;  %3999 = vmatmul.mubr.msk.f32.vlgmr.msra.gmra.mrb[86].mxu0 %vm1153_vm1, %v4540_v34  ;;  %v444_v34 = vrot.slane %v4709_v56, 4  ;;  %v687_v56 = vsub.f32 %v4471_v24, %v4994_v42  ;;  %v654_v30 = vsub.f32 %v4467_v22, %v600_v48  ;;  %v672_v47 = vsub.f32 %v4469_v23, %v600_v48 }
  0xeb   : > { %2286 = vmatprep.mubr.f32.mxu1 %v6474_v1  ;;  %2411 = vmatprep.mubr.f32.mxu0 %v6474_v1  ;;  %v690_v54 = vsub.f32 %v4471_v24, %v600_v48  ;;  %v375_v48 = vrot.slane %v345_v9, 6 }
  0xec   : > { %v3875_v42 = vmul.f32 -1.442695, %v444_v34  ;;  %v741_v7 = vand.u32 2147483647, %v687_v56  ;;  %v708_v32 = vand.u32 2147483647, %v654_v30 }
  0xed   : > { %v726_v33 = vand.u32 2147483647, %v672_v47  ;;  %v744_v14 = vand.u32 2147483647, %v690_v54  ;;  %v796_v34 = vsub.f32 1.0, %v742_v10  ;;  %v5118_v56 = vld [vmem:[%s4443_s24 + $0x18] sm:$0xff] }
  0xee   : > { %3988 = vmatmul.mubr.msk.f32.gmra.mrb[88].mxu1 %vm1153_vm1, %v4618_v26  ;;  %4000 = vmatmul.mubr.msk.f32.gmra.mrb[88].mxu0 %vm1153_vm1, %v4562_v2  ;;  %v344_v2 = vadd.f32 %v4215_v35, %v5059_v49  ;;  %v4154_v0 = vpop.eup %4153  ;;  %4165 = vpow2.f32 %v3875_v42  ;;  %v795_v38 = vsub.f32 1.0, %v741_v7  ;;  %v5121_v20 = vadd.f32 %v5118_v56, %v343_v39 }
  0xef   : > { %2292 = vmatprep.mubr.f32.mxu1 %v6474_v1  ;;  %2417 = vmatprep.mubr.f32.mxu0 %v6474_v1  ;;  %v4156_v19 = vpop.eup %4155  ;;  %4167 = vpow2.f32 %v3876_v61  ;;  %v520_v36 = vadd.f32 1.0, %v4154_v0  ;;  %v780_v46 = vsub.f32 1.0, %v726_v33  ;;  %v797_v30 = vsub.f32 1.0, %v743_v52 }
  0xf0   : > { %v374_v4 = vrot.slane %v344_v2, 6  ;;  %v4158_v37 = vpop.eup %4157  ;;  %4169 = vrcp.f32 %v519_v31  ;;  %v521_v5 = vadd.f32 1.0, %v4156_v19  ;;  %v798_v35 = vsub.f32 1.0, %v744_v14 }
  0xf1   : > { %v4160_v29 = vpop.eup %4159  ;;  %v5124_v58 = vrot.slane %v4158_v37, %v5020_v43  ;;  %4171 = vrcp.f32 %v520_v36  ;;  %v5132_v42 = vmax.f32 %v795_v38, 0.0  ;;  %v608_v39 = vrot.slane %v375_v48, %v4954_v28 }
  0xf2   : > { %3989 = vmatmul.mubr.msk.f32.gmra.mrb[90].mxu1 %vm1153_vm1, %v4630_v3  ;;  %4001 = vmatmul.mubr.msk.f32.gmra.mrb[90].mxu0 %vm1153_vm1, %v4586_v45  ;;  %v778_v45 = vsub.f32 1.0, %v5067_v55  ;;  %v5108_v21 = vrot.slane %v374_v4, %v4954_v28  ;;  %v5115_v55 = vadd.f32 %v5111_v57, %v5059_v49  ;;  %v4162_v2 = vpop.eup %4161  ;;  %4173 = vrcp.f32 %v521_v5 }
  0xf3   : > { %2298 = vmatprep.mubr.f32.mxu1 %v6474_v1  ;;  %2423 = vmatprep.mubr.f32.mxu0 %v6474_v1  ;;  %v4164_v27 = vpop.eup %4163  ;;  %v5137_v47 = vmax.f32 %v796_v34, 0.0  ;;  %v5139_v61 = vmax.f32 %v761_v50, 0.0  ;;  %v5147_v0 = vmax.f32 %v779_v25, 0.0  ;;  %v5149_v7 = vmax.f32 %v780_v46, 0.0 }
  0xf4   : > { %v5130_v49 = vmax.f32 %v778_v45, 0.0  ;;  %v612_v60 = vrot.slane %v5115_v55, %v4954_v28  ;;  %v616_v31 = vrot.slane %v5121_v20, %v4954_v28  ;;  %v5154_v9 = vrot.slane %v4160_v29, %v5020_v43  ;;  %v4220_v29 = vld [vmem:[%s4527_s6 + $0x40] sm:$0xff] }
  0xf5   : > { %v5156_v19 = vmax.f32 %v797_v30, 0.0  ;;  %v5158_v10 = vmax.f32 %v798_v35, 0.0  ;;  %v522_v17 = vadd.f32 1.0, %v4162_v2  ;;  %v656_v18 = vsub.f32 %v4467_v22, %v608_v39 }
  0xf6   : > { %3990 = vmatmul.mubr.msk.f32.gmra.mrb[92].mxu1 %vm1153_vm1, %v4660_v44  ;;  %4002 = vmatmul.mubr.msk.f32.gmra.mrb[92].mxu0 %vm1153_vm1, %v4618_v26  ;;  %v762_v26 = vsub.f32 1.0, %v708_v32  ;;  %v4219_v32 = vld [vmem:[%s4527_s6 + $0x38] sm:$0xff]  ;;  %v673_v33 = vsub.f32 %v4469_v23, %v5108_v21  ;;  %v674_v45 = vsub.f32 %v4469_v23, %v608_v39  ;;  %v523_v36 = vadd.f32 1.0, %v4164_v27 }
  0xf7   : > { %2304 = vmatprep.mubr.f32.mxu1 %v6474_v1  ;;  %2429 = vmatprep.mubr.f32.mxu0 %v6474_v1  ;;  %v691_v14 = vsub.f32 %v4471_v24, %v5108_v21  ;;  %v692_v37 = vsub.f32 %v4471_v24, %v608_v39  ;;  %v658_v5 = vsub.f32 %v4467_v22, %v616_v31  ;;  %4175 = vrcp.f32 %v522_v17 }
  0xf8   : > { %v5145_v54 = vmax.f32 %v762_v26, 0.0  ;;  %v4166_v6 = vpop.eup %4165  ;;  %v675_v48 = vsub.f32 %v4469_v23, %v612_v60  ;;  %v676_v34 = vsub.f32 %v4469_v23, %v616_v31  ;;  %v693_v26 = vsub.f32 %v4471_v24, %v612_v60 }
  0xf9   : > { %v4168_v4 = vpop.eup %4167  ;;  %v524_v50 = vadd.f32 1.0, %v4166_v6  ;;  %v694_v46 = vsub.f32 %v4471_v24, %v616_v31  ;;  %v727_v30 = vand.u32 2147483647, %v673_v33  ;;  %v728_v35 = vand.u32 2147483647, %v674_v45  ;;  %v4221_v45 = vld [vmem:[%s4527_s6 + $0x48] sm:$0xff] }
  0xfa   : > { %3991 = vmatmul.mubr.msk.f32.gmra.mrb[94].mxu1 %vm1153_vm1, %v4681_v51  ;;  %4003 = vmatmul.mubr.msk.f32.gmra.mrb[94].mxu0 %vm1153_vm1, %v4630_v3  ;;  %v655_v3 = vsub.f32 %v4467_v22, %v5108_v21  ;;  %v4170_v38 = vpop.eup %4169  ;;  %v525_v25 = vadd.f32 1.0, %v4168_v4  ;;  %v710_v21 = vand.u32 2147483647, %v656_v18  ;;  %4177 = vrcp.f32 %v523_v36 }
  0xfb   : > { %2310 = vmatprep.mubr.f32.mxu1 %v6474_v1  ;;  %2435 = vmatprep.mubr.f32.mxu0 %v6474_v1  ;;  %v4172_v2 = vpop.eup %4171  ;;  %v5186_v39 = vrot.slane %v4170_v38, %v5020_v43  ;;  %v745_v27 = vand.u32 2147483647, %v691_v14  ;;  %v712_v17 = vand.u32 2147483647, %v658_v5  ;;  %4179 = vrcp.f32 %v524_v50 }
  0xfc   : > { %v709_v52 = vand.u32 2147483647, %v655_v3  ;;  %v746_v3 = vand.u32 2147483647, %v692_v37  ;;  %v4174_v31 = vpop.eup %4173  ;;  %v730_v4 = vand.u32 2147483647, %v676_v34  ;;  %4181 = vrcp.f32 %v525_v25 }
  0xfd   : > { %v747_v18 = vand.u32 2147483647, %v693_v26  ;;  %v748_v33 = vand.u32 2147483647, %v694_v46  ;;  %v5192_v36 = vrot.slane %v4172_v2, %v5020_v43  ;;  %v764_v14 = vsub.f32 1.0, %v710_v21 }
  0xfe   : > { %3992 = vmatmul.mubr.msk.f32.gmra.mrb[96].mxu1 %vm1153_vm1, %v4219_v32  ;;  %4004 = vmatmul.mubr.msk.f32.gmra.mrb[96].mxu0 %vm1153_vm1, %v4660_v44  ;;  %v657_v44 = vsub.f32 %v4467_v22, %v612_v60  ;;  %v763_v6 = vsub.f32 1.0, %v709_v52  ;;  %v781_v37 = vsub.f32 1.0, %v727_v30  ;;  %v5197_v52 = vrot.slane %v4174_v31, %v5020_v43 }
  0xff   : > { %2316 = vmatprep.mubr.f32.mxu1 %v6474_v1  ;;  %2441 = vmatprep.mubr.f32.mxu0 %v6474_v1  ;;  %v799_v38 = vsub.f32 1.0, %v745_v27  ;;  %v800_v5 = vsub.f32 1.0, %v746_v3  ;;  %v380_v26 = vrot.slane %v5115_v55, 2  ;;  %v784_v25 = vsub.f32 1.0, %v730_v4 }
 0x100   : > { %v711_v60 = vand.u32 2147483647, %v657_v44  ;;  %v782_v44 = vsub.f32 1.0, %v728_v35  ;;  %v5199_v34 = vmax.f32 %v763_v6, 0.0  ;;  %v801_v46 = vsub.f32 1.0, %v747_v18  ;;  %v4222_v35 = vld [vmem:[%s4527_s6 + $0x50] sm:$0xff] }
 0x101   : > { %v802_v21 = vsub.f32 1.0, %v748_v33  ;;  %v381_v30 = vrot.slane %v5121_v20, 2  ;;  %v5206_v2 = vmax.f32 %v764_v14, 0.0  ;;  %v5208_v27 = vmax.f32 %v781_v37, 0.0  ;;  %v4176_v55 = vpop.eup %4175 }
 0x102   : > { %3993 = vmatmul.mubr.msk.f32.gmra.mrb[98].mxu1 %vm1153_vm1, %v4220_v29  ;;  %4005 = vmatmul.mubr.msk.f32.gmra.mrb[98].mxu0 %vm1153_vm1, %v4681_v51  ;;  %v729_v51 = vand.u32 2147483647, %v675_v48  ;;  %v765_v48 = vsub.f32 1.0, %v711_v60  ;;  %v5210_v3 = vmax.f32 %v782_v44, 0.0  ;;  %v5213_v60 = vrot.slane %v380_v26, %v4954_v28 }
 0x103   : > { %2322 = vmatprep.mubr.f32.mxu1 %v6474_v1  ;;  %2447 = vmatprep.mubr.f32.mxu0 %v6474_v1  ;;  %v5217_v20 = vmax.f32 %v799_v38, 0.0  ;;  %v5219_v31 = vmax.f32 %v800_v5, 0.0  ;;  %v5224_v6 = vrot.slane %v381_v30, %v4954_v28  ;;  %v5233_v33 = vadd.f32 2.0, %v4445_v11 }
 0x104   : > { %v783_v50 = vsub.f32 1.0, %v729_v51  ;;  %v659_v18 = vsub.f32 %v4467_v22, %v5213_v60  ;;  %v5235_v14 = vmax.f32 %v784_v25, 0.0  ;;  %v5237_v37 = vmax.f32 %v801_v46, 0.0 }
 0x105   : > { %6553 = vst [vmem:[#allocation10_spill] sm:$0xff] %v5219_v31  ;;  %6557 = vst [vmem:[#allocation14_spill] sm:$0xff] %v5233_v33  ;;  %v5239_v44 = vmax.f32 %v802_v21, 0.0  ;;  %v660_v38 = vsub.f32 %v4467_v22, %v5224_v6  ;;  %v5252_v25 = vadd.f32 %v5111_v57, %v5233_v33 }
 0x106   : > { %3994 = vmatmul.mubr.msk.f32.gmra.mrb[100].mxu1 %vm1153_vm1, %v4221_v45  ;;  %4006 = vmatmul.mubr.msk.f32.gmra.mrb[100].mxu0 %vm1153_vm1, %v4219_v32  ;;  %v766_v32 = vsub.f32 1.0, %v712_v17  ;;  %v4178_v17 = vpop.eup %4177  ;;  %v5228_v4 = vmax.f32 %v783_v50, 0.0  ;;  %6558 = vst [vmem:[#allocation15_spill] sm:$0xff] %v5235_v14  ;;  %6559 = vst [vmem:[#allocation16_spill] sm:$0xff] %v5237_v37  ;;  %v713_v11 = vand.u32 2147483647, %v659_v18  ;;  %v677_v18 = vsub.f32 %v4469_v23, %v5213_v60 }
 0x107   : > { %2328 = vmatprep.mubr.f32.mxu1 %v6474_v1  ;;  %2453 = vmatprep.mubr.f32.mxu0 %v6474_v1  ;;  %6560 = vst [vmem:[#allocation17_spill] sm:$0xff] %v5239_v44  ;;  %v4180_v5 = vpop.eup %4179  ;;  %v4224_v50 = vld [vmem:[%s4443_s24 + $0x20] sm:$0xff]  ;;  %6562 = vst [vmem:[#allocation19_spill] sm:$0xff] %v5252_v25  ;;  %v5256_v21 = vrot.slane %v4178_v17, %v5020_v43  ;;  %v714_v30 = vand.u32 2147483647, %v660_v38  ;;  %v4225_v44 = vld [vmem:[%s4443_s24 + $0x28] sm:$0xff] }
 0x108   : > { %v5226_v51 = vmax.f32 %v766_v32, 0.0  ;;  %6556 = vst [vmem:[#allocation13_spill] sm:$0xff] %v5228_v4  ;;  %v5247_v32 = vrot.slane %v4176_v55, %v5020_v43  ;;  %v448_v26 = vrot.slane %v4224_v50, 5  ;;  %v4182_v46 = vpop.eup %4181  ;;  %v449_v37 = vrot.slane %v4225_v44, 5 }
 0x109   : > { %6563 = vst [vmem:[#allocation20_spill] sm:$0xff] %v5256_v21  ;;  %v767_v55 = vsub.f32 1.0, %v713_v11  ;;  %v386_v50 = vrot.slane %v5252_v25, 4  ;;  %v5267_v17 = vrot.slane %v4180_v5, %v5020_v43  ;;  %v678_v44 = vsub.f32 %v4469_v23, %v5224_v6 }
 0x10a   : > { %3995 = vmatmul.mubr.msk.f32.gmra.mrb[102].mxu1 %vm1153_vm1, %v4222_v35  ;;  %4007 = vmatmul.mubr.msk.f32.gmra.mrb[102].mxu0 %vm1153_vm1, %v4220_v29  ;;  %v5221_v29 = vmax.f32 %v765_v48, 0.0  ;;  %6555 = vst [vmem:[#allocation12_spill] sm:$0xff] %v5226_v51  ;;  %v4223_v48 = vld [vmem:[%s4527_s6 + $0x58] sm:$0xff]  ;;  %6561 = vst [vmem:[#allocation18_spill] sm:$0xff] %v5247_v32  ;;  %v3877_v57 = vmul.f32 -1.442695, %v448_v26  ;;  %v5280_v25 = vrot.slane %v4182_v46, %v5020_v43 }
 0x10b   : > { %2334 = vmatprep.mubr.f32.mxu1 %v6474_v1  ;;  %2459 = vmatprep.mubr.f32.mxu0 %v6474_v1  ;;  %6565 = vst [vmem:[#allocation22_spill] sm:$0xff] %v5267_v17  ;;  %v3878_v38 = vmul.f32 -1.442695, %v449_v37  ;;  %v768_v5 = vsub.f32 1.0, %v714_v30  ;;  %v731_v17 = vand.u32 2147483647, %v677_v18  ;;  %v5292_v46 = vrot.slane %v386_v50, %v4954_v28 }
 0x10c   : > { %6554 = vst [vmem:[#allocation11_spill] sm:$0xff] %v5221_v29  ;;  %6567 = vst [vmem:[#allocation24_spill] sm:$0xff] %v5280_v25  ;;  %v6568_v14 = vmov 0.0   ;;  %4183 = vpow2.f32 %v3877_v57  ;;  %s3742_s6 = sshll.u32 %s262_s5, 4  ;;  %s6414_s6 = int_to_ptr.vmem [resolvable:$true] %s3742_s6 }
 0x10d   : > { %6570 = vst [vmem:[#allocation26_spill] sm:$0xff] %v5292_v46  ;;  %4185 = vpow2.f32 %v3878_v38  ;;  %s4229_s19 = scalar_lea.vmem %s6414_s6, 256 }
 0x10e   : > { %3996 = vmatmul.mubr.msk.f32.gmra.mrb[104].mxu1 %vm1153_vm1, %v4223_v48  ;;  %4008 = vmatmul.mubr.msk.f32.gmra.mrb[104].mxu0 %vm1153_vm1, %v4221_v45  ;;  %v5260_v45 = vadd.f32 2.0, %v4447_v12  ;;  %p4230_p0 = scmp.ne.s32.totalorder %s6414_s6, %s4229_s19 }
 0x10f   : > { %2465 = vmatprep.mubr.f32.mxu0 %v6474_v1  ;;  %3712 = vmatprep.mubr.f32.mxu1 %v6474_v1 }
 0x110   : > { %6564 = vst [vmem:[#allocation21_spill] sm:$0xff] %v5260_v45  ;;  %v5273_v12 = vadd.f32 %v5118_v56, %v5260_v45  ;;  %v5287_v56 = vmax.f32 %v767_v55, 0.0  ;;  %v785_v45 = vsub.f32 1.0, %v731_v17  ;;  %v5300_v17 = vmax.f32 %v768_v5, 0.0  ;;  %v305_v5 = vld [vmem:[%s4443_s24 + $0x30] sm:$0x7]  ;;  %p4231_p1 = pnand %p4230_p0, %p4404_p3 }
 0x111   : > { %v1353_v33 = vpop.f32.mrb[0].mxu1  ;;  %v1311_v32 = vpop.f32.mrb[0].mxu0 }
 0x112   : > { %6566 = vst [vmem:[#allocation23_spill] sm:$0xff] %v5273_v12  ;;  %v5276_v11 = vmul.f32 %v1353_v33, %v5035_v13  ;;  %v1355_v1 = vpop.f32.mrb[1].mxu1  ;;  %4009 = vmatmul.mubr.msk.f32.gmra.mrb[106].mxu0 %vm1153_vm1, %v4222_v35  ;;  %v1313_v26 = vpop.f32.mrb[1].mxu0  ;;  %v2478_v37 = vmul.f32 %v1311_v32, %v5030_v8  ;;  %6569 = vst [vmem:[#allocation25_spill] sm:$0xff] %v5287_v56  ;;  %v732_v33 = vand.u32 2147483647, %v678_v44  ;;  %p4232_p2 = pneg %p4231_p1 }
 0x113   : > { %v5283_v21 = vmul.f32 %v1355_v1, %v5037_v16  ;;  %2471 = vmatprep.mubr.f32.mxu0 %v6568_v14  ;;  %v695_v35 = vsub.f32 %v4471_v24, %v5213_v60  ;;  %v2479_v18 = vmul.f32 %v1313_v26, %v5050_v40  ;;  %v696_v32 = vsub.f32 %v4471_v24, %v5224_v6 }
 0x114   : > { %v387_v14 = vrot.slane %v5273_v12, 4  ;;  %6571 = vst [vmem:[#allocation27_spill] sm:$0xff] %v5300_v17  ;;  %v786_v50 = vsub.f32 1.0, %v732_v33  ;;  %v5306_v43 = vmax.f32 %v785_v45, 0.0 }
 0x115   : > { %v1359_v30 = vpop.f32.mrb[2].mxu1  ;;  %v1317_v1 = vpop.f32.mrb[2].mxu0  ;;  %v749_v44 = vand.u32 2147483647, %v695_v35  ;;  %v750_v6 = vand.u32 2147483647, %v696_v32 }
 0x116   : > { %v1361_v55 = vpop.f32.mrb[3].mxu1  ;;  %4010 = vmatmul.mubr.msk.f32.gmra.mrb[108].mxu0 %vm1153_vm1, %v4223_v48  ;;  %v2496_v57 = vmul.f32 %v1317_v1, %v5035_v13  ;;  %v1319_v60 = vpop.f32.mrb[3].mxu0  ;;  %v5303_v26 = vmul.f32 %v1359_v30, %v5048_v15  ;;  %6572 = vst [vmem:[#allocation28_spill] sm:$0xff] %v5306_v43  ;;  %v661_v48 = vsub.f32 %v4467_v22, %v5292_v46 }
 0x117   : > { %v2497_v38 = vmul.f32 %v1319_v60, %v5037_v16  ;;  %v803_v24 = vsub.f32 1.0, %v749_v44  ;;  %v5311_v1 = vrot.slane %v387_v14, %v4954_v28  ;;  %v5315_v33 = vmul.f32 %v1361_v55, %v5052_v41 }
 0x118   : > { %v2694_v12 = vadd.f32 %v2496_v57, %v2478_v37  ;;  %v804_v56 = vsub.f32 1.0, %v750_v6  ;;  %v454_v60 = vrot.slane %v305_v5, 6  ;;  %v5319_v44 = vmax.f32 %v786_v50, 0.0 }
 0x119   : > { %6573 = vst [vmem:[#allocation29_spill] sm:$0xff] %v5311_v1  ;;  %v2702_v35 = vadd.f32 %v2497_v38, %v2479_v18  ;;  %v1323_v30 = vpop.f32.mrb[4].mxu0  ;;  %v1365_v17 = vpop.f32.mrb[4].mxu1  ;;  %v715_v43 = vand.u32 2147483647, %v661_v48  ;;  %v5323_v55 = vmax.f32 %v803_v24, 0.0  ;;  %v662_v18 = vsub.f32 %v4467_v22, %v5311_v1 }
 0x11a   : > { %v2514_v45 = vmul.f32 %v1323_v30, %v5048_v15  ;;  %v2640_v37 = vmul.f32 %v1365_v17, %v5030_v8  ;;  %v1325_v32 = vpop.f32.mrb[5].mxu0  ;;  %v1367_v57 = vpop.f32.mrb[5].mxu1  ;;  %6574 = vst [vmem:[#allocation30_spill] sm:$0xff] %v5319_v44  ;;  %v5327_v6 = vmax.f32 %v804_v56, 0.0  ;;  %v679_v17 = vsub.f32 %v4469_v23, %v5292_v46 }
 0x11b   : > { %v2515_v14 = vmul.f32 %v1325_v32, %v5052_v41  ;;  %v2641_v28 = vmul.f32 %v1367_v57, %v5050_v40  ;;  %6575 = vst [vmem:[#allocation31_spill] sm:$0xff] %v5323_v55  ;;  %v769_v5 = vsub.f32 1.0, %v715_v43  ;;  %v716_v48 = vand.u32 2147483647, %v662_v18  ;;  %v4184_v24 = vpop.eup %4183 }
 0x11c   : > { %v2695_v38 = vadd.f32 %v2694_v12, %v2514_v45  ;;  %6576 = vst [vmem:[#allocation32_spill] sm:$0xff] %v5327_v6  ;;  %v680_v32 = vsub.f32 %v4469_v23, %v5311_v1  ;;  %v5333_v57 = vmul.f32 -1.442695, %v454_v60  ;;  %v4186_v46 = vpop.eup %4185  ;;  %v526_v6 = vadd.f32 1.0, %v4184_v24 }
 0x11d   : > { %v2703_v30 = vadd.f32 %v2702_v35, %v2515_v14  ;;  %v1371_v50 = vpop.f32.mrb[6].mxu1  ;;  %v1329_v44 = vpop.f32.mrb[6].mxu0  ;;  %v5337_v45 = vmax.f32 %v769_v5, 0.0  ;;  %v527_v1 = vadd.f32 1.0, %v4186_v46 }
 0x11e   : > { %6577 = vst [vmem:[#allocation33_spill] sm:$0xff] %v5333_v57  ;;  %v2696_v55 = vrot.slane %v2695_v38, 4  ;;  %v2658_v22 = vmul.f32 %v1371_v50, %v5035_v13  ;;  %v1373_v12 = vpop.f32.mrb[7].mxu1  ;;  %v2532_v56 = vmul.f32 %v1329_v44, %v5030_v8  ;;  %v1331_v43 = vpop.f32.mrb[7].mxu0  ;;  %v770_v57 = vsub.f32 1.0, %v716_v48 }
 0x11f   : > { %6578 = vst [vmem:[#allocation34_spill] sm:$0xff] %v5337_v45  ;;  %v2704_v35 = vrot.slane %v2703_v30, 4  ;;  %v2659_v14 = vmul.f32 %v1373_v12, %v5037_v16  ;;  %v2533_v18 = vmul.f32 %v1331_v43, %v5050_v40  ;;  %4187 = vrcp.f32 %v526_v6 }
 0x120   : > { %v2697_v23 = vadd.f32 %v2696_v55, %v2695_v38  ;;  %v3126_v60 = vadd.f32 %v2658_v22, %v2640_v37  ;;  %v733_v44 = vand.u32 2147483647, %v679_v17  ;;  %4189 = vrcp.f32 %v527_v1 }
 0x121   : > { %v2705_v25 = vadd.f32 %v2704_v35, %v2703_v30  ;;  %v3134_v4 = vadd.f32 %v2659_v14, %v2641_v28  ;;  %v1377_v50 = vpop.f32.mrb[8].mxu1  ;;  %v1335_v51 = vpop.f32.mrb[8].mxu0  ;;  %v5345_v46 = vmax.f32 %v770_v57, 0.0  ;;  %v5347_v14 = vand.u32 2147483647, %v680_v32 }
 0x122   : > { %v2698_v29 = vrot.slane %v2697_v23, 2  ;;  %v2676_v5 = vmul.f32 %v1377_v50, %v5048_v15  ;;  %v1379_v45 = vpop.f32.mrb[9].mxu1  ;;  %v2550_v31 = vmul.f32 %v1335_v51, %v5035_v13  ;;  %v1337_v12 = vpop.f32.mrb[9].mxu0  ;;  %v787_v6 = vsub.f32 1.0, %v733_v44 }
 0x123   : > { %v2706_v43 = vrot.slane %v2705_v25, 2  ;;  %v2677_v55 = vmul.f32 %v1379_v45, %v5052_v41  ;;  %v2551_v22 = vmul.f32 %v1337_v12, %v5037_v16 }
 0x124   : > { %v2699_v28 = vadd.f32 %v2698_v29, %v2697_v23  ;;  %v3127_v37 = vadd.f32 %v3126_v60, %v2676_v5  ;;  %v2838_v38 = vadd.f32 %v2550_v31, %v2532_v56 }
 0x125   : > { %v2707_v17 = vadd.f32 %v2706_v43, %v2705_v25  ;;  %v3135_v30 = vadd.f32 %v3134_v4, %v2677_v55  ;;  %v2846_v48 = vadd.f32 %v2551_v22, %v2533_v18  ;;  %v1341_v24 = vpop.f32.mrb[10].mxu0  ;;  %v1448_v35 = vpop.f32.mrb[10].mxu1  ;;  %v5353_v18 = vmax.f32 %v787_v6, 0.0 }
 0x126   : > { %v2700_v13 = vrot.slane %v2699_v28, 1  ;;  %v3128_v51 = vrot.slane %v3127_v37, 4  ;;  %v2568_v1 = vmul.f32 %v1341_v24, %v5048_v15  ;;  %v2480_v45 = vmul.f32 %v1448_v35, %v5062_v63  ;;  %v1343_v16 = vpop.f32.mrb[11].mxu0  ;;  %v1450_v57 = vpop.f32.mrb[11].mxu1 }
 0x127   : > { %v2708_v50 = vrot.slane %v2707_v17, 1  ;;  %v3136_v23 = vrot.slane %v3135_v30, 4  ;;  %v2569_v31 = vmul.f32 %v1343_v16, %v5052_v41  ;;  %v2481_v29 = vmul.f32 %v1450_v57, %v5065_v53 }
 0x128   : > { %v2701_v4 = vadd.f32 %v2700_v13, %v2699_v28  ;;  %v3129_v25 = vadd.f32 %v3128_v51, %v3127_v37  ;;  %v2839_v56 = vadd.f32 %v2838_v38, %v2568_v1 }
 0x129   : > { %v2709_v32 = vadd.f32 %v2708_v50, %v2707_v17  ;;  %v3137_v60 = vadd.f32 %v3136_v23, %v3135_v30  ;;  %v2847_v44 = vadd.f32 %v2846_v48, %v2569_v31  ;;  %v1347_v5 = vpop.f32.mrb[12].mxu0  ;;  %v1454_v15 = vpop.f32.mrb[12].mxu1 }
 0x12a   : > { %v5357_v43 = vmul.f32 %v5087_v62, %v2701_v4  ;;  %v3130_v55 = vrot.slane %v3129_v25, 2  ;;  %v2840_v22 = vrot.slane %v2839_v56, 4  ;;  %v2586_v41 = vmul.f32 %v1347_v5, %v5030_v8  ;;  %v1349_v24 = vpop.f32.mrb[13].mxu0  ;;  %v1456_v28 = vpop.f32.mrb[13].mxu1 }
 0x12b   : > { %v5360_v37 = vpop.eup %4187  ;;  %v5363_v38 = vmul.f32 %v5124_v58, %v2709_v32  ;;  %v3138_v6 = vrot.slane %v3137_v60, 2  ;;  %v2848_v17 = vrot.slane %v2847_v44, 4  ;;  %v2498_v30 = vmul.f32 %v1454_v15, %v5095_v59 }
 0x12c   : > { %6579 = vst [vmem:[#allocation35_spill] sm:$0xff] %v5357_v43  ;;  %v5366_v48 = vpop.eup %4189  ;;  %v3131_v35 = vadd.f32 %v3130_v55, %v3129_v25  ;;  %v2841_v13 = vadd.f32 %v2840_v22, %v2839_v56  ;;  %v2982_v51 = vadd.f32 %v5276_v11, %v2586_v41  ;;  %v2587_v1 = vmul.f32 %v1349_v24, %v5050_v40 }
 0x12d   : > { %v3139_v8 = vadd.f32 %v3138_v6, %v3137_v60  ;;  %v2849_v16 = vadd.f32 %v2848_v17, %v2847_v44  ;;  %v2710_v57 = vadd.f32 %v2498_v30, %v2480_v45  ;;  %v2499_v50 = vmul.f32 %v1456_v28, %v5130_v49  ;;  %v1460_v23 = vpop.f32.mrb[14].mxu1  ;;  %v1585_v31 = vpop.f32.mrb[14].mxu0 }
 0x12e   : > { %v3132_v4 = vrot.slane %v3131_v35, 1  ;;  %v2842_v32 = vrot.slane %v2841_v13, 2  ;;  %v2983_v5 = vadd.f32 %v2982_v51, %v5303_v26  ;;  %v2990_v15 = vadd.f32 %v5283_v21, %v2587_v1  ;;  %v1462_v12 = vpop.f32.mrb[15].mxu1  ;;  %v1587_v25 = vpop.f32.mrb[15].mxu0 }
 0x12f   : > { %v3140_v56 = vrot.slane %v3139_v8, 1  ;;  %v2850_v55 = vrot.slane %v2849_v16, 2  ;;  %v2718_v11 = vadd.f32 %v2499_v50, %v2481_v29  ;;  %v2516_v40 = vmul.f32 %v1460_v23, %v5132_v42 }
 0x130   : > { %v3133_v60 = vadd.f32 %v3132_v4, %v3131_v35  ;;  %v2843_v44 = vadd.f32 %v2842_v32, %v2841_v13  ;;  %v2984_v45 = vrot.slane %v2983_v5, 4  ;;  %v2991_v22 = vadd.f32 %v2990_v15, %v5315_v33 }
 0x131   : > { %v3141_v41 = vadd.f32 %v3140_v56, %v3139_v8  ;;  %v2851_v24 = vadd.f32 %v2850_v55, %v2849_v16  ;;  %v2711_v28 = vadd.f32 %v2710_v57, %v2516_v40  ;;  %v2517_v6 = vmul.f32 %v1462_v12, %v5137_v47  ;;  %v1466_v26 = vpop.f32.mrb[16].mxu1  ;;  %v1591_v17 = vpop.f32.mrb[16].mxu0 }
 0x132   : > { %v5377_v21 = vmul.f32 %v5087_v62, %v3133_v60  ;;  %v2844_v30 = vrot.slane %v2843_v44, 1  ;;  %v2985_v51 = vadd.f32 %v2984_v45, %v2983_v5  ;;  %v2992_v29 = vrot.slane %v2991_v22, 4  ;;  %v1468_v1 = vpop.f32.mrb[17].mxu1  ;;  %v1593_v50 = vpop.f32.mrb[17].mxu0 }
 0x133   : > { %v5380_v35 = vmul.f32 %v5124_v58, %v3141_v41  ;;  %v2852_v13 = vrot.slane %v2851_v24, 1  ;;  %v2712_v33 = vrot.slane %v2711_v28, 4  ;;  %v2719_v8 = vadd.f32 %v2718_v11, %v2517_v6 }
 0x134   : > { %6580 = vst [vmem:[#allocation36_spill] sm:$0xff] %v5377_v21  ;;  %v2845_v57 = vadd.f32 %v2844_v30, %v2843_v44  ;;  %v2986_v12 = vrot.slane %v2985_v51, 2  ;;  %v2993_v23 = vadd.f32 %v2992_v29, %v2991_v22  ;;  %v2534_v41 = vmul.f32 %v1466_v26, %v5062_v63 }
 0x135   : > { %6581 = vst [vmem:[#allocation37_spill] sm:$0xff] %v5380_v35  ;;  %v2853_v32 = vadd.f32 %v2852_v13, %v2851_v24  ;;  %v2713_v15 = vadd.f32 %v2712_v33, %v2711_v28  ;;  %v2720_v56 = vrot.slane %v2719_v8, 4  ;;  %v1472_v5 = vpop.f32.mrb[18].mxu1  ;;  %v1597_v55 = vpop.f32.mrb[18].mxu0  ;;  %v2482_v24 = vmul.f32 %v1585_v31, %v5139_v61 }
 0x136   : > { %v5385_v40 = vmul.f32 %v5087_v62, %v2845_v57  ;;  %v2987_v60 = vadd.f32 %v2986_v12, %v2985_v51  ;;  %v2994_v45 = vrot.slane %v2993_v23, 2  ;;  %v1474_v11 = vpop.f32.mrb[19].mxu1  ;;  %v1599_v6 = vpop.f32.mrb[19].mxu0  ;;  %v2535_v33 = vmul.f32 %v1468_v1, %v5065_v53 }
 0x137   : > { %v5389_v44 = vmul.f32 %v5124_v58, %v2853_v32  ;;  %v2714_v22 = vrot.slane %v2713_v15, 2  ;;  %v2721_v30 = vadd.f32 %v2720_v56, %v2719_v8  ;;  %v2483_v26 = vmul.f32 %v1587_v25, %v5145_v54 }
 0x138   : > { %6582 = vst [vmem:[#allocation38_spill] sm:$0xff] %v5385_v40  ;;  %v2988_v29 = vrot.slane %v2987_v60, 1  ;;  %v2995_v13 = vadd.f32 %v2994_v45, %v2993_v23  ;;  %v2500_v8 = vmul.f32 %v1591_v17, %v5147_v0  ;;  %v2501_v31 = vmul.f32 %v1593_v50, %v5149_v7 }
 0x139   : > { %6583 = vst [vmem:[#allocation39_spill] sm:$0xff] %v5389_v44  ;;  %v2715_v57 = vadd.f32 %v2714_v22, %v2713_v15  ;;  %v2722_v12 = vrot.slane %v2721_v30, 2  ;;  %v1478_v16 = vpop.f32.mrb[20].mxu1  ;;  %v1603_v4 = vpop.f32.mrb[20].mxu0  ;;  %v2552_v1 = vmul.f32 %v1472_v5, %v5095_v59  ;;  %v2518_v45 = vmul.f32 %v1597_v55, %v5156_v19 }
 0x13a   : > { %v2989_v32 = vadd.f32 %v2988_v29, %v2987_v60  ;;  %v2996_v21 = vrot.slane %v2995_v13, 1  ;;  %v1480_v56 = vpop.f32.mrb[21].mxu1  ;;  %v1605_v28 = vpop.f32.mrb[21].mxu0  ;;  %v2726_v22 = vadd.f32 %v2500_v8, %v2482_v24  ;;  %v2734_v51 = vadd.f32 %v2501_v31, %v2483_v26 }
 0x13b   : > { %v2716_v40 = vrot.slane %v2715_v57, 1  ;;  %v2723_v23 = vadd.f32 %v2722_v12, %v2721_v30  ;;  %v2854_v43 = vadd.f32 %v2552_v1, %v2534_v41  ;;  %v2553_v17 = vmul.f32 %v1474_v11, %v5130_v49 }
 0x13c   : > { %v5401_v15 = vmul.f32 %v5087_v62, %v2989_v32  ;;  %v2997_v25 = vadd.f32 %v2996_v21, %v2995_v13  ;;  %v2727_v5 = vadd.f32 %v2726_v22, %v2518_v45  ;;  %v2519_v55 = vmul.f32 %v1599_v6, %v5158_v10 }
 0x13d   : > { %v2717_v60 = vadd.f32 %v2716_v40, %v2715_v57  ;;  %v2724_v29 = vrot.slane %v2723_v23, 1  ;;  %v1484_v50 = vpop.f32.mrb[22].mxu1  ;;  %v1609_v35 = vpop.f32.mrb[22].mxu0  ;;  %v2862_v24 = vadd.f32 %v2553_v17, %v2535_v33  ;;  %v2570_v41 = vmul.f32 %v1478_v16, %v5132_v42 }
 0x13e   : > { %6584 = vst [vmem:[#allocation40_spill] sm:$0xff] %v5401_v15  ;;  %v5406_v30 = vmul.f32 %v5124_v58, %v2997_v25  ;;  %v1486_v62 = vpop.f32.mrb[23].mxu1  ;;  %v1611_v12 = vpop.f32.mrb[23].mxu0  ;;  %v2728_v13 = vrot.slane %v2727_v5, 4  ;;  %v2735_v57 = vadd.f32 %v2734_v51, %v2519_v55  ;;  %v2571_v26 = vmul.f32 %v1480_v56, %v5137_v47 }
 0x13f   : > { %v5410_v21 = vmul.f32 %v5154_v9, %v2717_v60  ;;  %v2725_v40 = vadd.f32 %v2724_v29, %v2723_v23  ;;  %v2855_v6 = vadd.f32 %v2854_v43, %v2570_v41  ;;  %v2588_v8 = vmul.f32 %v1484_v50, %v5062_v63 }
 0x140   : > { %v2729_v23 = vadd.f32 %v2728_v13, %v2727_v5  ;;  %v2736_v33 = vrot.slane %v2735_v57, 4  ;;  %v2863_v45 = vadd.f32 %v2862_v24, %v2571_v26  ;;  %v2536_v16 = vmul.f32 %v1603_v4, %v5139_v61 }
 0x141   : > { %6585 = vst [vmem:[#allocation41_spill] sm:$0xff] %v5410_v21  ;;  %v5417_v32 = vmul.f32 %v5186_v39, %v2725_v40  ;;  %v1490_v31 = vpop.f32.mrb[24].mxu1  ;;  %v1615_v1 = vpop.f32.mrb[24].mxu0  ;;  %v2856_v56 = vrot.slane %v2855_v6, 4  ;;  %v2589_v60 = vmul.f32 %v1486_v62, %v5065_v53  ;;  %v2537_v29 = vmul.f32 %v1605_v28, %v5145_v54 }
 0x142   : > { %v1492_v25 = vpop.f32.mrb[25].mxu1  ;;  %v1617_v22 = vpop.f32.mrb[25].mxu0  ;;  %v2730_v17 = vrot.slane %v2729_v23, 2  ;;  %v2737_v43 = vadd.f32 %v2736_v33, %v2735_v57  ;;  %v2864_v55 = vrot.slane %v2863_v45, 4  ;;  %v2554_v50 = vmul.f32 %v1609_v35, %v5147_v0 }
 0x143   : > { %6586 = vst [vmem:[#allocation42_spill] sm:$0xff] %v5417_v32  ;;  %v2857_v40 = vadd.f32 %v2856_v56, %v2855_v6  ;;  %v2555_v5 = vmul.f32 %v1611_v12, %v5149_v7  ;;  %v2606_v24 = vmul.f32 %v1490_v31, %v5095_v59  ;;  %v2572_v4 = vmul.f32 %v1615_v1, %v5156_v19 }
 0x144   : > { %v2731_v26 = vadd.f32 %v2730_v17, %v2729_v23  ;;  %v2738_v58 = vrot.slane %v2737_v43, 2  ;;  %v2865_v44 = vadd.f32 %v2864_v55, %v2863_v45  ;;  %v2870_v62 = vadd.f32 %v2554_v50, %v2536_v16 }
 0x145   : > { %v1496_v41 = vpop.f32.mrb[26].mxu1  ;;  %v1621_v13 = vpop.f32.mrb[26].mxu0  ;;  %v2858_v11 = vrot.slane %v2857_v40, 2  ;;  %v2878_v57 = vadd.f32 %v2555_v5, %v2537_v29  ;;  %v2998_v33 = vadd.f32 %v2606_v24, %v2588_v8  ;;  %v2607_v35 = vmul.f32 %v1492_v25, %v5130_v49 }
 0x146   : > { %v1498_v51 = vpop.f32.mrb[27].mxu1  ;;  %v1623_v28 = vpop.f32.mrb[27].mxu0  ;;  %v2732_v6 = vrot.slane %v2731_v26, 1  ;;  %v2739_v56 = vadd.f32 %v2738_v58, %v2737_v43  ;;  %v2866_v12 = vrot.slane %v2865_v44, 2  ;;  %v2871_v21 = vadd.f32 %v2870_v62, %v2572_v4 }
 0x147   : > { %v2859_v31 = vadd.f32 %v2858_v11, %v2857_v40  ;;  %v3006_v15 = vadd.f32 %v2607_v35, %v2589_v60  ;;  %v2573_v1 = vmul.f32 %v1617_v22, %v5158_v10  ;;  %v2624_v23 = vmul.f32 %v1496_v41, %v5132_v42 }
 0x148   : > { %v2733_v16 = vadd.f32 %v2732_v6, %v2731_v26  ;;  %v2740_v55 = vrot.slane %v2739_v56, 1  ;;  %v2867_v50 = vadd.f32 %v2866_v12, %v2865_v44  ;;  %v2872_v32 = vrot.slane %v2871_v21, 4 }
 0x149   : > { %v1502_v17 = vpop.f32.mrb[28].mxu1  ;;  %v1627_v45 = vpop.f32.mrb[28].mxu0  ;;  %v2860_v5 = vrot.slane %v2859_v31, 1  ;;  %v2879_v25 = vadd.f32 %v2878_v57, %v2573_v1  ;;  %v2999_v24 = vadd.f32 %v2998_v33, %v2624_v23  ;;  %v2625_v58 = vmul.f32 %v1498_v51, %v5137_v47 }
 0x14a   : > { %v1504_v29 = vpop.f32.mrb[29].mxu1  ;;  %v1629_v8 = vpop.f32.mrb[29].mxu0  ;;  %v5433_v11 = vmul.f32 %v5192_v36, %v2733_v16  ;;  %v2741_v60 = vadd.f32 %v2740_v55, %v2739_v56  ;;  %v2868_v22 = vrot.slane %v2867_v50, 1  ;;  %v2873_v43 = vadd.f32 %v2872_v32, %v2871_v21 }
 0x14b   : > { %v2861_v40 = vadd.f32 %v2860_v5, %v2859_v31  ;;  %v2880_v4 = vrot.slane %v2879_v25, 4  ;;  %v3000_v41 = vrot.slane %v2999_v24, 4  ;;  %v3007_v26 = vadd.f32 %v3006_v15, %v2625_v58 }
 0x14c   : > { %6587 = vst [vmem:[#allocation43_spill] sm:$0xff] %v5433_v11  ;;  %v5436_v35 = vmul.f32 %v5197_v52, %v2741_v60  ;;  %v2869_v6 = vadd.f32 %v2868_v22, %v2867_v50  ;;  %v2874_v57 = vrot.slane %v2873_v43, 2  ;;  %v2642_v33 = vmul.f32 %v1502_v17, %v5062_v63 }
 0x14d   : > { %v1508_v62 = vpop.f32.mrb[30].mxu1  ;;  %v1633_v44 = vpop.f32.mrb[30].mxu0  ;;  %v5440_v1 = vmul.f32 %v5154_v9, %v2861_v40  ;;  %v2881_v56 = vadd.f32 %v2880_v4, %v2879_v25  ;;  %v3001_v21 = vadd.f32 %v3000_v41, %v2999_v24  ;;  %v3008_v32 = vrot.slane %v3007_v26, 4 }
 0x14e   : > { %v1510_v51 = vpop.f32.mrb[31].mxu1  ;;  %v1635_v12 = vpop.f32.mrb[31].mxu0  ;;  %v5443_v31 = vmul.f32 %v5186_v39, %v2869_v6  ;;  %v2875_v15 = vadd.f32 %v2874_v57, %v2873_v43  ;;  %v2590_v23 = vmul.f32 %v1621_v13, %v5139_v61  ;;  %v2643_v16 = vmul.f32 %v1504_v29, %v5065_v53 }
 0x14f   : > { %6588 = vst [vmem:[#allocation44_spill] sm:$0xff] %v5440_v1  ;;  %v2882_v50 = vrot.slane %v2881_v56, 2  ;;  %v3002_v63 = vrot.slane %v3001_v21, 2  ;;  %v3009_v17 = vadd.f32 %v3008_v32, %v3007_v26  ;;  %v2591_v24 = vmul.f32 %v1623_v28, %v5145_v54 }
 0x150   : > { %v2876_v25 = vrot.slane %v2875_v15, 1  ;;  %v2608_v22 = vmul.f32 %v1627_v45, %v5147_v0  ;;  %v2609_v53 = vmul.f32 %v1629_v8, %v5149_v7  ;;  %v2660_v26 = vmul.f32 %v1508_v62, %v5095_v59 }
 0x151   : > { %v1514_v5 = vpop.f32.mrb[32].mxu1  ;;  %v1639_v58 = vpop.f32.mrb[32].mxu0  ;;  %v2883_v4 = vadd.f32 %v2882_v50, %v2881_v56  ;;  %v3003_v13 = vadd.f32 %v3002_v63, %v3001_v21  ;;  %v3010_v41 = vrot.slane %v3009_v17, 2  ;;  %v2626_v57 = vmul.f32 %v1633_v44, %v5156_v19 }
 0x152   : > { %v1516_v40 = vpop.f32.mrb[33].mxu1  ;;  %v1641_v43 = vpop.f32.mrb[33].mxu0  ;;  %v2877_v29 = vadd.f32 %v2876_v25, %v2875_v15  ;;  %v3014_v6 = vadd.f32 %v2608_v22, %v2590_v23  ;;  %v3022_v11 = vadd.f32 %v2609_v53, %v2591_v24  ;;  %v3142_v56 = vadd.f32 %v2660_v26, %v2642_v33 }
 0x153   : > { %v2884_v32 = vrot.slane %v2883_v4, 1  ;;  %v3004_v55 = vrot.slane %v3003_v13, 1  ;;  %v3011_v60 = vadd.f32 %v3010_v41, %v3009_v17  ;;  %v2661_v50 = vmul.f32 %v1510_v51, %v5130_v49 }
 0x154   : > { %v5455_v45 = vmul.f32 %v5192_v36, %v2877_v29  ;;  %v3015_v21 = vadd.f32 %v3014_v6, %v2626_v57  ;;  %v2627_v62 = vmul.f32 %v1635_v12, %v5158_v10  ;;  %v2678_v24 = vmul.f32 %v1514_v5, %v5132_v42 }
 0x155   : > { %v1722_v28 = vpop.f32.mrb[34].mxu1  ;;  %v1645_v1 = vpop.f32.mrb[34].mxu0  ;;  %v2885_v23 = vadd.f32 %v2884_v32, %v2883_v4  ;;  %v3005_v63 = vadd.f32 %v3004_v55, %v3003_v13  ;;  %v3012_v59 = vrot.slane %v3011_v60, 1  ;;  %v3150_v25 = vadd.f32 %v2661_v50, %v2643_v16 }
 0x156   : > { %6589 = vst [vmem:[#allocation45_spill] sm:$0xff] %v5455_v45  ;;  %v1724_v8 = vpop.f32.mrb[35].mxu1  ;;  %v1647_v15 = vpop.f32.mrb[35].mxu0  ;;  %v3016_v17 = vrot.slane %v3015_v21, 4  ;;  %v3023_v51 = vadd.f32 %v3022_v11, %v2627_v62  ;;  %v3143_v13 = vadd.f32 %v3142_v56, %v2678_v24  ;;  %v2679_v12 = vmul.f32 %v1516_v40, %v5137_v47 }
 0x157   : > { %v5462_v22 = vmul.f32 %v5197_v52, %v2885_v23  ;;  %v5465_v33 = vmul.f32 %v5154_v9, %v3005_v63  ;;  %v3013_v49 = vadd.f32 %v3012_v59, %v3011_v60  ;;  %v2644_v53 = vmul.f32 %v1639_v58, %v5139_v61 }
 0x158   : > { %v3017_v55 = vadd.f32 %v3016_v17, %v3015_v21  ;;  %v3024_v26 = vrot.slane %v3023_v51, 4  ;;  %v3144_v11 = vrot.slane %v3143_v13, 4  ;;  %v3151_v57 = vadd.f32 %v3150_v25, %v2679_v12 }
 0x159   : > { %6590 = vst [vmem:[#allocation46_spill] sm:$0xff] %v5465_v33  ;;  %v1651_v41 = vpop.f32.mrb[36].mxu0  ;;  %v1728_v4 = vpop.f32.mrb[36].mxu1  ;;  %v5472_v6 = vmul.f32 %v5186_v39, %v3013_v49  ;;  %v2484_v32 = vmul.f32 %v1722_v28, %v5199_v34  ;;  %v2645_v61 = vmul.f32 %v1641_v43, %v5145_v54  ;;  %v2485_v58 = vmul.f32 %v1724_v8, %v5206_v2 }
 0x15a   : > { %v1653_v29 = vpop.f32.mrb[37].mxu0  ;;  %v1730_v16 = vpop.f32.mrb[37].mxu1  ;;  %v3018_v60 = vrot.slane %v3017_v55, 2  ;;  %v3025_v47 = vadd.f32 %v3024_v26, %v3023_v51  ;;  %v3145_v23 = vadd.f32 %v3144_v11, %v3143_v13  ;;  %v3152_v63 = vrot.slane %v3151_v57, 4 }
 0x15b   : > { %6591 = vst [vmem:[#allocation47_spill] sm:$0xff] %v5472_v6  ;;  %v2662_v59 = vmul.f32 %v1645_v1, %v5147_v0  ;;  %v2663_v28 = vmul.f32 %v1647_v15, %v5149_v7  ;;  %v2680_v24 = vmul.f32 %v1651_v41, %v5156_v19  ;;  %v2502_v54 = vmul.f32 %v1728_v4, %v5208_v27 }
 0x15c   : > { %v3019_v50 = vadd.f32 %v3018_v60, %v3017_v55  ;;  %v3026_v25 = vrot.slane %v3025_v47, 2  ;;  %v3146_v8 = vrot.slane %v3145_v23, 2  ;;  %v3153_v49 = vadd.f32 %v3152_v63, %v3151_v57 }
 0x15d   : > { %v1734_v40 = vpop.f32.mrb[38].mxu1  ;;  %v5478_v21 = vpop.f32.mrb[38].mxu0  ;;  %v3158_v51 = vadd.f32 %v2662_v59, %v2644_v53  ;;  %v3166_v55 = vadd.f32 %v2663_v28, %v2645_v61  ;;  %v2742_v13 = vadd.f32 %v2502_v54, %v2484_v32  ;;  %v2681_v26 = vmul.f32 %v1653_v29, %v5158_v10 }
 0x15e   : > { %v1736_v62 = vpop.f32.mrb[39].mxu1  ;;  %v5481_v17 = vpop.f32.mrb[39].mxu0  ;;  %v3020_v43 = vrot.slane %v3019_v50, 1  ;;  %v3027_v12 = vadd.f32 %v3026_v25, %v3025_v47  ;;  %v3147_v11 = vadd.f32 %v3146_v8, %v3145_v23  ;;  %v3154_v44 = vrot.slane %v3153_v49, 2 }
 0x15f   : > { %v3159_v5 = vadd.f32 %v3158_v51, %v2680_v24  ;;  %v3167_v41 = vadd.f32 %v3166_v55, %v2681_v26  ;;  %v2503_v4 = vmul.f32 %v1730_v16, %v5210_v3  ;;  %v2520_v57 = vmul.f32 %v1734_v40, %v5217_v20 }
 0x160   : > { %v3021_v60 = vadd.f32 %v3020_v43, %v3019_v50  ;;  %v3028_v19 = vrot.slane %v3027_v12, 1  ;;  %v3148_v32 = vrot.slane %v3147_v11, 1  ;;  %v3155_v47 = vadd.f32 %v3154_v44, %v3153_v49  ;;  %v6594_v44 = vld [vmem:[#allocation10_spill] sm:$0xff] }
 0x161   : > { %v1740_v0 = vpop.f32.mrb[40].mxu1  ;;  %v1865_v1 = vpop.f32.mrb[40].mxu0  ;;  %v3160_v10 = vrot.slane %v3159_v5, 4  ;;  %v3168_v61 = vrot.slane %v3167_v41, 4  ;;  %v2750_v50 = vadd.f32 %v2503_v4, %v2485_v58  ;;  %v2743_v23 = vadd.f32 %v2742_v13, %v2520_v57 }
 0x162   : > { %v1742_v7 = vpop.f32.mrb[41].mxu1  ;;  %v1867_v15 = vpop.f32.mrb[41].mxu0  ;;  %v5490_v53 = vmul.f32 %v5192_v36, %v3021_v60  ;;  %v3029_v29 = vadd.f32 %v3028_v19, %v3027_v12  ;;  %v3149_v28 = vadd.f32 %v3148_v32, %v3147_v11  ;;  %v3156_v24 = vrot.slane %v3155_v47, 1  ;;  %v6597_v32 = vld [vmem:[#allocation11_spill] sm:$0xff] }
 0x163   : > { %v3161_v54 = vadd.f32 %v3160_v10, %v3159_v5  ;;  %v3169_v8 = vadd.f32 %v3168_v61, %v3167_v41  ;;  %v2744_v51 = vrot.slane %v2743_v23, 4  ;;  %v2521_v49 = vmul.f32 %v1736_v62, %v6594_v44 }
 0x164   : > { %6592 = vst [vmem:[#allocation48_spill] sm:$0xff] %v5490_v53  ;;  %v5494_v40 = vmul.f32 %v5197_v52, %v3029_v29  ;;  %v5498_v12 = vmul.f32 %v5154_v9, %v3149_v28  ;;  %v3157_v58 = vadd.f32 %v3156_v24, %v3155_v47  ;;  %v2538_v13 = vmul.f32 %v1740_v0, %v5199_v34  ;;  %v6598_v24 = vld [vmem:[#allocation12_spill] sm:$0xff] }
 0x165   : > { %v1746_v63 = vpop.f32.mrb[42].mxu1  ;;  %v1871_v59 = vpop.f32.mrb[42].mxu0  ;;  %v3162_v55 = vrot.slane %v3161_v54, 2  ;;  %v3170_v60 = vrot.slane %v3169_v8, 2  ;;  %v2745_v5 = vadd.f32 %v2744_v51, %v2743_v23  ;;  %v2751_v11 = vadd.f32 %v2750_v50, %v2521_v49 }
 0x166   : > { %v1748_v16 = vpop.f32.mrb[43].mxu1  ;;  %v1873_v43 = vpop.f32.mrb[43].mxu0  ;;  %6593 = vst [vmem:[#allocation49_spill] sm:$0xff] %v5494_v40  ;;  %6595 = vst [vmem:[#allocation10_spill] sm:$0xff] %v5498_v12  ;;  %v5504_v41 = vmul.f32 %v5186_v39, %v3157_v58  ;;  %v2486_v9 = vmul.f32 %v5478_v21, %v6597_v32  ;;  %v2539_v23 = vmul.f32 %v1742_v7, %v5206_v2  ;;  %v6599_v39 = vld [vmem:[#allocation13_spill] sm:$0xff]  ;;  %v6600_v21 = vld [vmem:[#allocation15_spill] sm:$0xff] }
 0x167   : > { %v3163_v62 = vadd.f32 %v3162_v55, %v3161_v54  ;;  %v3171_v0 = vadd.f32 %v3170_v60, %v3169_v8  ;;  %v2746_v29 = vrot.slane %v2745_v5, 2  ;;  %v2752_v61 = vrot.slane %v2751_v11, 4  ;;  %v6601_v7 = vld [vmem:[#allocation16_spill] sm:$0xff] }
 0x168   : > { %6596 = vst [vmem:[#allocation50_spill] sm:$0xff] %v5504_v41  ;;  %v2487_v51 = vmul.f32 %v5481_v17, %v6598_v24  ;;  %v2504_v49 = vmul.f32 %v1865_v1, %v6599_v39  ;;  %v2505_v25 = vmul.f32 %v1867_v15, %v6600_v21  ;;  %v2556_v56 = vmul.f32 %v1746_v63, %v5208_v27 }
 0x169   : > { %v1752_v19 = vpop.f32.mrb[44].mxu1  ;;  %v1877_v4 = vpop.f32.mrb[44].mxu0  ;;  %v3164_v28 = vrot.slane %v3163_v62, 1  ;;  %v3172_v54 = vrot.slane %v3171_v0, 1  ;;  %v2747_v58 = vadd.f32 %v2746_v29, %v2745_v5  ;;  %v2753_v55 = vadd.f32 %v2752_v61, %v2751_v11  ;;  %v6604_v29 = vld [vmem:[#allocation17_spill] sm:$0xff] }
 0x16a   : > { %v1754_v47 = vpop.f32.mrb[45].mxu1  ;;  %v5508_v10 = vpop.f32.mrb[45].mxu0  ;;  %v2758_v60 = vadd.f32 %v2504_v49, %v2486_v9  ;;  %v2522_v42 = vmul.f32 %v1871_v59, %v6601_v7  ;;  %v2766_v33 = vadd.f32 %v2505_v25, %v2487_v51  ;;  %v2886_v5 = vadd.f32 %v2556_v56, %v2538_v13 }
 0x16b   : > { %v3165_v8 = vadd.f32 %v3164_v28, %v3163_v62  ;;  %v3173_v12 = vadd.f32 %v3172_v54, %v3171_v0  ;;  %v2748_v45 = vrot.slane %v2747_v58, 1  ;;  %v2754_v17 = vrot.slane %v2753_v55, 2 }
 0x16c   : > { %v2759_v11 = vadd.f32 %v2758_v60, %v2522_v42  ;;  %v2557_v15 = vmul.f32 %v1748_v16, %v5210_v3  ;;  %v2523_v59 = vmul.f32 %v1873_v43, %v6604_v29  ;;  %v6605_v16 = vld [vmem:[#allocation18_spill] sm:$0xff]  ;;  %v2575_v43 = vmul.f32 %v1754_v47, %v6594_v44  ;;  %v6607_v47 = vld [vmem:[#allocation20_spill] sm:$0xff] }
 0x16d   : > { %v1758_v57 = vpop.f32.mrb[46].mxu1  ;;  %v1883_v26 = vpop.f32.mrb[46].mxu0  ;;  %v5519_v1 = vmul.f32 %v5192_v36, %v3165_v8  ;;  %v5523_v62 = vmul.f32 %v5197_v52, %v3173_v12  ;;  %v2749_v9 = vadd.f32 %v2748_v45, %v2747_v58  ;;  %v2755_v63 = vadd.f32 %v2754_v17, %v2753_v55 }
 0x16e   : > { %v1760_v50 = vpop.f32.mrb[47].mxu1  ;;  %v1885_v53 = vpop.f32.mrb[47].mxu0  ;;  %v2760_v49 = vrot.slane %v2759_v11, 4  ;;  %v2894_v25 = vadd.f32 %v2557_v15, %v2539_v23  ;;  %v2574_v36 = vmul.f32 %v1752_v19, %v5217_v20  ;;  %v2767_v45 = vadd.f32 %v2766_v33, %v2523_v59 }
 0x16f   : > { %6602 = vst [vmem:[#allocation11_spill] sm:$0xff] %v5519_v1  ;;  %6603 = vst [vmem:[#allocation12_spill] sm:$0xff] %v5523_v62  ;;  %v5530_v13 = vmul.f32 %v6605_v16, %v2749_v9  ;;  %v2756_v52 = vrot.slane %v2755_v63, 1  ;;  %v2592_v58 = vmul.f32 %v1758_v57, %v5199_v34  ;;  %v2540_v19 = vmul.f32 %v1877_v4, %v6597_v32 }
 0x170   : > { %v2761_v12 = vadd.f32 %v2760_v49, %v2759_v11  ;;  %v2887_v54 = vadd.f32 %v2886_v5, %v2574_v36  ;;  %v2768_v8 = vrot.slane %v2767_v45, 4  ;;  %v2895_v0 = vadd.f32 %v2894_v25, %v2575_v43 }
 0x171   : > { %v1764_v61 = vpop.f32.mrb[48].mxu1  ;;  %v1889_v28 = vpop.f32.mrb[48].mxu0  ;;  %6606 = vst [vmem:[#allocation13_spill] sm:$0xff] %v5530_v13  ;;  %v2757_v23 = vadd.f32 %v2756_v52, %v2755_v63  ;;  %v2593_v33 = vmul.f32 %v1760_v50, %v5206_v2  ;;  %v2541_v63 = vmul.f32 %v5508_v10, %v6598_v24  ;;  %v2558_v4 = vmul.f32 %v1883_v26, %v6599_v39 }
 0x172   : > { %v1766_v51 = vpop.f32.mrb[49].mxu1  ;;  %v1891_v56 = vpop.f32.mrb[49].mxu0  ;;  %v2762_v15 = vrot.slane %v2761_v12, 2  ;;  %v2888_v9 = vrot.slane %v2887_v54, 4  ;;  %v2769_v57 = vadd.f32 %v2768_v8, %v2767_v45  ;;  %v2896_v52 = vrot.slane %v2895_v0, 4 }
 0x173   : > { %v5542_v59 = vmul.f32 %v6607_v47, %v2757_v23  ;;  %v2559_v55 = vmul.f32 %v1885_v53, %v6600_v21  ;;  %v2902_v43 = vadd.f32 %v2558_v4, %v2540_v19  ;;  %v2610_v42 = vmul.f32 %v1764_v61, %v5208_v27 }
 0x174   : > { %v2763_v49 = vadd.f32 %v2762_v15, %v2761_v12  ;;  %v2889_v36 = vadd.f32 %v2888_v9, %v2887_v54  ;;  %v2770_v50 = vrot.slane %v2769_v57, 2  ;;  %v2897_v8 = vadd.f32 %v2896_v52, %v2895_v0 }
 0x175   : > { %v1770_v60 = vpop.f32.mrb[50].mxu1  ;;  %v5536_v17 = vpop.f32.mrb[50].mxu0  ;;  %6608 = vst [vmem:[#allocation15_spill] sm:$0xff] %v5542_v59  ;;  %v2910_v62 = vadd.f32 %v2559_v55, %v2541_v63  ;;  %v3030_v12 = vadd.f32 %v2610_v42, %v2592_v58  ;;  %v2576_v54 = vmul.f32 %v1889_v28, %v6601_v7  ;;  %v2611_v53 = vmul.f32 %v1766_v51, %v5210_v3  ;;  %v6609_v63 = vld [vmem:[#allocation22_spill] sm:$0xff] }
 0x176   : > { %v1772_v11 = vpop.f32.mrb[51].mxu1  ;;  %v5539_v5 = vpop.f32.mrb[51].mxu0  ;;  %v2764_v13 = vrot.slane %v2763_v49, 1  ;;  %v2890_v45 = vrot.slane %v2889_v36, 2  ;;  %v2771_v26 = vadd.f32 %v2770_v50, %v2769_v57  ;;  %v2898_v25 = vrot.slane %v2897_v8, 2 }
 0x177   : > { %v2577_v19 = vmul.f32 %v1891_v56, %v6604_v29  ;;  %v2903_v4 = vadd.f32 %v2902_v43, %v2576_v54  ;;  %v3038_v59 = vadd.f32 %v2611_v53, %v2593_v33  ;;  %v2628_v41 = vmul.f32 %v1770_v60, %v5217_v20 }
 0x178   : > { %v2765_v15 = vadd.f32 %v2764_v13, %v2763_v49  ;;  %v2891_v9 = vadd.f32 %v2890_v45, %v2889_v36  ;;  %v2772_v61 = vrot.slane %v2771_v26, 1  ;;  %v2899_v58 = vadd.f32 %v2898_v25, %v2897_v8  ;;  %v6611_v45 = vld [vmem:[#allocation24_spill] sm:$0xff] }
 0x179   : > { %v1776_v1 = vpop.f32.mrb[52].mxu1  ;;  %v1901_v23 = vpop.f32.mrb[52].mxu0  ;;  %v2911_v28 = vadd.f32 %v2910_v62, %v2577_v19  ;;  %v2904_v49 = vrot.slane %v2903_v4, 4  ;;  %v3031_v36 = vadd.f32 %v3030_v12, %v2628_v41  ;;  %v2629_v56 = vmul.f32 %v1772_v11, %v6594_v44 }
 0x17a   : > { %v1778_v10 = vpop.f32.mrb[53].mxu1  ;;  %v1903_v40 = vpop.f32.mrb[53].mxu0  ;;  %v5555_v52 = vmul.f32 %v6609_v63, %v2765_v15  ;;  %v2892_v42 = vrot.slane %v2891_v9, 1  ;;  %v2773_v13 = vadd.f32 %v2772_v61, %v2771_v26  ;;  %v2900_v43 = vrot.slane %v2899_v58, 1 }
 0x17b   : > { %v2912_v33 = vrot.slane %v2911_v28, 4  ;;  %v2646_v60 = vmul.f32 %v1776_v1, %v5199_v34  ;;  %v2905_v53 = vadd.f32 %v2904_v49, %v2903_v4  ;;  %v3032_v15 = vrot.slane %v3031_v36, 4 }
 0x17c   : > { %6610 = vst [vmem:[#allocation16_spill] sm:$0xff] %v5555_v52  ;;  %v2893_v50 = vadd.f32 %v2892_v42, %v2891_v9  ;;  %v5560_v54 = vmul.f32 %v6611_v45, %v2773_v13  ;;  %v3039_v52 = vadd.f32 %v3038_v59, %v2629_v56  ;;  %v2901_v41 = vadd.f32 %v2900_v43, %v2899_v58 }
 0x17d   : > { %v1782_v0 = vpop.f32.mrb[54].mxu1  ;;  %v1907_v55 = vpop.f32.mrb[54].mxu0  ;;  %v2913_v26 = vadd.f32 %v2912_v33, %v2911_v28  ;;  %v2594_v11 = vmul.f32 %v5536_v17, %v6597_v32  ;;  %v2906_v34 = vrot.slane %v2905_v53, 2  ;;  %v3033_v1 = vadd.f32 %v3032_v15, %v3031_v36 }
 0x17e   : > { %v1784_v57 = vpop.f32.mrb[55].mxu1  ;;  %v1909_v51 = vpop.f32.mrb[55].mxu0  ;;  %6612 = vst [vmem:[#allocation17_spill] sm:$0xff] %v5560_v54  ;;  %v5565_v8 = vmul.f32 %v6605_v16, %v2893_v50  ;;  %v3040_v19 = vrot.slane %v3039_v52, 4  ;;  %v2647_v61 = vmul.f32 %v1778_v10, %v5206_v2  ;;  %v5574_v4 = vmul.f32 %v6607_v47, %v2901_v41 }
 0x17f   : > { %v2914_v42 = vrot.slane %v2913_v26, 2  ;;  %v2595_v58 = vmul.f32 %v5539_v5, %v6598_v24  ;;  %v2907_v28 = vadd.f32 %v2906_v34, %v2905_v53  ;;  %v3034_v13 = vrot.slane %v3033_v1, 2 }
 0x180   : > { %6613 = vst [vmem:[#allocation18_spill] sm:$0xff] %v5565_v8  ;;  %v3041_v17 = vadd.f32 %v3040_v19, %v3039_v52  ;;  %v2612_v49 = vmul.f32 %v1901_v23, %v6599_v39  ;;  %v2613_v10 = vmul.f32 %v1903_v40, %v6600_v21  ;;  %v2664_v43 = vmul.f32 %v1782_v0, %v5208_v27 }
 0x181   : > { %v1788_v25 = vpop.f32.mrb[56].mxu1  ;;  %v5562_v62 = vpop.f32.mrb[56].mxu0  ;;  %v2915_v2 = vadd.f32 %v2914_v42, %v2913_v26  ;;  %v2908_v41 = vrot.slane %v2907_v28, 1  ;;  %v3035_v59 = vadd.f32 %v3034_v13, %v3033_v1  ;;  %v2630_v23 = vmul.f32 %v1907_v55, %v6601_v7 }
 0x182   : > { %v1790_v12 = vpop.f32.mrb[57].mxu1  ;;  %v5569_v9 = vpop.f32.mrb[57].mxu0  ;;  %v3042_v5 = vrot.slane %v3041_v17, 2  ;;  %v3046_v53 = vadd.f32 %v2612_v49, %v2594_v11  ;;  %v3054_v52 = vadd.f32 %v2613_v10, %v2595_v58  ;;  %v3174_v19 = vadd.f32 %v2664_v43, %v2646_v60 }
 0x183   : > { %v2916_v34 = vrot.slane %v2915_v2, 1  ;;  %v2909_v54 = vadd.f32 %v2908_v41, %v2907_v28  ;;  %v3036_v8 = vrot.slane %v3035_v59, 1  ;;  %v2665_v26 = vmul.f32 %v1784_v57, %v5210_v3 }
 0x184   : > { %v3043_v6 = vadd.f32 %v3042_v5, %v3041_v17  ;;  %v3047_v27 = vadd.f32 %v3046_v53, %v2630_v23  ;;  %v2631_v0 = vmul.f32 %v1909_v51, %v6604_v29  ;;  %v2682_v1 = vmul.f32 %v1788_v25, %v5217_v20 }
 0x185   : > { %v1996_v56 = vpop.f32.mrb[58].mxu1  ;;  %v5579_v50 = vpop.f32.mrb[58].mxu0  ;;  %v2917_v36 = vadd.f32 %v2916_v34, %v2915_v2  ;;  %v5591_v60 = vmul.f32 %v6609_v63, %v2909_v54  ;;  %v3037_v55 = vadd.f32 %v3036_v8, %v3035_v59  ;;  %v3182_v28 = vadd.f32 %v2665_v26, %v2647_v61 }
 0x186   : > { %v1998_v33 = vpop.f32.mrb[59].mxu1  ;;  %v1921_v15 = vpop.f32.mrb[59].mxu0  ;;  %v3044_v58 = vrot.slane %v3043_v6, 1  ;;  %v3048_v3 = vrot.slane %v3047_v27, 4  ;;  %v3055_v57 = vadd.f32 %v3054_v52, %v2631_v0  ;;  %v3175_v49 = vadd.f32 %v3174_v19, %v2682_v1  ;;  %v6616_v19 = vld [vmem:[#allocation25_spill] sm:$0xff]  ;;  %v6617_v1 = vld [vmem:[#allocation27_spill] sm:$0xff] }
 0x187   : > { %6614 = vst [vmem:[#allocation20_spill] sm:$0xff] %v5591_v60  ;;  %v5594_v17 = vmul.f32 %v6611_v45, %v2917_v36  ;;  %v5598_v51 = vmul.f32 %v6605_v16, %v3037_v55  ;;  %v2683_v25 = vmul.f32 %v1790_v12, %v6594_v44  ;;  %v2648_v44 = vmul.f32 %v5562_v62, %v6597_v32 }
 0x188   : > { %v3045_v20 = vadd.f32 %v3044_v58, %v3043_v6  ;;  %v3049_v61 = vadd.f32 %v3048_v3, %v3047_v27  ;;  %v3056_v59 = vrot.slane %v3055_v57, 4  ;;  %v3176_v36 = vrot.slane %v3175_v49, 4 }
 0x189   : > { %v1925_v42 = vpop.f32.mrb[60].mxu0  ;;  %v2002_v40 = vpop.f32.mrb[60].mxu1  ;;  %6615 = vst [vmem:[#allocation22_spill] sm:$0xff] %v5594_v17  ;;  %v3183_v6 = vadd.f32 %v3182_v28, %v2683_v25  ;;  %v2488_v23 = vmul.f32 %v1996_v56, %v6616_v19  ;;  %v2649_v0 = vmul.f32 %v5569_v9, %v6598_v24  ;;  %v2489_v55 = vmul.f32 %v1998_v33, %v6617_v1  ;;  %v6618_v9 = vld [vmem:[#allocation28_spill] sm:$0xff] }
 0x18a   : > { %v1927_v13 = vpop.f32.mrb[61].mxu0  ;;  %v5588_v11 = vpop.f32.mrb[61].mxu1  ;;  %v5610_v53 = vmul.f32 %v6607_v47, %v3045_v20  ;;  %v3050_v12 = vrot.slane %v3049_v61, 2  ;;  %v3057_v34 = vadd.f32 %v3056_v59, %v3055_v57  ;;  %v3177_v52 = vadd.f32 %v3176_v36, %v3175_v49 }
 0x18b   : > { %v3184_v27 = vrot.slane %v3183_v6, 4  ;;  %v2666_v62 = vmul.f32 %v5579_v50, %v6599_v39  ;;  %v2667_v25 = vmul.f32 %v1921_v15, %v6600_v21  ;;  %v2684_v24 = vmul.f32 %v1925_v42, %v6601_v7 }
 0x18c   : > { %v3051_v28 = vadd.f32 %v3050_v12, %v3049_v61  ;;  %v3058_v20 = vrot.slane %v3057_v34, 2  ;;  %v3178_v32 = vrot.slane %v3177_v52, 2  ;;  %v2506_v33 = vmul.f32 %v2002_v40, %v6618_v9 }
 0x18d   : > { %v2008_v10 = vpop.f32.mrb[62].mxu1  ;;  %v5601_v54 = vpop.f32.mrb[62].mxu0  ;;  %v3185_v49 = vadd.f32 %v3184_v27, %v3183_v6  ;;  %v3190_v61 = vadd.f32 %v2666_v62, %v2648_v44  ;;  %v3198_v8 = vadd.f32 %v2667_v25, %v2649_v0  ;;  %v2685_v39 = vmul.f32 %v1927_v13, %v6604_v29 }
 0x18e   : > { %v5604_v43 = vpop.f32.mrb[63].mxu1  ;;  %v5606_v41 = vpop.f32.mrb[63].mxu0  ;;  %v3052_v59 = vrot.slane %v3051_v28, 1  ;;  %v3059_v36 = vadd.f32 %v3058_v20, %v3057_v34  ;;  %v3179_v2 = vadd.f32 %v3178_v32, %v3177_v52  ;;  %v2774_v5 = vadd.f32 %v2506_v33, %v2488_v23  ;;  %v6619_v34 = vld [vmem:[#allocation30_spill] sm:$0xff]  ;;  %v6620_v52 = vld [vmem:[#allocation31_spill] sm:$0xff] }
 0x18f   : > { %v3186_v12 = vrot.slane %v3185_v49, 2  ;;  %v3191_v21 = vadd.f32 %v3190_v61, %v2684_v24  ;;  %v3199_v40 = vadd.f32 %v3198_v8, %v2685_v39  ;;  %v2507_v44 = vmul.f32 %v5588_v11, %v6619_v34 }
 0x190   : > { %v3053_v60 = vadd.f32 %v3052_v59, %v3051_v28  ;;  %v3060_v6 = vrot.slane %v3059_v36, 1  ;;  %v3180_v27 = vrot.slane %v3179_v2, 1  ;;  %v2524_v23 = vmul.f32 %v2008_v10, %v6620_v52 }
 0x191   : > { %v5619_v58 = vpop.f32.mrb[64].mxu1  ;;  %v5621_v3 = vpop.f32.mrb[64].mxu0  ;;  %v3187_v42 = vadd.f32 %v3186_v12, %v3185_v49  ;;  %v3192_v28 = vrot.slane %v3191_v21, 4  ;;  %v3200_v32 = vrot.slane %v3199_v40, 4  ;;  %v2782_v62 = vadd.f32 %v2507_v44, %v2489_v55 }
 0x192   : > { %v5625_v57 = vpop.f32.mrb[65].mxu1  ;;  %v5627_v56 = vpop.f32.mrb[65].mxu0  ;;  %v5643_v29 = vmul.f32 %v6609_v63, %v3053_v60  ;;  %v3061_v13 = vadd.f32 %v3060_v6, %v3059_v36  ;;  %v3181_v0 = vadd.f32 %v3180_v27, %v3179_v2  ;;  %v2775_v25 = vadd.f32 %v2774_v5, %v2524_v23  ;;  %v6623_v36 = vld [vmem:[#allocation9_spill] sm:$0xff]  ;;  %v6624_v27 = vld [vmem:[#allocation32_spill] sm:$0xff] }
 0x193   : > { %v3188_v20 = vrot.slane %v3187_v42, 1  ;;  %v3193_v60 = vadd.f32 %v3192_v28, %v3191_v21  ;;  %v3201_v55 = vadd.f32 %v3200_v32, %v3199_v40  ;;  %v5662_v61 = vrot.slane %v5360_v37, %v6623_v36 }
 0x194   : > { %6621 = vst [vmem:[#allocation24_spill] sm:$0xff] %v5643_v29  ;;  %v5651_v11 = vmul.f32 %v6611_v45, %v3061_v13  ;;  %v5654_v10 = vmul.f32 %v6605_v16, %v3181_v0  ;;  %v2776_v5 = vrot.slane %v2775_v25, 4  ;;  %v2525_v16 = vmul.f32 %v5604_v43, %v6624_v27 }
 0x195   : > { %v2020_v50 = vpop.f32.mrb[66].mxu1  ;;  %v5633_v26 = vpop.f32.mrb[66].mxu0  ;;  %v3189_v59 = vadd.f32 %v3188_v20, %v3187_v42  ;;  %v3194_v6 = vrot.slane %v3193_v60, 2  ;;  %v3202_v44 = vrot.slane %v3201_v55, 2  ;;  %v5673_v42 = vrot.slane %v5366_v48, %v6623_v36  ;;  %v6625_v20 = vld [vmem:[#allocation34_spill] sm:$0xff] }
 0x196   : > { %v5635_v15 = vpop.f32.mrb[67].mxu1  ;;  %v5637_v7 = vpop.f32.mrb[67].mxu0  ;;  %6622 = vst [vmem:[#allocation25_spill] sm:$0xff] %v5651_v11  ;;  %v2777_v23 = vadd.f32 %v2776_v5, %v2775_v25  ;;  %v2783_v0 = vadd.f32 %v2782_v62, %v2525_v16  ;;  %v2542_v28 = vmul.f32 %v5619_v58, %v6616_v19  ;;  %v2490_v43 = vmul.f32 %v5601_v54, %v6625_v20  ;;  %v5705_v11 = vld [vmem:[%s4443_s24 + $0x38] sm:$0x7] }
 0x197   : > { %v5669_v21 = vmul.f32 %v6607_v47, %v3189_v59  ;;  %v3195_v13 = vadd.f32 %v3194_v6, %v3193_v60  ;;  %v3203_v25 = vadd.f32 %v3202_v44, %v3201_v55  ;;  %v2543_v5 = vmul.f32 %v5625_v57, %v6617_v1  ;;  %6628 = vst [vmem:[#allocation27_spill] sm:$0xff] %v5705_v11 }
 0x198   : > { %v2778_v59 = vrot.slane %v2777_v23, 2  ;;  %v2784_v60 = vrot.slane %v2783_v0, 4  ;;  %v2491_v58 = vmul.f32 %v5606_v41, %v5345_v46  ;;  %v2508_v54 = vmul.f32 %v5621_v3, %v5353_v18  ;;  %v6627_v41 = vld [vmem:[#allocation33_spill] sm:$0xff] }
 0x199   : > { %v5645_v24 = vpop.f32.mrb[68].mxu1  ;;  %v5647_v33 = vpop.f32.mrb[68].mxu0  ;;  %v3196_v62 = vrot.slane %v3195_v13, 1  ;;  %v3204_v6 = vrot.slane %v3203_v25, 1  ;;  %v6626_v8 = vsub.f32 1.0, %v5347_v14  ;;  %v2560_v55 = vmul.f32 %v2020_v50, %v6618_v9 }
 0x19a   : > { %v5656_v49 = vpop.f32.mrb[69].mxu1  ;;  %v5658_v2 = vpop.f32.mrb[69].mxu0  ;;  %v2779_v16 = vadd.f32 %v2778_v59, %v2777_v23  ;;  %v2785_v48 = vadd.f32 %v2784_v60, %v2783_v0  ;;  %v2790_v29 = vadd.f32 %v2508_v54, %v2490_v43  ;;  %4191 = vpow2.f32 %v6627_v41  ;;  %v6632_v0 = vld [vmem:[#allocation26_spill] sm:$0xff]  ;;  %v6633_v43 = vld [vmem:[#allocation7_spill] sm:$0xff] }
 0x19b   : > { %v5696_v12 = vmax.f32 %v6626_v8, 0.0  ;;  %v3197_v39 = vadd.f32 %v3196_v62, %v3195_v13  ;;  %v3205_v14 = vadd.f32 %v3204_v6, %v3203_v25  ;;  %v2918_v59 = vadd.f32 %v2560_v55, %v2542_v28 }
 0x19c   : > { %v2780_v8 = vrot.slane %v2779_v16, 1  ;;  %v2786_v13 = vrot.slane %v2785_v48, 2  ;;  %v697_v62 = vsub.f32 %v6633_v43, %v6632_v0  ;;  %v2561_v60 = vmul.f32 %v5635_v15, %v6619_v34 }
 0x19d   : > { %v5675_v40 = vpop.f32.mrb[70].mxu1  ;;  %v5677_v37 = vpop.f32.mrb[70].mxu0  ;;  %v2509_v50 = vmul.f32 %v5627_v56, %v5696_v12  ;;  %v5714_v17 = vmul.f32 %v6609_v63, %v3197_v39  ;;  %v5721_v54 = vmul.f32 %v6611_v45, %v3205_v14  ;;  %v455_v6 = vrot.slane %v5705_v11, 6 }
 0x19e   : > { %v5683_v47 = vpop.f32.mrb[71].mxu1  ;;  %v5685_v32 = vpop.f32.mrb[71].mxu0  ;;  %v2781_v41 = vadd.f32 %v2780_v8, %v2779_v16  ;;  %v2787_v39 = vadd.f32 %v2786_v13, %v2785_v48  ;;  %v751_v28 = vand.u32 2147483647, %v697_v62  ;;  %v2926_v55 = vadd.f32 %v2561_v60, %v2543_v5  ;;  %v6636_v16 = vld [vmem:[#allocation29_spill] sm:$0xff]  ;;  %v6637_v60 = vld [vmem:[#allocation39_spill] sm:$0xff] }
 0x19f   : > { %6631 = vst [vmem:[#allocation31_spill] sm:$0xff] %v5714_v17  ;;  %6634 = vst [vmem:[#allocation9_spill] sm:$0xff] %v5721_v54  ;;  %v2798_v25 = vadd.f32 %v2509_v50, %v2491_v58  ;;  %v3880_v58 = vmul.f32 -1.442695, %v455_v6  ;;  %v698_v14 = vsub.f32 %v6633_v43, %v6636_v16  ;;  %v2578_v48 = vmul.f32 %v5645_v24, %v6620_v52 }
 0x1a0   : > { %v5735_v15 = vmul.f32 %v5662_v61, %v2781_v41  ;;  %v2788_v8 = vrot.slane %v2787_v39, 1  ;;  %v805_v50 = vsub.f32 1.0, %v751_v28  ;;  %v2579_v5 = vmul.f32 %v5656_v49, %v6624_v27 }
 0x1a1   : > { %v5699_v44 = vpop.f32.mrb[72].mxu1  ;;  %v5701_v57 = vpop.f32.mrb[72].mxu0  ;;  %4193 = vpow2.f32 %v3880_v58  ;;  %v752_v62 = vand.u32 2147483647, %v698_v14  ;;  %v6638_v41 = vrot.slane %v6637_v60, 7  ;;  %v2919_v24 = vadd.f32 %v2918_v59, %v2578_v48  ;;  %v6641_v48 = vld [vmem:[#allocation37_spill] sm:$0xff] }
 0x1a2   : > { %v5707_v3 = vpop.f32.mrb[73].mxu1  ;;  %v5709_v23 = vpop.f32.mrb[73].mxu0  ;;  %6635 = vst [vmem:[#allocation32_spill] sm:$0xff] %v5735_v15  ;;  %v2789_v28 = vadd.f32 %v2788_v8, %v2787_v39  ;;  %v5752_v45 = vmax.f32 %v805_v50, 0.0  ;;  %v2927_v17 = vadd.f32 %v2926_v55, %v2579_v5  ;;  %v6639_v14 = vrot.slane %v5406_v30, 6 }
 0x1a3   : > { %6629 = vst [vmem:[#allocation28_spill] sm:$0xff] %v5707_v3  ;;  %6630 = vst [vmem:[#allocation30_spill] sm:$0xff] %v5709_v23  ;;  %v3432_v6 = vsel %vm3423_vm2, %v6638_v41, %v5363_v38  ;;  %v806_v58 = vsub.f32 1.0, %v752_v62  ;;  %v2920_v59 = vrot.slane %v2919_v24, 4  ;;  %v6642_v5 = vrot.slane %v6641_v48, 5 }
 0x1a4   : > { %v3434_v60 = vsel %vm3426_vm3, %v6639_v14, %v3432_v6  ;;  %v4192_v38 = vpop.eup %4191  ;;  %v5762_v41 = vmul.f32 %v5673_v42, %v2789_v28  ;;  %v2526_v39 = vmul.f32 %v5633_v26, %v5752_v45  ;;  %v2928_v55 = vrot.slane %v2927_v17, 4 }
 0x1a5   : > { %v5724_v23 = vpop.f32.mrb[74].mxu1  ;;  %v5726_v56 = vpop.f32.mrb[74].mxu0  ;;  %v528_v8 = vadd.f32 1.0, %v4192_v38  ;;  %v5766_v50 = vmax.f32 %v806_v58, 0.0  ;;  %v3436_v30 = vsel %vm3429_vm4, %v6642_v5, %v3434_v60  ;;  %v2921_v13 = vadd.f32 %v2920_v59, %v2919_v24  ;;  %v6645_v38 = vld [vmem:[#allocation42_spill] sm:$0xff]  ;;  %v6649_v59 = vld [vmem:[#allocation47_spill] sm:$0xff] }
 0x1a6   : > { %v5729_v0 = vpop.f32.mrb[75].mxu1  ;;  %v5731_v3 = vpop.f32.mrb[75].mxu0  ;;  %6640 = vst [vmem:[#allocation34_spill] sm:$0xff] %v5762_v41  ;;  %v2791_v14 = vadd.f32 %v2790_v29, %v2526_v39  ;;  %v2929_v15 = vadd.f32 %v2928_v55, %v2927_v17  ;;  %v6646_v60 = vrot.slane %v6645_v38, 4  ;;  %v6647_v48 = vrot.slane %v5443_v31, 3  ;;  %v6653_v31 = vld [vmem:[#allocation49_spill] sm:$0xff] }
 0x1a7   : > { %4195 = vrcp.f32 %v528_v8  ;;  %v2527_v58 = vmul.f32 %v5637_v7, %v5766_v50  ;;  %v6648_v28 = vrot.slane %v5462_v22, 7  ;;  %v2922_v24 = vrot.slane %v2921_v13, 2  ;;  %v6651_v7 = vld [vmem:[#allocation50_spill] sm:$0xff] }
 0x1a8   : > { %v3459_v5 = vsel %vm3449_vm5, %v6647_v48, %v6646_v60  ;;  %v2792_v17 = vrot.slane %v2791_v14, 4  ;;  %v2930_v39 = vrot.slane %v2929_v15, 2  ;;  %v6650_v55 = vrot.slane %v6649_v59, 2  ;;  %v6655_v48 = vld [vmem:[#allocation15_spill] sm:$0xff] }
 0x1a9   : > { %v5748_v63 = vpop.f32.mrb[76].mxu1  ;;  %v5750_v16 = vpop.f32.mrb[76].mxu0  ;;  %v3481_v29 = vsel %vm3423_vm2, %v6648_v28, %v5436_v35  ;;  %v2799_v41 = vadd.f32 %v2798_v25, %v2527_v58  ;;  %v6652_v43 = vrot.slane %v6651_v7, 1  ;;  %v6656_v22 = vrot.slane %v6655_v48, 4 }
 0x1aa   : > { %v5754_v54 = vpop.f32.mrb[77].mxu1  ;;  %v5756_v49 = vpop.f32.mrb[77].mxu0  ;;  %v3461_v8 = vsel %vm3452_vm6, %v6650_v55, %v3459_v5  ;;  %v6657_v35 = vrot.slane %v5574_v4, 3  ;;  %v2793_v5 = vadd.f32 %v2792_v17, %v2791_v14  ;;  %v2923_v25 = vadd.f32 %v2922_v24, %v2921_v13  ;;  %v6659_v55 = vld [vmem:[#allocation12_spill] sm:$0xff] }
 0x1ab   : > { %v3463_v38 = vsel %vm3455_vm7, %v6652_v43, %v3461_v8  ;;  %v2931_v58 = vadd.f32 %v2930_v39, %v2929_v15  ;;  %v6660_v7 = vrot.slane %v6659_v55, 5  ;;  %v6663_v4 = vrot.slane %v5610_v53, 2  ;;  %v6668_v53 = vld [vmem:[#allocation40_spill] sm:$0xff] }
 0x1ac   : > { %v3505_v28 = vsel %vm3449_vm5, %v6657_v35, %v6656_v22  ;;  %v6664_v22 = vld [vmem:[#allocation35_spill] sm:$0xff]  ;;  %v6665_v35 = vld [vmem:[#allocation38_spill] sm:$0xff]  ;;  %v2794_v13 = vrot.slane %v2793_v5, 2  ;;  %v2924_v24 = vrot.slane %v2923_v25, 1  ;;  %v6667_v55 = vrot.slane %v5669_v21, 1 }
 0x1ad   : > { %v5771_v62 = vpop.f32.mrb[78].mxu1  ;;  %v5773_v6 = vpop.f32.mrb[78].mxu0  ;;  %v3507_v48 = vsel %vm3452_vm6, %v6663_v4, %v3505_v28  ;;  %v6666_v14 = vrot.slane %v6665_v35, 7  ;;  %v2932_v39 = vrot.slane %v2931_v58, 1 }
 0x1ae   : > { %v5776_v26 = vpop.f32.mrb[79].mxu1  ;;  %v5778_v11 = vpop.f32.mrb[79].mxu0 }
 0x1af   : > { %6643 = vst [vmem:[#allocation33_spill] sm:$0xff] %v5776_v26  ;;  %6644 = vst [vmem:[#allocation26_spill] sm:$0xff] %v5778_v11  ;;  %v6654_v11 = vrot.slane %v6653_v31, 6  ;;  %v2800_v31 = vrot.slane %v2799_v41, 4  ;;  %v3424_v15 = vsel %vm3423_vm2, %v6666_v14, %v6664_v22  ;;  %v2795_v22 = vadd.f32 %v2794_v13, %v2793_v5 }
 0x1b0   : > { %v2933_v14 = vadd.f32 %v2932_v39, %v2931_v58  ;;  %v6680_v39 = vld [vmem:[#allocation46_spill] sm:$0xff] }
 0x1b1   : > { %v3483_v60 = vsel %vm3426_vm3, %v6654_v11, %v3481_v29  ;;  %v5805_v26 = vpop.f32.mrb[80].mxu1  ;;  %v5807_v59 = vpop.f32.mrb[80].mxu0  ;;  %v2796_v13 = vrot.slane %v2795_v22, 1 }
 0x1b2   : > { %6658 = vst [vmem:[#allocation29_spill] sm:$0xff] %v5807_v59  ;;  %v3485_v43 = vsel %vm3429_vm4, %v6660_v7, %v3483_v60  ;;  %v5812_v8 = vpop.f32.mrb[81].mxu1  ;;  %v5814_v11 = vpop.f32.mrb[81].mxu0  ;;  %v2801_v60 = vadd.f32 %v2800_v31, %v2799_v41  ;;  %v3509_v7 = vsel %vm3455_vm7, %v6667_v55, %v3507_v48  ;;  %v6669_v59 = vrot.slane %v6668_v53, 6  ;;  %v6676_v55 = vld [vmem:[#allocation44_spill] sm:$0xff] }
 0x1b3   : > { %6661 = vst [vmem:[#allocation39_spill] sm:$0xff] %v5812_v8  ;;  %6662 = vst [vmem:[#allocation37_spill] sm:$0xff] %v5814_v11  ;;  %v4194_v29 = vpop.eup %4193  ;;  %v3626_v11 = vsel %vm3624_vm8, %v3436_v30, %v3463_v38  ;;  %v3628_v31 = vsel %vm3624_vm8, %v3485_v43, %v3509_v7  ;;  %v6672_v30 = vld [vmem:[#allocation36_spill] sm:$0xff]  ;;  %v6677_v53 = vrot.slane %v6676_v55, 3  ;;  %v5851_v58 = vmul.f32 %v5673_v42, %v2933_v14 }
 0x1b4   : > { %v529_v17 = vadd.f32 1.0, %v4194_v29  ;;  %v3427_v28 = vsel %vm3426_vm3, %v6669_v59, %v3424_v15  ;;  %v2925_v29 = vadd.f32 %v2924_v24, %v2923_v25  ;;  %v2802_v21 = vrot.slane %v2801_v60, 2  ;;  %v6674_v59 = vld [vmem:[#allocation41_spill] sm:$0xff]  ;;  %v4196_v24 = vpop.eup %4195 }
 0x1b5   : > { %v5830_v4 = vpop.f32.mrb[82].mxu1  ;;  %v5832_v35 = vpop.f32.mrb[82].mxu0  ;;  %v6673_v38 = vrot.slane %v6672_v30, 5  ;;  %v6675_v15 = vrot.slane %v6674_v59, 4  ;;  %6679 = vst [vmem:[#allocation49_spill] sm:$0xff] %v5851_v58  ;;  %v6681_v7 = vrot.slane %v6680_v39, 2 }
 0x1b6   : > { %6670 = vst [vmem:[#allocation42_spill] sm:$0xff] %v5830_v4  ;;  %4197 = vrcp.f32 %v529_v17  ;;  %v5834_v8 = vpop.f32.mrb[83].mxu1  ;;  %v5836_v41 = vpop.f32.mrb[83].mxu0  ;;  %v5848_v25 = vmul.f32 %v5662_v61, %v2925_v29  ;;  %v4056_v17 = vpack.c.bf16 %v3628_v31, %v3626_v11  ;;  %v2803_v43 = vadd.f32 %v2802_v21, %v2801_v60  ;;  %v6682_v30 = vld [vmem:[#allocation43_spill] sm:$0xff] }
 0x1b7   : > { %6671 = vst [vmem:[#allocation47_spill] sm:$0xff] %v5834_v8  ;;  %v3430_v48 = vsel %vm3429_vm4, %v6673_v38, %v3427_v28  ;;  %v3450_v5 = vsel %vm3449_vm5, %v6677_v53, %v6675_v15  ;;  %v6683_v38 = vld [vmem:[#allocation45_spill] sm:$0xff]  ;;  %v6687_v8 = vld [vmem:[#allocation18_spill] sm:$0xff]  ;;  %v2797_v60 = vadd.f32 %v2796_v13, %v2795_v22  ;;  %v5870_v21 = vrot.slane %v4196_v24, %v6623_v36 }
 0x1b8   : > { %6678 = vst [vmem:[#allocation50_spill] sm:$0xff] %v5848_v25  ;;  %v3453_v28 = vsel %vm3452_vm6, %v6681_v7, %v3450_v5  ;;  %v6684_v59 = vrot.slane %v6683_v38, 7  ;;  %v6685_v15 = vld [vmem:[#allocation13_spill] sm:$0xff]  ;;  %v6688_v29 = vrot.slane %v6687_v8, 3  ;;  %4057 = vmatprep.subr.bf16.mxu1 %v4056_v17  ;;  %v2804_v8 = vrot.slane %v2803_v43, 1  ;;  %v6695_v17 = vld [vmem:[#allocation11_spill] sm:$0xff] }
 0x1b9   : > { %v6686_v53 = vrot.slane %v6685_v15, 4  ;;  %v5865_v14 = vpop.f32.mrb[84].mxu0  ;;  %v5867_v11 = vpop.f32.mrb[84].mxu1  ;;  %v6691_v15 = vld [vmem:[#allocation48_spill] sm:$0xff]  ;;  %v6693_v13 = vrot.slane %v5598_v51, 2  ;;  %v6696_v31 = vrot.slane %v6695_v17, 5  ;;  %v2596_v51 = vmul.f32 %v5675_v40, %v6616_v19 }
 0x1ba   : > { %v3475_v55 = vsel %vm3423_vm2, %v6684_v59, %v6682_v30  ;;  %v5874_v39 = vpop.f32.mrb[85].mxu0  ;;  %v5876_v7 = vpop.f32.mrb[85].mxu1  ;;  %v6689_v30 = vld [vmem:[#allocation10_spill] sm:$0xff]  ;;  %v6697_v25 = vrot.slane %v5654_v10, 1  ;;  %v2597_v10 = vmul.f32 %v5683_v47, %v6617_v1  ;;  %v6698_v47 = vld [vmem:[#allocation28_spill] sm:$0xff] }
 0x1bb   : > { %v3498_v4 = vsel %vm3449_vm5, %v6688_v29, %v6686_v53  ;;  %v6690_v38 = vrot.slane %v6689_v30, 1  ;;  %v6692_v53 = vrot.slane %v6691_v15, 6  ;;  %v5888_v29 = vmul.f32 %v5870_v21, %v2797_v60 }
 0x1bc   : > { %v3500_v24 = vsel %vm3452_vm6, %v6693_v13, %v3498_v4  ;;  %v2544_v4 = vmul.f32 %v5647_v33, %v6625_v20  ;;  %v2563_v33 = vmul.f32 %v5685_v32, %v5696_v12  ;;  %v2632_v13 = vmul.f32 %v5724_v23, %v6620_v52 }
 0x1bd   : > { %v3456_v59 = vsel %vm3455_vm7, %v6690_v38, %v3453_v28  ;;  %v3477_v22 = vsel %vm3426_vm3, %v6692_v53, %v3475_v55  ;;  %6694 = vst [vmem:[#allocation15_spill] sm:$0xff] %v5888_v29  ;;  %v3502_v30 = vsel %vm3455_vm7, %v6697_v25, %v3500_v24  ;;  %v2805_v38 = vadd.f32 %v2804_v8, %v2803_v43  ;;  %v5902_v60 = vpop.f32.mrb[86].mxu1  ;;  %v5904_v15 = vpop.f32.mrb[86].mxu0 }
 0x1be   : > { %v3479_v5 = vsel %vm3429_vm4, %v6696_v31, %v3477_v22  ;;  %v3625_v28 = vsel %vm3624_vm8, %v3430_v48, %v3456_v59  ;;  %v2545_v48 = vmul.f32 %v5658_v2, %v5345_v46  ;;  %v2562_v25 = vmul.f32 %v5677_v37, %v5353_v18  ;;  %v5912_v43 = vpop.f32.mrb[87].mxu1  ;;  %v5914_v40 = vpop.f32.mrb[87].mxu0  ;;  %v6699_v37 = vld [vmem:[#allocation30_spill] sm:$0xff] }
 0x1bf   : > { %v3627_v55 = vsel %vm3624_vm8, %v3479_v5, %v3502_v30  ;;  %v2614_v5 = vmul.f32 %v5699_v44, %v6618_v9  ;;  %v2580_v8 = vmul.f32 %v5701_v57, %v5752_v45  ;;  %v2615_v59 = vmul.f32 %v6698_v47, %v6619_v34 }
 0x1c0   : > { %v4058_v31 = vpack.c.bf16 %v3627_v55, %v3625_v28  ;;  %v4198_v2 = vpop.eup %4197  ;;  %v2934_v53 = vadd.f32 %v2562_v25, %v2544_v4  ;;  %v2581_v22 = vmul.f32 %v6699_v37, %v5766_v50  ;;  %v2633_v32 = vmul.f32 %v5729_v0, %v6624_v27 }
 0x1c1   : > { %v5931_v44 = vrot.slane %v4198_v2, %v6623_v36  ;;  %v2942_v24 = vadd.f32 %v2563_v33, %v2545_v48  ;;  %v3062_v57 = vadd.f32 %v2614_v5, %v2596_v51  ;;  %v3070_v17 = vadd.f32 %v2615_v59, %v2597_v10  ;;  %v5933_v30 = vpop.f32.mrb[88].mxu1  ;;  %v5935_v28 = vpop.f32.mrb[88].mxu0 }
 0x1c2   : > { %4059 = vmatpush1.bf16.msra.mxu1 %v4058_v31  ;;  %v2935_v55 = vadd.f32 %v2934_v53, %v2580_v8  ;;  %v2650_v4 = vmul.f32 %v5748_v63, %v6616_v19  ;;  %v2598_v23 = vmul.f32 %v5726_v56, %v6625_v20  ;;  %v2651_v0 = vmul.f32 %v5754_v54, %v6617_v1  ;;  %v5943_v31 = vpop.f32.mrb[89].mxu1  ;;  %v5945_v25 = vpop.f32.mrb[89].mxu0 }
 0x1c3   : > { %v5948_v51 = vmul.f32 %v5931_v44, %v2805_v38  ;;  %v2943_v10 = vadd.f32 %v2942_v24, %v2581_v22  ;;  %v3063_v48 = vadd.f32 %v3062_v57, %v2632_v13  ;;  %v3071_v33 = vadd.f32 %v3070_v17, %v2633_v32 }
 0x1c4   : > { %v2936_v5 = vrot.slane %v2935_v55, 4  ;;  %v2599_v19 = vmul.f32 %v5731_v3, %v5345_v46  ;;  %v2616_v56 = vmul.f32 %v5750_v16, %v5353_v18  ;;  %v2617_v1 = vmul.f32 %v5756_v49, %v5696_v12 }
 0x1c5   : > { %6700 = vst [vmem:[#allocation12_spill] sm:$0xff] %v5948_v51  ;;  %v2944_v54 = vrot.slane %v2943_v10, 4  ;;  %v3064_v63 = vrot.slane %v3063_v48, 4  ;;  %v3072_v8 = vrot.slane %v3071_v33, 4  ;;  %v2668_v38 = vmul.f32 %v5771_v62, %v6618_v9  ;;  %v5958_v47 = vpop.f32.mrb[90].mxu1  ;;  %v5960_v59 = vpop.f32.mrb[90].mxu0 }
 0x1c6   : > { %v2937_v2 = vadd.f32 %v2936_v5, %v2935_v55  ;;  %v3078_v53 = vadd.f32 %v2616_v56, %v2598_v23  ;;  %v3086_v37 = vadd.f32 %v2617_v1, %v2599_v19  ;;  %v2634_v3 = vmul.f32 %v5773_v6, %v5752_v45  ;;  %v5964_v16 = vpop.f32.mrb[91].mxu1  ;;  %v5966_v22 = vpop.f32.mrb[91].mxu0  ;;  %v6702_v62 = vld [vmem:[#allocation33_spill] sm:$0xff]  ;;  %v6703_v55 = vld [vmem:[#allocation26_spill] sm:$0xff] }
 0x1c7   : > { %6701 = vst [vmem:[#allocation35_spill] sm:$0xff] %v5966_v22  ;;  %v2945_v49 = vadd.f32 %v2944_v54, %v2943_v10  ;;  %v3065_v13 = vadd.f32 %v3064_v63, %v3063_v48  ;;  %v3073_v32 = vadd.f32 %v3072_v8, %v3071_v33  ;;  %v3206_v24 = vadd.f32 %v2668_v38, %v2650_v4 }
 0x1c8   : > { %v2938_v57 = vrot.slane %v2937_v2, 2  ;;  %v3079_v9 = vadd.f32 %v3078_v53, %v2634_v3  ;;  %v2669_v17 = vmul.f32 %v6702_v62, %v6619_v34  ;;  %v2635_v23 = vmul.f32 %v6703_v55, %v5766_v50 }
 0x1c9   : > { %v2946_v5 = vrot.slane %v2945_v49, 2  ;;  %v3066_v19 = vrot.slane %v3065_v13, 2  ;;  %v3074_v56 = vrot.slane %v3073_v32, 2  ;;  %v2686_v6 = vmul.f32 %v5805_v26, %v6620_v52  ;;  %v5974_v1 = vpop.f32.mrb[92].mxu1  ;;  %v5976_v10 = vpop.f32.mrb[92].mxu0  ;;  %v6704_v52 = vld [vmem:[#allocation39_spill] sm:$0xff] }
 0x1ca   : > { %v2939_v48 = vadd.f32 %v2938_v57, %v2937_v2  ;;  %v3080_v4 = vrot.slane %v3079_v9, 4  ;;  %v3214_v33 = vadd.f32 %v2669_v17, %v2651_v0  ;;  %v3087_v54 = vadd.f32 %v3086_v37, %v2635_v23  ;;  %v5978_v63 = vpop.f32.mrb[93].mxu1  ;;  %v5980_v34 = vpop.f32.mrb[93].mxu0 }
 0x1cb   : > { %v2947_v8 = vadd.f32 %v2946_v5, %v2945_v49  ;;  %v3067_v38 = vadd.f32 %v3066_v19, %v3065_v13  ;;  %v3075_v53 = vadd.f32 %v3074_v56, %v3073_v32  ;;  %v3207_v3 = vadd.f32 %v3206_v24, %v2686_v6 }
 0x1cc   : > { %v2940_v62 = vrot.slane %v2939_v48, 1  ;;  %v3081_v55 = vadd.f32 %v3080_v4, %v3079_v9  ;;  %v3088_v29 = vrot.slane %v3087_v54, 4  ;;  %v2687_v26 = vmul.f32 %v6704_v52, %v6624_v27 }
 0x1cd   : > { %v2948_v51 = vrot.slane %v2947_v8, 1  ;;  %v3068_v58 = vrot.slane %v3067_v38, 1  ;;  %v3076_v2 = vrot.slane %v3075_v53, 1  ;;  %v3208_v57 = vrot.slane %v3207_v3, 4  ;;  %v5984_v0 = vpop.f32.mrb[94].mxu1  ;;  %v5986_v37 = vpop.f32.mrb[94].mxu0 }
 0x1ce   : > { %v2941_v17 = vadd.f32 %v2940_v62, %v2939_v48  ;;  %v3082_v23 = vrot.slane %v3081_v55, 2  ;;  %v3089_v49 = vadd.f32 %v3088_v29, %v3087_v54  ;;  %v3215_v13 = vadd.f32 %v3214_v33, %v2687_v26  ;;  %v5988_v32 = vpop.f32.mrb[95].mxu1  ;;  %v5990_v24 = vpop.f32.mrb[95].mxu0 }
 0x1cf   : > { %v2949_v9 = vadd.f32 %v2948_v51, %v2947_v8  ;;  %v3069_v5 = vadd.f32 %v3068_v58, %v3067_v38  ;;  %v3077_v19 = vadd.f32 %v3076_v2, %v3075_v53  ;;  %v3209_v27 = vadd.f32 %v3208_v57, %v3207_v3 }
 0x1d0   : > { %v5993_v56 = vmul.f32 %v5870_v21, %v2941_v17  ;;  %v3083_v6 = vadd.f32 %v3082_v23, %v3081_v55  ;;  %v3090_v4 = vrot.slane %v3089_v49, 2  ;;  %v3216_v52 = vrot.slane %v3215_v13, 4 }
 0x1d1   : > { %v5996_v22 = vmul.f32 %v5931_v44, %v2949_v9  ;;  %v5999_v29 = vmul.f32 %v5662_v61, %v3069_v5  ;;  %v6002_v48 = vmul.f32 %v5673_v42, %v3077_v19  ;;  %v3210_v33 = vrot.slane %v3209_v27, 2  ;;  %v6004_v51 = vpop.f32.mrb[96].mxu1  ;;  %v6006_v58 = vpop.f32.mrb[96].mxu0  ;;  %v6710_v5 = vld [vmem:[#allocation29_spill] sm:$0xff] }
 0x1d2   : > { %6705 = vst [vmem:[#allocation38_spill] sm:$0xff] %v5993_v56  ;;  %v3084_v8 = vrot.slane %v3083_v6, 1  ;;  %v3091_v38 = vadd.f32 %v3090_v4, %v3089_v49  ;;  %v3217_v53 = vadd.f32 %v3216_v52, %v3215_v13  ;;  %v6009_v3 = vpop.f32.mrb[97].mxu1  ;;  %v6011_v62 = vpop.f32.mrb[97].mxu0  ;;  %v2652_v19 = vmul.f32 %v6710_v5, %v6625_v20  ;;  %v6711_v49 = vld [vmem:[#allocation19_spill] sm:$0xff]  ;;  %v6712_v4 = vld [vmem:[#allocation37_spill] sm:$0xff] }
 0x1d3   : > { %6706 = vst [vmem:[#allocation40_spill] sm:$0xff] %v5996_v22  ;;  %6707 = vst [vmem:[#allocation36_spill] sm:$0xff] %v5999_v29  ;;  %v3211_v57 = vadd.f32 %v3210_v33, %v3209_v27  ;;  %v390_v13 = vrot.slane %v6711_v49, 6  ;;  %v2653_v52 = vmul.f32 %v6712_v4, %v5345_v46  ;;  %v6713_v56 = vld [vmem:[#allocation23_spill] sm:$0xff]  ;;  %v2670_v20 = vmul.f32 %v5832_v35, %v5353_v18  ;;  %v6717_v46 = vld [vmem:[#allocation8_spill] sm:$0xff] }
 0x1d4   : > { %6708 = vst [vmem:[#allocation41_spill] sm:$0xff] %v6002_v48  ;;  %6709 = vst [vmem:[#allocation44_spill] sm:$0xff] %v6011_v62  ;;  %v3085_v17 = vadd.f32 %v3084_v8, %v3083_v6  ;;  %v3092_v23 = vrot.slane %v3091_v38, 1  ;;  %v3218_v9 = vrot.slane %v3217_v53, 2  ;;  %v391_v62 = vrot.slane %v6713_v56, 6 }
 0x1d5   : > { %v3212_v54 = vrot.slane %v3211_v57, 1  ;;  %v6022_v55 = vpop.f32.mrb[98].mxu1  ;;  %v6024_v26 = vpop.f32.mrb[98].mxu0  ;;  %v636_v4 = vrot.slane %v390_v13, %v6717_v46  ;;  %v2671_v2 = vmul.f32 %v5836_v41, %v5696_v12  ;;  %v3222_v18 = vadd.f32 %v2670_v20, %v2652_v19  ;;  %v6072_v22 = vld [vmem:[%s4443_s24 + $0x30] sm:$0x7] }
 0x1d6   : > { %6714 = vst [vmem:[#allocation46_spill] sm:$0xff] %v6024_v26  ;;  %v6027_v27 = vmul.f32 %v5870_v21, %v3085_v17  ;;  %v3093_v6 = vadd.f32 %v3092_v23, %v3091_v38  ;;  %v3219_v33 = vadd.f32 %v3218_v9, %v3217_v53  ;;  %v6031_v8 = vpop.f32.mrb[99].mxu1  ;;  %v6033_v5 = vpop.f32.mrb[99].mxu0  ;;  %v6037_v56 = vrot.slane %v391_v62, %v6717_v46  ;;  %v6720_v23 = vld [vmem:[#allocation5_spill] sm:$0xff] }
 0x1d7   : > { %6716 = vst [vmem:[#allocation45_spill] sm:$0xff] %v6033_v5  ;;  %v3213_v49 = vadd.f32 %v3212_v54, %v3211_v57  ;;  %v663_v54 = vsub.f32 %v6720_v23, %v636_v4  ;;  %v3230_v62 = vadd.f32 %v2671_v2, %v2653_v52  ;;  %v2688_v19 = vmul.f32 %v5865_v14, %v5752_v45 }
 0x1d8   : > { %6715 = vst [vmem:[#allocation43_spill] sm:$0xff] %v6027_v27  ;;  %v6043_v38 = vmul.f32 %v5931_v44, %v3093_v6  ;;  %v3220_v53 = vrot.slane %v3219_v33, 1  ;;  %v664_v57 = vsub.f32 %v6720_v23, %v6037_v56  ;;  %v6722_v6 = vld [vmem:[#allocation6_spill] sm:$0xff]  ;;  %v2689_v27 = vmul.f32 %v5874_v39, %v5766_v50 }
 0x1d9   : > { %v6046_v35 = vmul.f32 %v5662_v61, %v3213_v49  ;;  %v6051_v9 = vpop.f32.mrb[100].mxu1  ;;  %v6053_v13 = vpop.f32.mrb[100].mxu0  ;;  %v681_v61 = vsub.f32 %v6722_v6, %v636_v4  ;;  %v717_v2 = vand.u32 2147483647, %v663_v54  ;;  %v682_v45 = vsub.f32 %v6722_v6, %v6037_v56  ;;  %v6731_v50 = vld [vmem:[#allocation42_spill] sm:$0xff] }
 0x1da   : > { %6718 = vst [vmem:[#allocation13_spill] sm:$0xff] %v6043_v38  ;;  %6721 = vst [vmem:[#allocation10_spill] sm:$0xff] %v6053_v13  ;;  %v3221_v41 = vadd.f32 %v3220_v53, %v3219_v33  ;;  %v6059_v20 = vpop.f32.mrb[101].mxu1  ;;  %v6061_v49 = vpop.f32.mrb[101].mxu0  ;;  %v718_v52 = vand.u32 2147483647, %v664_v57  ;;  %v3223_v33 = vadd.f32 %v3222_v18, %v2688_v19  ;;  %v3231_v38 = vadd.f32 %v3230_v62, %v2689_v27 }
 0x1db   : > { %6719 = vst [vmem:[#allocation18_spill] sm:$0xff] %v6046_v35  ;;  %6723 = vst [vmem:[#allocation48_spill] sm:$0xff] %v6059_v20  ;;  %v735_v53 = vand.u32 2147483647, %v681_v61  ;;  %v771_v14 = vsub.f32 1.0, %v717_v2  ;;  %v458_v17 = vrot.slane %v6072_v22, 7 }
 0x1dc   : > { %6724 = vst [vmem:[#allocation11_spill] sm:$0xff] %v6061_v49  ;;  %v6067_v12 = vmul.f32 %v5673_v42, %v3221_v41  ;;  %v772_v29 = vsub.f32 1.0, %v718_v52  ;;  %v3224_v42 = vrot.slane %v3223_v33, 4  ;;  %v736_v18 = vand.u32 2147483647, %v682_v45  ;;  %v6732_v45 = vld [vmem:[#allocation47_spill] sm:$0xff] }
 0x1dd   : > { %v6075_v54 = vpop.f32.mrb[102].mxu1  ;;  %v6077_v57 = vpop.f32.mrb[102].mxu0  ;;  %v789_v39 = vsub.f32 1.0, %v735_v53  ;;  %v6082_v19 = vmax.f32 %v771_v14, 0.0  ;;  %v3232_v27 = vrot.slane %v3231_v38, 4  ;;  %v6738_v49 = vld [vmem:[#allocation14_spill] sm:$0xff] }
 0x1de   : > { %6725 = vst [vmem:[#allocation28_spill] sm:$0xff] %v6067_v12  ;;  %6726 = vst [vmem:[#allocation30_spill] sm:$0xff] %v6075_v54  ;;  %v6080_v41 = vpop.f32.mrb[103].mxu1  ;;  %v6084_v61 = vmax.f32 %v772_v29, 0.0  ;;  %v3881_v62 = vmul.f32 -1.442695, %v458_v17  ;;  %v3225_v52 = vadd.f32 %v3224_v42, %v3223_v33 }
 0x1df   : > { %6727 = vst [vmem:[#allocation33_spill] sm:$0xff] %v6077_v57  ;;  %6728 = vst [vmem:[#allocation26_spill] sm:$0xff] %v6080_v41  ;;  %v6086_v2 = vpop.f32.mrb[103].mxu0  ;;  %v6088_v35 = vmax.f32 %v789_v39, 0.0  ;;  %v790_v48 = vsub.f32 1.0, %v736_v18  ;;  %v6730_v57 = vld [vmem:[#allocation7_spill] sm:$0xff]  ;;  %v2492_v53 = vmul.f32 %v6731_v50, %v6082_v19  ;;  %v3233_v14 = vadd.f32 %v3232_v27, %v3231_v38 }
 0x1e0   : > { %6729 = vst [vmem:[#allocation39_spill] sm:$0xff] %v6086_v2  ;;  %v699_v54 = vsub.f32 %v6730_v57, %v636_v4  ;;  %v2493_v12 = vmul.f32 %v6732_v45, %v6084_v61  ;;  %4199 = vpow2.f32 %v3881_v62  ;;  %v3226_v17 = vrot.slane %v3225_v52, 2  ;;  %v6737_v45 = vld [vmem:[#allocation27_spill] sm:$0xff] }
 0x1e1   : > { %v6095_v29 = vpop.f32.mrb[104].mxu1  ;;  %v6097_v41 = vpop.f32.mrb[104].mxu0  ;;  %v2510_v33 = vmul.f32 %v5867_v11, %v6088_v35  ;;  %v6101_v42 = vmax.f32 %v790_v48, 0.0  ;;  %v3234_v18 = vrot.slane %v3233_v14, 2  ;;  %v459_v38 = vrot.slane %v6737_v45, 7 }
 0x1e2   : > { %6733 = vst [vmem:[#allocation29_spill] sm:$0xff] %v6095_v29  ;;  %6734 = vst [vmem:[#allocation19_spill] sm:$0xff] %v6097_v41  ;;  %v753_v4 = vand.u32 2147483647, %v699_v54  ;;  %v6103_v39 = vpop.f32.mrb[105].mxu1  ;;  %v6105_v50 = vpop.f32.mrb[105].mxu0  ;;  %v700_v27 = vsub.f32 %v6730_v57, %v6037_v56  ;;  %v2546_v62 = vmul.f32 %v5933_v30, %v6082_v19  ;;  %v3227_v41 = vadd.f32 %v3226_v17, %v3225_v52 }
 0x1e3   : > { %6735 = vst [vmem:[#allocation37_spill] sm:$0xff] %v6103_v39  ;;  %6736 = vst [vmem:[#allocation23_spill] sm:$0xff] %v6105_v50  ;;  %v2806_v29 = vadd.f32 %v2510_v33, %v2492_v53  ;;  %v2511_v11 = vmul.f32 %v5876_v7, %v6101_v42  ;;  %v3235_v54 = vadd.f32 %v3234_v18, %v3233_v14  ;;  %v3882_v2 = vmul.f32 -1.442695, %v459_v38  ;;  %v4227_v50 = vld [vmem:[%s4443_s24 + $0x20] sm:$0xff]  ;;  %v4228_v33 = vld [vmem:[%s4443_s24 + $0x28] sm:$0xff] }
 0x1e4   : > { %v807_v48 = vsub.f32 1.0, %v753_v4  ;;  %v754_v39 = vand.u32 2147483647, %v700_v27  ;;  %v358_v13 = vadd.f32 %v4227_v50, %v6738_v49  ;;  %v3228_v20 = vrot.slane %v3227_v41, 1  ;;  %v6739_v4 = vld [vmem:[#allocation21_spill] sm:$0xff]  ;;  %s4015_s24 = sshll.u32 %s4307_s18, 1 }
 0x1e5   : > { %v6116_v5 = vpop.f32.mrb[106].mxu0  ;;  %v2814_v56 = vadd.f32 %v2511_v11, %v2493_v12  ;;  %v6122_v30 = vmul.f32 %v5943_v31, %v6084_v61  ;;  %v3236_v7 = vrot.slane %v3235_v54, 1  ;;  %4201 = vpow2.f32 %v3882_v2  ;;  %s3738_s11 = sadd.s32 %s4016_s27, %s4015_s24  ;;  %s3724_s18 = scalar_lea.sflag [#allocation3], %s260_s9 }
 0x1e6   : > { %v6118_v26 = vmax.f32 %v807_v48, 0.0  ;;  %v6124_v52 = vpop.f32.mrb[107].mxu0  ;;  %v808_v53 = vsub.f32 1.0, %v754_v39  ;;  %v644_v14 = vrot.slane %v358_v13, %v6717_v46  ;;  %v3229_v17 = vadd.f32 %v3228_v20, %v3227_v41  ;;  %s4017_s30 = sshll.u32 %s3738_s11, 7 }
 0x1e7   : > { %v359_v12 = vadd.f32 %v4228_v33, %v6739_v4  ;;  %v2564_v50 = vmul.f32 %v5958_v47, %v6088_v35  ;;  %v3237_v18 = vadd.f32 %v3236_v7, %v3235_v54  ;;  %s6412_s12 = scalar_lea.hbm %s6469_s4, %s4017_s30 }
 0x1e8   : > { %v2528_v49 = vmul.f32 %v5902_v60, %v6118_v26  ;;  %v6133_v31 = vmax.f32 %v808_v53, 0.0  ;;  %v665_v38 = vsub.f32 %v6720_v23, %v644_v14  ;;  %v683_v2 = vsub.f32 %v6722_v6, %v644_v14 }
 0x1e9   : > { %v6137_v39 = vpop.f32.mrb[108].mxu0  ;;  %v6140_v13 = vmul.f32 %v5870_v21, %v3229_v17  ;;  %v648_v60 = vrot.slane %v359_v12, %v6717_v46  ;;  %v2950_v41 = vadd.f32 %v2564_v50, %v2546_v62  ;;  %v6146_v47 = vmul.f32 %v5931_v44, %v3237_v18 }
 0x1ea   : > { %v2807_v20 = vadd.f32 %v2806_v29, %v2528_v49  ;;  %v6143_v27 = vpop.f32.mrb[109].mxu0  ;;  %v4200_v11 = vpop.eup %4199  ;;  %v2529_v48 = vmul.f32 %v5912_v43, %v6133_v31  ;;  %v719_v54 = vand.u32 2147483647, %v665_v38  ;;  %v737_v7 = vand.u32 2147483647, %v683_v2 }
 0x1eb   : > { %v530_v33 = vadd.f32 1.0, %v4200_v11  ;;  %v666_v29 = vsub.f32 %v6720_v23, %v648_v60  ;;  %v3576_v46 = vrot.slane %v6146_v47, 5  ;;  %v684_v12 = vsub.f32 %v6722_v6, %v648_v60 }
 0x1ec   : > { %v2808_v21 = vrot.slane %v2807_v20, 4  ;;  %v2815_v62 = vadd.f32 %v2814_v56, %v2529_v48  ;;  %v773_v17 = vsub.f32 1.0, %v719_v54  ;;  %v791_v49 = vsub.f32 1.0, %v737_v7 }
 0x1ed   : > { %4203 = vrcp.f32 %v530_v33  ;;  %v720_v44 = vand.u32 2147483647, %v666_v29  ;;  %v3883_v38 = vmul.f32 -1.442695, %v6072_v22  ;;  %v738_v23 = vand.u32 2147483647, %v684_v12 }
 0x1ee   : > { %v2809_v4 = vadd.f32 %v2808_v21, %v2807_v20  ;;  %v2816_v50 = vrot.slane %v2815_v62, 4  ;;  %v6154_v43 = vmax.f32 %v773_v17, 0.0  ;;  %v6156_v18 = vmax.f32 %v791_v49, 0.0 }
 0x1ef   : > { %v774_v11 = vsub.f32 1.0, %v720_v44  ;;  %v701_v53 = vsub.f32 %v6730_v57, %v644_v14  ;;  %v4202_v56 = vpop.eup %4201  ;;  %4205 = vpow2.f32 %v3883_v38  ;;  %v792_v21 = vsub.f32 1.0, %v738_v23 }
 0x1f0   : > { %v2810_v2 = vrot.slane %v2809_v4, 2  ;;  %v2817_v48 = vadd.f32 %v2816_v50, %v2815_v62  ;;  %v2494_v20 = vmul.f32 %v5904_v15, %v6154_v43  ;;  %v2512_v6 = vmul.f32 %v5935_v28, %v6156_v18 }
 0x1f1   : > { %v531_v7 = vadd.f32 1.0, %v4202_v56  ;;  %v6164_v33 = vmax.f32 %v774_v11, 0.0  ;;  %v755_v17 = vand.u32 2147483647, %v701_v53  ;;  %v2565_v14 = vmul.f32 %v5964_v16, %v6101_v42 }
 0x1f2   : > { %v2811_v54 = vadd.f32 %v2810_v2, %v2809_v4  ;;  %v2818_v22 = vrot.slane %v2817_v48, 2  ;;  %v2822_v29 = vadd.f32 %v2512_v6, %v2494_v20  ;;  %v6170_v62 = vmax.f32 %v792_v21, 0.0 }
 0x1f3   : > { %4207 = vrcp.f32 %v531_v7  ;;  %v2495_v15 = vmul.f32 %v5914_v40, %v6164_v33  ;;  %v809_v44 = vsub.f32 1.0, %v755_v17  ;;  %v2958_v4 = vadd.f32 %v2565_v14, %v6122_v30 }
 0x1f4   : > { %v2812_v49 = vrot.slane %v2811_v54, 1  ;;  %v2819_v28 = vadd.f32 %v2818_v22, %v2817_v48  ;;  %v3884_v12 = vmul.f32 -1.442695, %v6737_v45  ;;  %v2513_v53 = vmul.f32 %v5945_v25, %v6170_v62 }
 0x1f5   : > { %v702_v38 = vsub.f32 %v6730_v57, %v648_v60  ;;  %v2582_v16 = vmul.f32 %v5974_v1, %v6118_v26  ;;  %v6179_v11 = vmax.f32 %v809_v44, 0.0  ;;  %v2583_v40 = vmul.f32 %v5978_v63, %v6133_v31 }
 0x1f6   : > { %v2813_v50 = vadd.f32 %v2812_v49, %v2811_v54  ;;  %v2820_v2 = vrot.slane %v2819_v28, 1  ;;  %4209 = vpow2.f32 %v3884_v12  ;;  %v2830_v30 = vadd.f32 %v2513_v53, %v2495_v15 }
 0x1f7   : > { %v4204_v23 = vpop.eup %4203  ;;  %v756_v56 = vand.u32 2147483647, %v702_v38  ;;  %v2951_v45 = vadd.f32 %v2950_v41, %v2582_v16  ;;  %v2600_v48 = vmul.f32 %v5984_v0, %v6082_v19  ;;  %v2530_v1 = vmul.f32 %v5960_v59, %v6179_v11 }
 0x1f8   : > { %v6186_v25 = vrot.slane %v4204_v23, %v6623_v36  ;;  %v2821_v57 = vadd.f32 %v2820_v2, %v2819_v28  ;;  %v2959_v60 = vadd.f32 %v2958_v4, %v2583_v40  ;;  %v2548_v63 = vmul.f32 %v5976_v10, %v6154_v43 }
 0x1f9   : > { %v810_v20 = vsub.f32 1.0, %v756_v56  ;;  %v2952_v6 = vrot.slane %v2951_v45, 4  ;;  %v2601_v54 = vmul.f32 %v5988_v32, %v6084_v61  ;;  %v4206_v41 = vpop.eup %4205  ;;  %v2823_v0 = vadd.f32 %v2822_v29, %v2530_v1  ;;  %v6740_v29 = vld [vmem:[#allocation35_spill] sm:$0xff] }
 0x1fa   : > { %v6195_v7 = vmul.f32 %v6186_v25, %v2813_v50  ;;  %v2960_v21 = vrot.slane %v2959_v60, 4  ;;  %v2549_v22 = vmul.f32 %v5980_v34, %v6164_v33  ;;  %v532_v17 = vadd.f32 1.0, %v4206_v41 }
 0x1fb   : > { %v6199_v59 = vmax.f32 %v810_v20, 0.0  ;;  %v2953_v14 = vadd.f32 %v2952_v6, %v2951_v45  ;;  %v2566_v49 = vmul.f32 %v5986_v37, %v6156_v18  ;;  %v2824_v15 = vrot.slane %v2823_v0, 4 }
 0x1fc   : > { %v3588_v10 = vrot.slane %v6195_v7, 4  ;;  %v2961_v32 = vadd.f32 %v2960_v21, %v2959_v60  ;;  %v2567_v28 = vmul.f32 %v5990_v24, %v6170_v62  ;;  %4211 = vrcp.f32 %v532_v17 }
 0x1fd   : > { %v4208_v44 = vpop.eup %4207  ;;  %v2531_v4 = vmul.f32 %v6740_v29, %v6199_v59  ;;  %v2954_v34 = vrot.slane %v2953_v14, 2  ;;  %v2966_v12 = vadd.f32 %v2566_v49, %v2548_v63  ;;  %v2825_v53 = vadd.f32 %v2824_v15, %v2823_v0  ;;  %v6741_v15 = vld [vmem:[#allocation44_spill] sm:$0xff] }
 0x1fe   : > { %v6209_v50 = vrot.slane %v4208_v44, %v6623_v36  ;;  %v2962_v38 = vrot.slane %v2961_v32, 2  ;;  %v2974_v37 = vadd.f32 %v2567_v28, %v2549_v22  ;;  %v2618_v40 = vmul.f32 %v6004_v51, %v6088_v35 }
 0x1ff   : > { %v2831_v16 = vadd.f32 %v2830_v30, %v2531_v4  ;;  %v2955_v2 = vadd.f32 %v2954_v34, %v2953_v14  ;;  %v2584_v24 = vmul.f32 %v6006_v58, %v6179_v11  ;;  %v2826_v45 = vrot.slane %v2825_v53, 2 }
 0x200   : > { %v4210_v23 = vpop.eup %4209  ;;  %v6216_v56 = vmul.f32 %v6209_v50, %v2821_v57  ;;  %v2963_v1 = vadd.f32 %v2962_v38, %v2961_v32  ;;  %v2619_v60 = vmul.f32 %v6009_v3, %v6101_v42  ;;  %v3094_v30 = vadd.f32 %v2618_v40, %v2600_v48 }
 0x201   : > { %v533_v20 = vadd.f32 1.0, %v4210_v23  ;;  %v2832_v6 = vrot.slane %v2831_v16, 4  ;;  %v2956_v63 = vrot.slane %v2955_v2, 1  ;;  %v2827_v0 = vadd.f32 %v2826_v45, %v2825_v53 }
 0x202   : > { %v3595_v41 = vrot.slane %v6216_v56, 4  ;;  %v2964_v51 = vrot.slane %v2963_v1, 1  ;;  %v2967_v21 = vadd.f32 %v2966_v12, %v2584_v24  ;;  %v3102_v17 = vadd.f32 %v2619_v60, %v2601_v54 }
 0x203   : > { %4213 = vrcp.f32 %v533_v20  ;;  %v2833_v58 = vadd.f32 %v2832_v6, %v2831_v16  ;;  %v2957_v22 = vadd.f32 %v2956_v63, %v2955_v2  ;;  %v2828_v57 = vrot.slane %v2827_v0, 1  ;;  %v6742_v63 = vld [vmem:[#allocation46_spill] sm:$0xff] }
 0x204   : > { %v2965_v14 = vadd.f32 %v2964_v51, %v2963_v1  ;;  %v2968_v49 = vrot.slane %v2967_v21, 4  ;;  %v2585_v32 = vmul.f32 %v6741_v15, %v6199_v59  ;;  %v2636_v48 = vmul.f32 %v6022_v55, %v6118_v26 }
 0x205   : > { %v2834_v3 = vrot.slane %v2833_v58, 2  ;;  %v6224_v28 = vmul.f32 %v6186_v25, %v2957_v22  ;;  %v2637_v44 = vmul.f32 %v6031_v8, %v6133_v31  ;;  %v2829_v29 = vadd.f32 %v2828_v57, %v2827_v0 }
 0x206   : > { %v6231_v4 = vmul.f32 %v6209_v50, %v2965_v14  ;;  %v2969_v54 = vadd.f32 %v2968_v49, %v2967_v21  ;;  %v2975_v34 = vadd.f32 %v2974_v37, %v2585_v32  ;;  %v4212_v12 = vpop.eup %4211  ;;  %v3095_v16 = vadd.f32 %v3094_v30, %v2636_v48  ;;  %v6744_v14 = vld [vmem:[#allocation45_spill] sm:$0xff]  ;;  %v6746_v48 = vld [vmem:[#allocation11_spill] sm:$0xff] }
 0x207   : > { %v2835_v53 = vadd.f32 %v2834_v3, %v2833_v58  ;;  %v3589_v38 = vrot.slane %v6224_v28, 3  ;;  %v3103_v2 = vadd.f32 %v3102_v17, %v2637_v44  ;;  %v6235_v40 = vrot.slane %v4212_v12, %v6623_v36  ;;  %v6743_v58 = vld [vmem:[#allocation48_spill] sm:$0xff] }
 0x208   : > { %v3596_v55 = vrot.slane %v6231_v4, 3  ;;  %v2970_v24 = vrot.slane %v2969_v54, 2  ;;  %v2976_v23 = vrot.slane %v2975_v34, 4  ;;  %v3096_v45 = vrot.slane %v3095_v16, 4 }
 0x209   : > { %v2836_v8 = vrot.slane %v2835_v53, 1  ;;  %v3104_v1 = vrot.slane %v3103_v2, 4  ;;  %v2654_v60 = vmul.f32 %v6051_v9, %v6082_v19  ;;  %v6241_v37 = vmul.f32 %v6235_v40, %v2829_v29  ;;  %v6745_v9 = vld [vmem:[#allocation10_spill] sm:$0xff] }
 0x20a   : > { %v2971_v20 = vadd.f32 %v2970_v24, %v2969_v54  ;;  %v2977_v6 = vadd.f32 %v2976_v23, %v2975_v34  ;;  %v2602_v30 = vmul.f32 %v6742_v63, %v6154_v43  ;;  %v3097_v51 = vadd.f32 %v3096_v45, %v3095_v16  ;;  %v6747_v29 = vld [vmem:[#allocation30_spill] sm:$0xff]  ;;  %v6748_v63 = vld [vmem:[#allocation33_spill] sm:$0xff] }
 0x20b   : > { %v2837_v0 = vadd.f32 %v2836_v8, %v2835_v53  ;;  %v3105_v21 = vadd.f32 %v3104_v1, %v3103_v2  ;;  %v2655_v22 = vmul.f32 %v6743_v58, %v6084_v61  ;;  %v2603_v49 = vmul.f32 %v6744_v14, %v6164_v33 }
 0x20c   : > { %v2972_v17 = vrot.slane %v2971_v20, 1  ;;  %v2978_v57 = vrot.slane %v2977_v6, 2  ;;  %v2620_v19 = vmul.f32 %v6745_v9, %v6156_v18  ;;  %v3098_v32 = vrot.slane %v3097_v51, 2 }
 0x20d   : > { %v4214_v15 = vpop.eup %4213  ;;  %v3106_v3 = vrot.slane %v3105_v21, 2  ;;  %v2621_v44 = vmul.f32 %v6746_v48, %v6170_v62  ;;  %v2672_v54 = vmul.f32 %v6747_v29, %v6088_v35  ;;  %v2638_v35 = vmul.f32 %v6748_v63, %v6179_v11 }
 0x20e   : > { %v6256_v34 = vrot.slane %v4214_v15, %v6623_v36  ;;  %v2973_v61 = vadd.f32 %v2972_v17, %v2971_v20  ;;  %v2979_v12 = vadd.f32 %v2978_v57, %v2977_v6  ;;  %v3110_v53 = vadd.f32 %v2620_v19, %v2602_v30  ;;  %v6749_v20 = vld [vmem:[#allocation26_spill] sm:$0xff]  ;;  %v6750_v30 = vld [vmem:[#allocation39_spill] sm:$0xff]  ;;  %v6751_v17 = vld [vmem:[#allocation29_spill] sm:$0xff] }
 0x20f   : > { %v3099_v16 = vadd.f32 %v3098_v32, %v3097_v51  ;;  %v3107_v2 = vadd.f32 %v3106_v3, %v3105_v21  ;;  %v3118_v24 = vadd.f32 %v2621_v44, %v2603_v49  ;;  %v3238_v23 = vadd.f32 %v2672_v54, %v2654_v60 }
 0x210   : > { %v6259_v8 = vmul.f32 %v6256_v34, %v2837_v0  ;;  %v6262_v45 = vmul.f32 %v6235_v40, %v2973_v61  ;;  %v2980_v1 = vrot.slane %v2979_v12, 1  ;;  %v2673_v6 = vmul.f32 %v6749_v20, %v6101_v42  ;;  %v6752_v42 = vld [vmem:[#allocation37_spill] sm:$0xff] }
 0x211   : > { %v3100_v58 = vrot.slane %v3099_v16, 1  ;;  %v3108_v36 = vrot.slane %v3107_v2, 1  ;;  %v2639_v51 = vmul.f32 %v6750_v30, %v6199_v59  ;;  %v3111_v0 = vadd.f32 %v3110_v53, %v2638_v35 }
 0x212   : > { %v3612_v60 = vrot.slane %v6262_v45, 7  ;;  %v2981_v21 = vadd.f32 %v2980_v1, %v2979_v12  ;;  %v2690_v57 = vmul.f32 %v6751_v17, %v6118_v26  ;;  %v3246_v9 = vadd.f32 %v2673_v6, %v2655_v22  ;;  %v6753_v26 = vld [vmem:[#allocation19_spill] sm:$0xff] }
 0x213   : > { %v3101_v14 = vadd.f32 %v3100_v58, %v3099_v16  ;;  %v3109_v49 = vadd.f32 %v3108_v36, %v3107_v2  ;;  %v3119_v19 = vadd.f32 %v3118_v24, %v2639_v51  ;;  %v3112_v32 = vrot.slane %v3111_v0, 4 }
 0x214   : > { %v6274_v15 = vmul.f32 %v6256_v34, %v2981_v21  ;;  %v3239_v3 = vadd.f32 %v3238_v23, %v2690_v57  ;;  %v2691_v48 = vmul.f32 %v6752_v42, %v6133_v31  ;;  %v2656_v61 = vmul.f32 %v6753_v26, %v6154_v43  ;;  %v6754_v31 = vld [vmem:[#allocation23_spill] sm:$0xff]  ;;  %v6764_v26 = vld [vmem:[#allocation41_spill] sm:$0xff] }
 0x215   : > { %v6279_v44 = vmul.f32 %v6186_v25, %v3101_v14  ;;  %v3393_v29 = vmul.f32 %v6209_v50, %v3109_v49  ;;  %v3120_v54 = vrot.slane %v3119_v19, 4  ;;  %v3113_v12 = vadd.f32 %v3112_v32, %v3111_v0  ;;  %v6755_v14 = vld [vmem:[#allocation17_spill] sm:$0xff]  ;;  %v6756_v49 = vld [vmem:[#allocation22_spill] sm:$0xff] }
 0x216   : > { %v3618_v22 = vrot.slane %v6274_v15, 7  ;;  %v3240_v53 = vrot.slane %v3239_v3, 4  ;;  %v3247_v16 = vadd.f32 %v3246_v9, %v2691_v48  ;;  %v2657_v1 = vmul.f32 %v6754_v31, %v6164_v33  ;;  %v6762_v48 = vld [vmem:[#allocation25_spill] sm:$0xff] }
 0x217   : > { %v3591_v2 = vrot.slane %v6279_v44, 2  ;;  %v3598_v24 = vrot.slane %v3393_v29, 2  ;;  %v3121_v23 = vadd.f32 %v3120_v54, %v3119_v19  ;;  %v3114_v63 = vrot.slane %v3113_v12, 2 }
 0x218   : > { %v3241_v35 = vadd.f32 %v3240_v53, %v3239_v3  ;;  %v3248_v58 = vrot.slane %v3247_v16, 4  ;;  %v2674_v36 = vmul.f32 %v6116_v5, %v6156_v18  ;;  %v2675_v43 = vmul.f32 %v6124_v52, %v6170_v62  ;;  %v6758_v18 = vld [vmem:[#allocation34_spill] sm:$0xff]  ;;  %v6760_v52 = vld [vmem:[#allocation49_spill] sm:$0xff] }
 0x219   : > { %v3122_v20 = vrot.slane %v3121_v23, 2  ;;  %v2692_v6 = vmul.f32 %v6137_v39, %v6179_v11  ;;  %v2693_v30 = vmul.f32 %v6143_v27, %v6199_v59  ;;  %v3115_v51 = vadd.f32 %v3114_v63, %v3113_v12 }
 0x21a   : > { %v3242_v21 = vrot.slane %v3241_v35, 2  ;;  %v3249_v0 = vadd.f32 %v3248_v58, %v3247_v16  ;;  %v3254_v33 = vadd.f32 %v2674_v36, %v2656_v61  ;;  %v3262_v57 = vadd.f32 %v2675_v43, %v2657_v1  ;;  %v6766_v58 = vld [vmem:[#allocation9_spill] sm:$0xff] }
 0x21b   : > { %v3123_v17 = vadd.f32 %v3122_v20, %v3121_v23  ;;  %v6757_v9 = vrot.slane %v6756_v49, 7  ;;  %v6759_v19 = vrot.slane %v6758_v18, 4  ;;  %v6761_v62 = vrot.slane %v6760_v52, 3  ;;  %v6768_v20 = vld [vmem:[#allocation28_spill] sm:$0xff] }
 0x21c   : > { %v3116_v11 = vrot.slane %v3115_v51, 1  ;;  %v3243_v32 = vadd.f32 %v3242_v21, %v3241_v35  ;;  %v3250_v27 = vrot.slane %v3249_v0, 2  ;;  %v3255_v59 = vadd.f32 %v3254_v33, %v2692_v6  ;;  %v6771_v49 = vld [vmem:[#allocation40_spill] sm:$0xff] }
 0x21d   : > { %v3527_v5 = vsel %vm3423_vm2, %v6757_v9, %v6755_v14  ;;  %v3551_v39 = vsel %vm3449_vm5, %v6761_v62, %v6759_v19  ;;  %v3124_v3 = vrot.slane %v3123_v17, 1  ;;  %v3263_v42 = vadd.f32 %v3262_v57, %v2693_v30 }
 0x21e   : > { %v6763_v29 = vrot.slane %v6762_v48, 6  ;;  %v6765_v61 = vrot.slane %v6764_v26, 2  ;;  %v3117_v53 = vadd.f32 %v3116_v11, %v3115_v51  ;;  %v3244_v16 = vrot.slane %v3243_v32, 1  ;;  %v6773_v11 = vld [vmem:[#allocation13_spill] sm:$0xff]  ;;  %v6776_v48 = vld [vmem:[#allocation20_spill] sm:$0xff] }
 0x21f   : > { %v3251_v23 = vadd.f32 %v3250_v27, %v3249_v0  ;;  %v3256_v31 = vrot.slane %v3255_v59, 4  ;;  %v3125_v1 = vadd.f32 %v3124_v3, %v3123_v17  ;;  %v3264_v63 = vrot.slane %v3263_v42, 4  ;;  %v6770_v0 = vld [vmem:[#allocation12_spill] sm:$0xff] }
 0x220   : > { %v3529_v54 = vsel %vm3426_vm3, %v6763_v29, %v3527_v5  ;;  %v3553_v12 = vsel %vm3452_vm6, %v6765_v61, %v3551_v39  ;;  %v6767_v35 = vrot.slane %v6766_v58, 5  ;;  %v6769_v43 = vrot.slane %v6768_v20, 1  ;;  %v6778_v26 = vld [vmem:[#allocation32_spill] sm:$0xff] }
 0x221   : > { %v3394_v30 = vmul.f32 %v6235_v40, %v3117_v53  ;;  %v3245_v21 = vadd.f32 %v3244_v16, %v3243_v32  ;;  %v3252_v33 = vrot.slane %v3251_v23, 1  ;;  %v3257_v57 = vadd.f32 %v3256_v31, %v3255_v59  ;;  %v6782_v16 = vld [vmem:[#allocation15_spill] sm:$0xff] }
 0x222   : > { %v3531_v36 = vsel %vm3429_vm4, %v6767_v35, %v3529_v54  ;;  %v3555_v6 = vsel %vm3455_vm7, %v6769_v43, %v3553_v12  ;;  %v3395_v51 = vmul.f32 %v6256_v34, %v3125_v1  ;;  %v3265_v14 = vadd.f32 %v3264_v63, %v3263_v42  ;;  %v6780_v12 = vld [vmem:[#allocation50_spill] sm:$0xff]  ;;  %v6787_v35 = vld [vmem:[#allocation36_spill] sm:$0xff] }
 0x223   : > { %v6772_v17 = vrot.slane %v6771_v49, 7  ;;  %v3597_v5 = vsel %vm3449_vm5, %v3596_v55, %v3595_v41  ;;  %v3614_v18 = vrot.slane %v3394_v30, 6  ;;  %v3410_v19 = vmul.f32 %v6186_v25, %v3245_v21  ;;  %v6775_v55 = vld [vmem:[#allocation16_spill] sm:$0xff] }
 0x224   : > { %v3253_v52 = vadd.f32 %v3252_v33, %v3251_v23  ;;  %v3258_v62 = vrot.slane %v3257_v57, 2  ;;  %v3266_v39 = vrot.slane %v3265_v14, 2  ;;  %v6774_v32 = vrot.slane %v6773_v11, 6  ;;  %v6783_v23 = vld [vmem:[#allocation38_spill] sm:$0xff] }
 0x225   : > { %v3573_v9 = vsel %vm3423_vm2, %v6772_v17, %v6770_v0  ;;  %v3599_v59 = vsel %vm3452_vm6, %v3598_v24, %v3597_v5  ;;  %v3630_v3 = vsel %vm3624_vm8, %v3531_v36, %v3555_v6  ;;  %v3593_v42 = vrot.slane %v3410_v19, 1  ;;  %v6789_v6 = vld [vmem:[#allocation31_spill] sm:$0xff]  ;;  %v6791_v33 = vld [vmem:[#allocation18_spill] sm:$0xff] }
 0x226   : > { %v3575_v27 = vsel %vm3426_vm3, %v6774_v32, %v3573_v9  ;;  %v3411_v56 = vmul.f32 %v6209_v50, %v3253_v52  ;;  %v3259_v4 = vadd.f32 %v3258_v62, %v3257_v57  ;;  %v3267_v25 = vadd.f32 %v3266_v39, %v3265_v14  ;;  %v6793_v0 = vld [vmem:[#allocation43_spill] sm:$0xff] }
 0x227   : > { %v3577_v41 = vsel %vm3429_vm4, %v3576_v46, %v3575_v27  ;;  %v6777_v29 = vrot.slane %v6776_v48, 7  ;;  %v6779_v61 = vrot.slane %v6778_v26, 4  ;;  %v6781_v24 = vrot.slane %v6780_v12, 3  ;;  %v6785_v46 = vld [vmem:[#allocation24_spill] sm:$0xff] }
 0x228   : > { %v6784_v50 = vrot.slane %v6783_v23, 7  ;;  %v3600_v47 = vrot.slane %v3411_v56, 1  ;;  %v3260_v1 = vrot.slane %v3259_v4, 1  ;;  %v6786_v63 = vrot.slane %v6785_v46, 6 }
 0x229   : > { %v3521_v54 = vsel %vm3423_vm2, %v6777_v29, %v6775_v55  ;;  %v3544_v53 = vsel %vm3449_vm5, %v6781_v24, %v6779_v61  ;;  %v6788_v36 = vrot.slane %v6787_v35, 2  ;;  %v3268_v43 = vrot.slane %v3267_v25, 1 }
 0x22a   : > { %v3567_v31 = vsel %vm3423_vm2, %v6784_v50, %v6782_v16  ;;  %v3523_v58 = vsel %vm3426_vm3, %v6786_v63, %v3521_v54  ;;  %v6790_v30 = vrot.slane %v6789_v6, 5  ;;  %v6792_v57 = vrot.slane %v6791_v33, 1 }
 0x22b   : > { %v3546_v20 = vsel %vm3452_vm6, %v6788_v36, %v3544_v53  ;;  %v6794_v49 = vrot.slane %v6793_v0, 6  ;;  %v3261_v9 = vadd.f32 %v3260_v1, %v3259_v4  ;;  %v3601_v5 = vsel %vm3455_vm7, %v3600_v47, %v3599_v59 }
 0x22c   : > { %v3525_v21 = vsel %vm3429_vm4, %v6790_v30, %v3523_v58  ;;  %v3548_v14 = vsel %vm3455_vm7, %v6792_v57, %v3546_v20  ;;  %v6795_v19 = vrot.slane %v6140_v13, 5  ;;  %v3590_v62 = vsel %vm3449_vm5, %v3589_v38, %v3588_v10 }
 0x22d   : > { %v3569_v17 = vsel %vm3426_vm3, %v6794_v49, %v3567_v31  ;;  %v3269_v39 = vadd.f32 %v3268_v43, %v3267_v25  ;;  %v3632_v11 = vsel %vm3624_vm8, %v3577_v41, %v3601_v5  ;;  %v3592_v32 = vsel %vm3452_vm6, %v3591_v2, %v3590_v62 }
 0x22e   : > { %v3571_v52 = vsel %vm3429_vm4, %v6795_v19, %v3569_v17  ;;  %v3629_v27 = vsel %vm3624_vm8, %v3525_v21, %v3548_v14  ;;  %v3412_v13 = vmul.f32 %v6235_v40, %v3261_v9  ;;  %v4060_v59 = vpack.c.bf16 %v3632_v11, %v3630_v3 }
 0x22f   : > { %v3594_v56 = vsel %vm3455_vm7, %v3593_v42, %v3592_v32  ;;  %v3619_v7 = vsel %vm3423_vm2, %v3618_v22, %v6259_v8  ;;  %v3413_v28 = vmul.f32 %v6256_v34, %v3269_v39  ;;  %v3620_v38 = vrot.slane %v3395_v51, 6  ;;  %v3634_v8 = vld [vmem:[%s6468_s3] sm:$0xff] }
 0x230   : > { %v3631_v10 = vsel %vm3624_vm8, %v3571_v52, %v3594_v56  ;;  %v3613_v44 = vsel %vm3423_vm2, %v3612_v60, %v6241_v37  ;;  %4061 = vmatprep.subr.bf16.mxu1 %v4060_v59  ;;  %v3616_v3 = vrot.slane %v3412_v13, 5  ;;  %v4326_v45 = vmov 0   ;;  %v3633_v22 = vld [vmem:[%s285_s14] sm:$0xff]  ;;  %s4233_s14 = sshll.u32 %s4327_s13, 4  ;;  %s4234_s14 = int_to_ptr.vmem [resolvable:$false] %s4233_s14 }
 0x231   : > { %v4062_v40 = vpack.c.bf16 %v3631_v10, %v3629_v27  ;;  %v3615_v2 = vsel %vm3426_vm3, %v3614_v18, %v3613_v44  ;;  %v3621_v15 = vsel %vm3426_vm3, %v3620_v38, %v3619_v7  ;;  %v3622_v34 = vrot.slane %v3413_v28, 5  ;;  %4142 = vset.pattern.permute.xlu0 %v4326_v45  ;;  %s4235_s23 = scalar_lea.vmem %s4234_s14, 512  ;;  %p4236_p4 = scmp.lt.s32.totalorder %s6414_s6, %s4234_s14 }
 0x232   : > { %v3617_v37 = vsel %vm3429_vm4, %v3616_v3, %v3615_v2  ;;  %3637 = vperm.xlu0 %4142, %v3634_v8   ;;  %p4237_p5 = scmp.lt.s32.totalorder %s4235_s23, %s4229_s19 }
 0x233   : > { %4063 = vmatpush1.bf16.msra.mxu1 %v4062_v40  ;;  %v3623_v60 = vsel %vm3429_vm4, %v3622_v34, %v3621_v15 }
 0x234   : > { %4011 = vmatprep.subr.msk.mxu1 %vm3624_vm8, %v3623_v60  ;;  %p4238_p6 = por %p4237_p5, %p4236_p4 }
 0x236   : > { %p4239_p7 = pnand %p4238_p6, %p4232_p2 }
 0x237   : > { %4012 = vmatpush1.msk.msra.mxu1 %vm3624_vm8, %v3617_v37 }
 0x238   : > { %4013 = vmatmul.mubr.msk.f32.vlgmr.msra.gmra.mrb[106].mxu1 %vm3640_vm9, %v3633_v22 }
 0x2b1   : > { %v3638_v51 = vpop.permute.xlu0 %3637 }
 0x30b   : > { %v3714_v18 = vpop.f32.mrb[106].mxu1 }
 0x30c   : > { %v3715_v42 = vadd.f32 %v3714_v18, %v3638_v51  ;;  %v3716_v4 = vpop.f32.mrb[107].mxu1 }
 0x30d   : > { %v3717_v41 = vadd.f32 %v3716_v4, %v3638_v51 }
 0x30e   : > { %v3719_v25 = vmax.f32 %v3715_v42, 0.0 }
 0x30f   : > { %v3720_v55 = vmax.f32 %v3717_v41, 0.0 }
 0x310   : > { %3721 = vst [vmem:[%s262_s5] sm:$0xff] %v3719_v25 }
 0x311   : > { %3722 = vst [vmem:[%s262_s5 + $0x8] sm:$0xff] %v3720_v55 }
 0x312   : > { %4242 = shalt.err (!%p4239_p7)
}
 0x313   : > { %s4243_s9 = scalar_lea.hbm %s6412_s12, 256  ;;  %s4247_s11 = scalar_lea.hbm %s6469_s4, 2048 }
 0x314   : > { %p4244_p9 = scmp.ne.s32.totalorder %s6412_s12, %s4243_s9  ;;  %p4248_p12 = scmp.lt.u32.totalorder %s6412_s12, %s6469_s4 }
 0x315   : > { %p4249_p13 = scmp.lt.u32.totalorder %s4247_s11, %s4243_s9  ;;  %p4251_p1 = scmp.lt.u32.totalorder %s4243_s9, %s6412_s12 }
 0x316   : > { %p4245_p10 = pnand %p4244_p9, %p4404_p3 }
 0x317   : > { %p4250_p0 = por %p4249_p13, %p4248_p12 }
 0x318   : > { %p4246_p11 = pneg %p4245_p10 }
 0x319   : > { %p4252_p2 = por %p4251_p1, %p4250_p0 }
 0x31b   : > { %p4253_p4 = pnand %p4252_p2, %p4246_p11 }
 0x31d   : > { %4256 = shalt.err (!%p4253_p4)
}
 0x31e   : > { %4069 = dma.vmem_to_hbm [thread:$0]  (%p4404_p3), %s6414_s6, 256, %s6412_s12, %s3724_s18  }
 0x31f PF: > { %p4075_p5 = scmp.ge.s32.totalorder %s4323_s22, 2  ;;  %s3754_s8 = sand.u32 1, %s4295_s15  }
 0x320   : > { %s3755_s10 = scalar_lea.sflag [#allocation3], %s3754_s8 }
 0x321   : > { %p4072_p6 = pnand %p4075_p5, %p4413_p8 }
 0x323   : > { %4290 = dma.done.wait (!%p4072_p6), %s3755_s10, 256  }
 0x324   : > { %4292 = vsyncadd (!%p4072_p6), %s3755_s10, 4294967040  ;;  %s17_s22 = sadd.s32 1, %s4323_s22   ;;  %s6796_s15 = smov %s4299_s16 }
 0x325   : > { %p14_p7 = scmp.ge.s32.totalorder %s17_s22, 10   ;;  %s6797_s16 = smov %s4303_s17 }
 0x326   : > { %s6798_s17 = smov %s4422_s7  ;;  %s6799_s18 = smov %s4315_s20 }
 0x327   : > { %s6800_s19 = smov %s4319_s21  ;;  %s6801_s20 = smov %s6804_s25 }
 0x328   : > { %s6802_s21 = smov %s6808_s26  ;;  %16 = sbr.rel (!%p14_p7) target bundleno = 5 (0x5), region = 77 }
 0x32f   :  { %3760 = vsyncpa [#allocation3], 1 }
 0x330   :  { %3762 = vsyncpa [#allocation3 + $0x1], 1 }

</bundles_post_ra>
